<compile_context>
chip_gen: v7x
topology: tpu7x:2x2x1
jax: 0.10.0
libtpu: 0.0.40
codegen_flags: <defaults>
</compile_context>

<pallas_src>
import jax
import jax.numpy as jnp
from jax.experimental import pallas as pl
from jax.experimental.pallas import tpu as pltpu

# ----------------------------- configuration ------------------------------
VOCAB = 20     # vocabulary size
EMB = 16       # embedding size == output size of last LSTM layer (ULMFiT style)
HID = 32       # hidden size of LSTM layer 0
BS = 8         # batch size
SL = 16        # full sequence length
BPTT = 8       # bptt chunk length (collapsed: state carries across chunks)
PAD_IDX = 1

GATE0 = 4 * HID        # 128 -> already a full lane tile
GATE1 = 4 * EMB        # 64
GATE1_PAD = 128        # layer-1 gate dim padded to a full lane tile


def _sigmoid_via_tanh(g):
    """sigmoid(g) = 0.5*(tanh(0.5*g)+1): one EUP push + a cheap VALU mul-add."""
    return 0.5 * (jnp.tanh(0.5 * g) + 1.0)


# ------------------------------ Pallas kernel ------------------------------
def encoder_kernel(x_ref, wih0_ref, whh0_ref, b0_ref,
                   wih1_ref, whh1_ref, b1_ref,
                   out0_ref, out1_ref,
                   xproj0_ref, h0slab_ref, xproj1_ref):
    """Two stacked LSTM layers, run as two sequential recurrence passes.

    x_ref      : (SL*BS, EMB)       time-major flattened embedded tokens
    wih0_ref   : (EMB, 4*HID)       layer-0 input weights
    whh0_ref   : (HID, 4*HID)       layer-0 recurrent weights
    b0_ref     : (1, 4*HID)         layer-0 bias (b_ih + b_hh fused)
    wih1_ref   : (HID, 128)         layer-1 input weights, gate dim padded
    whh1_ref   : (EMB, 128)         layer-1 recurrent weights, gate dim padded
    b1_ref     : (1, 128)           layer-1 bias, gate dim padded
    out0_ref   : (BS, SL*HID)       lane-dense layer-0 outputs
    out1_ref   : (BS, SL*EMB)       lane-dense layer-1 outputs
    xproj0_ref : (SL*BS, 4*HID)     VMEM scratch: hoisted layer-0 input proj
    h0slab_ref : (SL*BS, HID)       VMEM scratch: time-major layer-0 outputs
    xproj1_ref : (SL*BS, 128)       VMEM scratch: hoisted layer-1 input proj
    """
    # ---------------- pass 0: layer-0 recurrence ----------------
    # Hoisted, time-invariant input projection: one well-shaped
    # (SL*BS, EMB) @ (EMB, 4*HID) MXU call instead of SL tiny per-step dots.
    xproj0_ref[...] = (
        jnp.dot(x_ref[...], wih0_ref[...], preferred_element_type=jnp.float32)
        + b0_ref[...])

    whh0 = whh0_ref[...]

    # module.reset(): zero state once per forward.
    h0 = jnp.zeros((BS, HID), jnp.float32)
    c0 = jnp.zeros((BS, HID), jnp.float32)

    # Fully serialized recurrence; static unroll (SL is small) with per-step
    # ref stores so intermediates die immediately (bounded live ranges).
    for t in range(SL):
        # gates = Xproj0[t] + h0 @ Whh0   (128 lanes, dense, one MXU dot)
        g0 = xproj0_ref[pl.ds(t * BS, BS), :] + jnp.dot(
            h0, whh0, preferred_element_type=jnp.float32)
        sg0 = _sigmoid_via_tanh(g0)               # one full-vreg EUP tanh
        i0 = sg0[:, 0 * HID:1 * HID]
        f0 = sg0[:, 1 * HID:2 * HID]
        o0 = sg0[:, 3 * HID:4 * HID]
        n0 = jnp.tanh(g0[:, 2 * HID:3 * HID])     # EUP on the cell-gate slice
        c0 = f0 * c0 + i0 * n0
        h0 = o0 * jnp.tanh(c0)

        # Time-major slab feeding the hoisted layer-1 projection + lane-dense
        # output store (unmasked vst, 512-lane last dim on writeback).
        h0slab_ref[pl.ds(t * BS, BS), :] = h0
        out0_ref[:, t * HID:(t + 1) * HID] = h0

    # ---------------- hoisted layer-1 input projection ----------------
    # One (SL*BS, HID) @ (HID, 128) MXU call; replaces SL per-step concat+dot.
    xproj1_ref[...] = (
        jnp.dot(h0slab_ref[...], wih1_ref[...],
                preferred_element_type=jnp.float32)
        + b1_ref[...])

    # ---------------- pass 1: layer-1 recurrence ----------------
    whh1 = whh1_ref[...]
    h1 = jnp.zeros((BS, EMB), jnp.float32)
    c1 = jnp.zeros((BS, EMB), jnp.float32)

    for t in range(SL):
        # gates = Xproj1[t] + h1 @ Whh1 — a single serialized matmul per step.
        g1 = xproj1_ref[pl.ds(t * BS, BS), :] + jnp.dot(
            h1, whh1, preferred_element_type=jnp.float32)
        sg1 = _sigmoid_via_tanh(g1)
        i1 = sg1[:, 0 * EMB:1 * EMB]
        f1 = sg1[:, 1 * EMB:2 * EMB]
        o1 = sg1[:, 3 * EMB:4 * EMB]
        n1 = jnp.tanh(g1[:, 2 * EMB:3 * EMB])
        c1 = f1 * c1 + i1 * n1
        h1 = o1 * jnp.tanh(c1)

        out1_ref[:, t * EMB:(t + 1) * EMB] = h1


# ------------------------------ JAX wrapper --------------------------------
def text_only_sentence_encoder(tokens, emb_table, params, *, bptt=BPTT,
                               pad_idx=PAD_IDX):
    """Mirrors TextOnlySentenceEncoder.forward.

    Returns (raw_outputs, outputs, mask) with
      raw_outputs[l] : (bs, sl, hid_l)  per-layer LSTM outputs (chunk-concat)
      outputs[l]     : same (eval mode: RNN output dropout is identity)
      mask           : (bs, sl) bool    tokens == pad_idx
    """
    tokens = tokens.astype(jnp.int32)        # input.long()
    bs, sl = tokens.shape
    assert bs == BS and sl == SL
    assert sl % bptt == 0, "demo assumes sl is a multiple of bptt"
    # The bptt chunk loop is collapsed: state carries across chunks and
    # reset() runs once per forward, so one full-sequence pass is identical.

    # Embedding gather (plain-JAX glue; no clean tiled-Pallas win at this size)
    emb = emb_table[tokens]                                  # (bs, sl, EMB)

    # Time-major flatten so the kernel reads step t as a contiguous
    # (BS, EMB) sublane x lane tile: rows [t*BS, (t+1)*BS).
    x_flat = emb.transpose(1, 0, 2).reshape(sl * bs, EMB)

    # NOTE: weights stored as (in, 4*hid); transpose when loading real
    # PyTorch checkpoints ((4*hid, in) there), and b = b_ih + b_hh.
    wih0, whh0, b0, wih1, whh1, b1 = params

    # Pad layer-1's gate dim to a full 128-lane tile (columns only, so the
    # i/f/g/o column-group order is preserved within the first GATE1 lanes).
    wih1_pad = jnp.pad(wih1, ((0, 0), (0, GATE1_PAD - GATE1)))   # (HID, 128)
    whh1_pad = jnp.pad(whh1, ((0, 0), (0, GATE1_PAD - GATE1)))   # (EMB, 128)
    b1_pad = jnp.pad(b1, ((0, 0), (0, GATE1_PAD - GATE1)))       # (1, 128)

    out0, out1 = pl.pallas_call(
        encoder_kernel,
        out_shape=(jax.ShapeDtypeStruct((bs, sl * HID), jnp.float32),
                   jax.ShapeDtypeStruct((bs, sl * EMB), jnp.float32)),
        scratch_shapes=[
            pltpu.VMEM((sl * bs, GATE0), jnp.float32),      # xproj0
            pltpu.VMEM((sl * bs, HID), jnp.float32),        # h0 time-major slab
            pltpu.VMEM((sl * bs, GATE1_PAD), jnp.float32),  # xproj1
        ],
    )(x_flat, wih0, whh0, b0, wih1_pad, whh1_pad, b1_pad)

    # Undo the lane-dense packing: (bs, sl*hid) -> (bs, sl, hid).
    raw0 = out0.reshape(bs, sl, HID)
    raw1 = out1.reshape(bs, sl, EMB)

    # pad_tensor() is a no-op here: every chunk keeps the full batch size.
    mask = tokens == pad_idx                                 # (bs, sl) bool

    raw_outputs = [raw0, raw1]
    # TODO(synk): outputs = RNN-output-dropout(raw_outputs); identity in eval.
    outputs = [raw0, raw1]
    return raw_outputs, outputs, mask


# ---------------------------------- main ------------------------------------
if __name__ == "__main__":
    key = jax.random.PRNGKey(0)
    k_tok, k_emb, k0, k1, k2, k3, k4, k5 = jax.random.split(key, 8)

    # Tokens (bs, sl), with some pad tokens guaranteed present.
    tokens = jax.random.randint(k_tok, (BS, SL), 0, VOCAB, dtype=jnp.int32)
    tokens = tokens.at[:, -2:].set(PAD_IDX)   # trailing padding, like real batches

    # Deterministic synthetic parameters (shapes implied by the module).
    emb_table = 0.1 * jax.random.normal(k_emb, (VOCAB, EMB), jnp.float32)
    wih0 = 0.1 * jax.random.normal(k0, (EMB, 4 * HID), jnp.float32)
    whh0 = 0.1 * jax.random.normal(k1, (HID, 4 * HID), jnp.float32)
    b0 = 0.1 * jax.random.normal(k2, (1, 4 * HID), jnp.float32)
    wih1 = 0.1 * jax.random.normal(k3, (HID, 4 * EMB), jnp.float32)
    whh1 = 0.1 * jax.random.normal(k4, (EMB, 4 * EMB), jnp.float32)
    b1 = 0.1 * jax.random.normal(k5, (1, 4 * EMB), jnp.float32)
    params = (wih0, whh0, b0, wih1, whh1, b1)

    raw_outputs, outputs, mask = text_only_sentence_encoder(
        tokens, emb_table, params)

    for t in raw_outputs + outputs:
        jax.block_until_ready(t)
    jax.block_until_ready(mask)

    assert raw_outputs[0].shape == (BS, SL, HID)
    assert raw_outputs[1].shape == (BS, SL, EMB)
    assert mask.shape == (BS, SL) and mask.dtype == jnp.bool_
    print("KERNEL_OK")
</pallas_src>

<mosaic_0001>
module attributes {stable_mosaic.version = 11 : i64} {
  func.func @encoder_kernel(%arg0: memref<128x16xf32, #tpu.memory_space<vmem>>, %arg1: memref<16x128xf32, #tpu.memory_space<vmem>>, %arg2: memref<32x128xf32, #tpu.memory_space<vmem>>, %arg3: memref<1x128xf32, #tpu.memory_space<vmem>>, %arg4: memref<32x128xf32, #tpu.memory_space<vmem>>, %arg5: memref<16x128xf32, #tpu.memory_space<vmem>>, %arg6: memref<1x128xf32, #tpu.memory_space<vmem>>, %arg7: memref<8x512xf32, #tpu.memory_space<vmem>>, %arg8: memref<8x256xf32, #tpu.memory_space<vmem>>, %arg9: memref<128x128xf32, #tpu.memory_space<vmem>>, %arg10: memref<128x32xf32, #tpu.memory_space<vmem>>, %arg11: memref<128x128xf32, #tpu.memory_space<vmem>>) attributes {dimension_semantics = [], scalar_prefetch = 0 : i64, scratch_operands = 3 : i64, tpu.core_type = #tpu.core_type<tc>} {
    %c0 = arith.constant 0 : index
    %c0_0 = arith.constant 0 : index
    %0 = vector.load %arg0[%c0, %c0_0] : memref<128x16xf32, #tpu.memory_space<vmem>>, vector<128x16xf32>
    %c0_1 = arith.constant 0 : index
    %c0_2 = arith.constant 0 : index
    %1 = vector.load %arg1[%c0_1, %c0_2] : memref<16x128xf32, #tpu.memory_space<vmem>>, vector<16x128xf32>
    %cst = arith.constant dense<0.000000e+00> : vector<128x128xf32>
    %2 = tpu.matmul %0, %1, %cst {dimension_numbers = #tpu.dot_dimension_numbers<[1], [0], [0], [1], [0, 0, 1, 1], [], []>} : vector<128x16xf32>, vector<16x128xf32>, vector<128x128xf32> -> vector<128x128xf32>
    %c0_3 = arith.constant 0 : index
    %c0_4 = arith.constant 0 : index
    %3 = vector.load %arg3[%c0_3, %c0_4] : memref<1x128xf32, #tpu.memory_space<vmem>>, vector<1x128xf32>
    %4 = vector.broadcast %3 : vector<1x128xf32> to vector<128x128xf32>
    %5 = arith.addf %2, %4 : vector<128x128xf32>
    %c0_5 = arith.constant 0 : index
    %c0_6 = arith.constant 0 : index
    %6 = vector.load %arg9[%c0_5, %c0_6] : memref<128x128xf32, #tpu.memory_space<vmem>>, vector<128x128xf32>
    tpu.vector_store %arg9[%c0_5, %c0_6], %5 {strides = array<i32>} : memref<128x128xf32, #tpu.memory_space<vmem>>, vector<128x128xf32>,
    %c0_7 = arith.constant 0 : index
    %c0_8 = arith.constant 0 : index
    %7 = vector.load %arg2[%c0_7, %c0_8] : memref<32x128xf32, #tpu.memory_space<vmem>>, vector<32x128xf32>
    %cst_9 = arith.constant 0.000000e+00 : f32
    %8 = vector.broadcast %cst_9 : f32 to vector<8x32xf32>
    %cst_10 = arith.constant 0.000000e+00 : f32
    %9 = vector.broadcast %cst_10 : f32 to vector<8x32xf32>
    %c0_11 = arith.constant 0 : index
    %c0_12 = arith.constant 0 : index
    %10 = vector.load %arg9[%c0_11, %c0_12] : memref<128x128xf32, #tpu.memory_space<vmem>>, vector<8x128xf32>
    %cst_13 = arith.constant dense<0.000000e+00> : vector<8x128xf32>
    %11 = tpu.matmul %8, %7, %cst_13 {dimension_numbers = #tpu.dot_dimension_numbers<[1], [0], [0], [1], [0, 0, 1, 1], [], []>} : vector<8x32xf32>, vector<32x128xf32>, vector<8x128xf32> -> vector<8x128xf32>
    %12 = arith.addf %10, %11 : vector<8x128xf32>
    %cst_14 = arith.constant 5.000000e-01 : f32
    %13 = vector.broadcast %cst_14 : f32 to vector<8x128xf32>
    %14 = arith.mulf %13, %12 : vector<8x128xf32>
    %15 = math.tanh %14 : vector<8x128xf32>
    %cst_15 = arith.constant 1.000000e+00 : f32
    %16 = vector.broadcast %cst_15 : f32 to vector<8x128xf32>
    %17 = arith.addf %15, %16 : vector<8x128xf32>
    %cst_16 = arith.constant 5.000000e-01 : f32
    %18 = vector.broadcast %cst_16 : f32 to vector<8x128xf32>
    %19 = arith.mulf %18, %17 : vector<8x128xf32>
    %20 = vector.extract_strided_slice %19 {offsets = [0, 0], sizes = [8, 32], strides = [1, 1]} : vector<8x128xf32> to vector<8x32xf32>
    %21 = vector.extract_strided_slice %19 {offsets = [0, 32], sizes = [8, 32], strides = [1, 1]} : vector<8x128xf32> to vector<8x32xf32>
    %22 = vector.extract_strided_slice %19 {offsets = [0, 96], sizes = [8, 32], strides = [1, 1]} : vector<8x128xf32> to vector<8x32xf32>
    %23 = vector.extract_strided_slice %12 {offsets = [0, 64], sizes = [8, 32], strides = [1, 1]} : vector<8x128xf32> to vector<8x32xf32>
    %24 = math.tanh %23 : vector<8x32xf32>
    %25 = arith.mulf %21, %9 : vector<8x32xf32>
    %26 = arith.mulf %20, %24 : vector<8x32xf32>
    %27 = arith.addf %25, %26 : vector<8x32xf32>
    %28 = math.tanh %27 : vector<8x32xf32>
    %29 = arith.mulf %22, %28 : vector<8x32xf32>
    %c0_17 = arith.constant 0 : index
    %c0_18 = arith.constant 0 : index
    %30 = vector.load %arg10[%c0_17, %c0_18] : memref<128x32xf32, #tpu.memory_space<vmem>>, vector<8x32xf32>
    tpu.vector_store %arg10[%c0_17, %c0_18], %29 {strides = array<i32>} : memref<128x32xf32, #tpu.memory_space<vmem>>, vector<8x32xf32>,
    %c0_19 = arith.constant 0 : index
    %c0_20 = arith.constant 0 : index
    %31 = vector.load %arg7[%c0_19, %c0_20] : memref<8x512xf32, #tpu.memory_space<vmem>>, vector<8x32xf32>
    tpu.vector_store %arg7[%c0_19, %c0_20], %29 {strides = array<i32>} : memref<8x512xf32, #tpu.memory_space<vmem>>, vector<8x32xf32>,
    %c8 = arith.constant 8 : index
    %c0_21 = arith.constant 0 : index
    %32 = vector.load %arg9[%c8, %c0_21] : memref<128x128xf32, #tpu.memory_space<vmem>>, vector<8x128xf32>
    %cst_22 = arith.constant dense<0.000000e+00> : vector<8x128xf32>
    %33 = tpu.matmul %29, %7, %cst_22 {dimension_numbers = #tpu.dot_dimension_numbers<[1], [0], [0], [1], [0, 0, 1, 1], [], []>} : vector<8x32xf32>, vector<32x128xf32>, vector<8x128xf32> -> vector<8x128xf32>
    %34 = arith.addf %32, %33 : vector<8x128xf32>
    %cst_23 = arith.constant 5.000000e-01 : f32
    %35 = vector.broadcast %cst_23 : f32 to vector<8x128xf32>
    %36 = arith.mulf %35, %34 : vector<8x128xf32>
    %37 = math.tanh %36 : vector<8x128xf32>
    %cst_24 = arith.constant 1.000000e+00 : f32
    %38 = vector.broadcast %cst_24 : f32 to vector<8x128xf32>
    %39 = arith.addf %37, %38 : vector<8x128xf32>
    %cst_25 = arith.constant 5.000000e-01 : f32
    %40 = vector.broadcast %cst_25 : f32 to vector<8x128xf32>
    %41 = arith.mulf %40, %39 : vector<8x128xf32>
    %42 = vector.extract_strided_slice %41 {offsets = [0, 0], sizes = [8, 32], strides = [1, 1]} : vector<8x128xf32> to vector<8x32xf32>
    %43 = vector.extract_strided_slice %41 {offsets = [0, 32], sizes = [8, 32], strides = [1, 1]} : vector<8x128xf32> to vector<8x32xf32>
    %44 = vector.extract_strided_slice %41 {offsets = [0, 96], sizes = [8, 32], strides = [1, 1]} : vector<8x128xf32> to vector<8x32xf32>
    %45 = vector.extract_strided_slice %34 {offsets = [0, 64], sizes = [8, 32], strides = [1, 1]} : vector<8x128xf32> to vector<8x32xf32>
    %46 = math.tanh %45 : vector<8x32xf32>
    %47 = arith.mulf %43, %27 : vector<8x32xf32>
    %48 = arith.mulf %42, %46 : vector<8x32xf32>
    %49 = arith.addf %47, %48 : vector<8x32xf32>
    %50 = math.tanh %49 : vector<8x32xf32>
    %51 = arith.mulf %44, %50 : vector<8x32xf32>
    %c8_26 = arith.constant 8 : index
    %c0_27 = arith.constant 0 : index
    %52 = vector.load %arg10[%c8_26, %c0_27] : memref<128x32xf32, #tpu.memory_space<vmem>>, vector<8x32xf32>
    tpu.vector_store %arg10[%c8_26, %c0_27], %51 {strides = array<i32>} : memref<128x32xf32, #tpu.memory_space<vmem>>, vector<8x32xf32>,
    %c0_28 = arith.constant 0 : index
    %c32 = arith.constant 32 : index
    %53 = vector.load %arg7[%c0_28, %c32] : memref<8x512xf32, #tpu.memory_space<vmem>>, vector<8x32xf32>
    tpu.vector_store %arg7[%c0_28, %c32], %51 {strides = array<i32>} : memref<8x512xf32, #tpu.memory_space<vmem>>, vector<8x32xf32>,
    %c16 = arith.constant 16 : index
    %c0_29 = arith.constant 0 : index
    %54 = vector.load %arg9[%c16, %c0_29] : memref<128x128xf32, #tpu.memory_space<vmem>>, vector<8x128xf32>
    %cst_30 = arith.constant dense<0.000000e+00> : vector<8x128xf32>
    %55 = tpu.matmul %51, %7, %cst_30 {dimension_numbers = #tpu.dot_dimension_numbers<[1], [0], [0], [1], [0, 0, 1, 1], [], []>} : vector<8x32xf32>, vector<32x128xf32>, vector<8x128xf32> -> vector<8x128xf32>
    %56 = arith.addf %54, %55 : vector<8x128xf32>
    %cst_31 = arith.constant 5.000000e-01 : f32
    %57 = vector.broadcast %cst_31 : f32 to vector<8x128xf32>
    %58 = arith.mulf %57, %56 : vector<8x128xf32>
    %59 = math.tanh %58 : vector<8x128xf32>
    %cst_32 = arith.constant 1.000000e+00 : f32
    %60 = vector.broadcast %cst_32 : f32 to vector<8x128xf32>
    %61 = arith.addf %59, %60 : vector<8x128xf32>
    %cst_33 = arith.constant 5.000000e-01 : f32
    %62 = vector.broadcast %cst_33 : f32 to vector<8x128xf32>
    %63 = arith.mulf %62, %61 : vector<8x128xf32>
    %64 = vector.extract_strided_slice %63 {offsets = [0, 0], sizes = [8, 32], strides = [1, 1]} : vector<8x128xf32> to vector<8x32xf32>
    %65 = vector.extract_strided_slice %63 {offsets = [0, 32], sizes = [8, 32], strides = [1, 1]} : vector<8x128xf32> to vector<8x32xf32>
    %66 = vector.extract_strided_slice %63 {offsets = [0, 96], sizes = [8, 32], strides = [1, 1]} : vector<8x128xf32> to vector<8x32xf32>
    %67 = vector.extract_strided_slice %56 {offsets = [0, 64], sizes = [8, 32], strides = [1, 1]} : vector<8x128xf32> to vector<8x32xf32>
    %68 = math.tanh %67 : vector<8x32xf32>
    %69 = arith.mulf %65, %49 : vector<8x32xf32>
    %70 = arith.mulf %64, %68 : vector<8x32xf32>
    %71 = arith.addf %69, %70 : vector<8x32xf32>
    %72 = math.tanh %71 : vector<8x32xf32>
    %73 = arith.mulf %66, %72 : vector<8x32xf32>
    %c16_34 = arith.constant 16 : index
    %c0_35 = arith.constant 0 : index
    %74 = vector.load %arg10[%c16_34, %c0_35] : memref<128x32xf32, #tpu.memory_space<vmem>>, vector<8x32xf32>
    tpu.vector_store %arg10[%c16_34, %c0_35], %73 {strides = array<i32>} : memref<128x32xf32, #tpu.memory_space<vmem>>, vector<8x32xf32>,
    %c0_36 = arith.constant 0 : index
    %c64 = arith.constant 64 : index
    %75 = vector.load %arg7[%c0_36, %c64] : memref<8x512xf32, #tpu.memory_space<vmem>>, vector<8x32xf32>
    tpu.vector_store %arg7[%c0_36, %c64], %73 {strides = array<i32>} : memref<8x512xf32, #tpu.memory_space<vmem>>, vector<8x32xf32>,
    %c24 = arith.constant 24 : index
    %c0_37 = arith.constant 0 : index
    %76 = vector.load %arg9[%c24, %c0_37] : memref<128x128xf32, #tpu.memory_space<vmem>>, vector<8x128xf32>
    %cst_38 = arith.constant dense<0.000000e+00> : vector<8x128xf32>
    %77 = tpu.matmul %73, %7, %cst_38 {dimension_numbers = #tpu.dot_dimension_numbers<[1], [0], [0], [1], [0, 0, 1, 1], [], []>} : vector<8x32xf32>, vector<32x128xf32>, vector<8x128xf32> -> vector<8x128xf32>
    %78 = arith.addf %76, %77 : vector<8x128xf32>
    %cst_39 = arith.constant 5.000000e-01 : f32
    %79 = vector.broadcast %cst_39 : f32 to vector<8x128xf32>
    %80 = arith.mulf %79, %78 : vector<8x128xf32>
    %81 = math.tanh %80 : vector<8x128xf32>
    %cst_40 = arith.constant 1.000000e+00 : f32
    %82 = vector.broadcast %cst_40 : f32 to vector<8x128xf32>
    %83 = arith.addf %81, %82 : vector<8x128xf32>
    %cst_41 = arith.constant 5.000000e-01 : f32
    %84 = vector.broadcast %cst_41 : f32 to vector<8x128xf32>
    %85 = arith.mulf %84, %83 : vector<8x128xf32>
    %86 = vector.extract_strided_slice %85 {offsets = [0, 0], sizes = [8, 32], strides = [1, 1]} : vector<8x128xf32> to vector<8x32xf32>
    %87 = vector.extract_strided_slice %85 {offsets = [0, 32], sizes = [8, 32], strides = [1, 1]} : vector<8x128xf32> to vector<8x32xf32>
    %88 = vector.extract_strided_slice %85 {offsets = [0, 96], sizes = [8, 32], strides = [1, 1]} : vector<8x128xf32> to vector<8x32xf32>
    %89 = vector.extract_strided_slice %78 {offsets = [0, 64], sizes = [8, 32], strides = [1, 1]} : vector<8x128xf32> to vector<8x32xf32>
    %90 = math.tanh %89 : vector<8x32xf32>
    %91 = arith.mulf %87, %71 : vector<8x32xf32>
    %92 = arith.mulf %86, %90 : vector<8x32xf32>
    %93 = arith.addf %91, %92 : vector<8x32xf32>
    %94 = math.tanh %93 : vector<8x32xf32>
    %95 = arith.mulf %88, %94 : vector<8x32xf32>
    %c24_42 = arith.constant 24 : index
    %c0_43 = arith.constant 0 : index
    %96 = vector.load %arg10[%c24_42, %c0_43] : memref<128x32xf32, #tpu.memory_space<vmem>>, vector<8x32xf32>
    tpu.vector_store %arg10[%c24_42, %c0_43], %95 {strides = array<i32>} : memref<128x32xf32, #tpu.memory_space<vmem>>, vector<8x32xf32>,
    %c0_44 = arith.constant 0 : index
    %c96 = arith.constant 96 : index
    %97 = vector.load %arg7[%c0_44, %c96] : memref<8x512xf32, #tpu.memory_space<vmem>>, vector<8x32xf32>
    tpu.vector_store %arg7[%c0_44, %c96], %95 {strides = array<i32>} : memref<8x512xf32, #tpu.memory_space<vmem>>, vector<8x32xf32>,
    %c32_45 = arith.constant 32 : index
    %c0_46 = arith.constant 0 : index
    %98 = vector.load %arg9[%c32_45, %c0_46] : memref<128x128xf32, #tpu.memory_space<vmem>>, vector<8x128xf32>
    %cst_47 = arith.constant dense<0.000000e+00> : vector<8x128xf32>
    %99 = tpu.matmul %95, %7, %cst_47 {dimension_numbers = #tpu.dot_dimension_numbers<[1], [0], [0], [1], [0, 0, 1, 1], [], []>} : vector<8x32xf32>, vector<32x128xf32>, vector<8x128xf32> -> vector<8x128xf32>
    %100 = arith.addf %98, %99 : vector<8x128xf32>
    %cst_48 = arith.constant 5.000000e-01 : f32
    %101 = vector.broadcast %cst_48 : f32 to vector<8x128xf32>
    %102 = arith.mulf %101, %100 : vector<8x128xf32>
    %103 = math.tanh %102 : vector<8x128xf32>
    %cst_49 = arith.constant 1.000000e+00 : f32
    %104 = vector.broadcast %cst_49 : f32 to vector<8x128xf32>
    %105 = arith.addf %103, %104 : vector<8x128xf32>
    %cst_50 = arith.constant 5.000000e-01 : f32
    %106 = vector.broadcast %cst_50 : f32 to vector<8x128xf32>
    %107 = arith.mulf %106, %105 : vector<8x128xf32>
    %108 = vector.extract_strided_slice %107 {offsets = [0, 0], sizes = [8, 32], strides = [1, 1]} : vector<8x128xf32> to vector<8x32xf32>
    %109 = vector.extract_strided_slice %107 {offsets = [0, 32], sizes = [8, 32], strides = [1, 1]} : vector<8x128xf32> to vector<8x32xf32>
    %110 = vector.extract_strided_slice %107 {offsets = [0, 96], sizes = [8, 32], strides = [1, 1]} : vector<8x128xf32> to vector<8x32xf32>
    %111 = vector.extract_strided_slice %100 {offsets = [0, 64], sizes = [8, 32], strides = [1, 1]} : vector<8x128xf32> to vector<8x32xf32>
    %112 = math.tanh %111 : vector<8x32xf32>
    %113 = arith.mulf %109, %93 : vector<8x32xf32>
    %114 = arith.mulf %108, %112 : vector<8x32xf32>
    %115 = arith.addf %113, %114 : vector<8x32xf32>
    %116 = math.tanh %115 : vector<8x32xf32>
    %117 = arith.mulf %110, %116 : vector<8x32xf32>
    %c32_51 = arith.constant 32 : index
    %c0_52 = arith.constant 0 : index
    %118 = vector.load %arg10[%c32_51, %c0_52] : memref<128x32xf32, #tpu.memory_space<vmem>>, vector<8x32xf32>
    tpu.vector_store %arg10[%c32_51, %c0_52], %117 {strides = array<i32>} : memref<128x32xf32, #tpu.memory_space<vmem>>, vector<8x32xf32>,
    %c0_53 = arith.constant 0 : index
    %c128 = arith.constant 128 : index
    %119 = vector.load %arg7[%c0_53, %c128] : memref<8x512xf32, #tpu.memory_space<vmem>>, vector<8x32xf32>
    tpu.vector_store %arg7[%c0_53, %c128], %117 {strides = array<i32>} : memref<8x512xf32, #tpu.memory_space<vmem>>, vector<8x32xf32>,
    %c40 = arith.constant 40 : index
    %c0_54 = arith.constant 0 : index
    %120 = vector.load %arg9[%c40, %c0_54] : memref<128x128xf32, #tpu.memory_space<vmem>>, vector<8x128xf32>
    %cst_55 = arith.constant dense<0.000000e+00> : vector<8x128xf32>
    %121 = tpu.matmul %117, %7, %cst_55 {dimension_numbers = #tpu.dot_dimension_numbers<[1], [0], [0], [1], [0, 0, 1, 1], [], []>} : vector<8x32xf32>, vector<32x128xf32>, vector<8x128xf32> -> vector<8x128xf32>
    %122 = arith.addf %120, %121 : vector<8x128xf32>
    %cst_56 = arith.constant 5.000000e-01 : f32
    %123 = vector.broadcast %cst_56 : f32 to vector<8x128xf32>
    %124 = arith.mulf %123, %122 : vector<8x128xf32>
    %125 = math.tanh %124 : vector<8x128xf32>
    %cst_57 = arith.constant 1.000000e+00 : f32
    %126 = vector.broadcast %cst_57 : f32 to vector<8x128xf32>
    %127 = arith.addf %125, %126 : vector<8x128xf32>
    %cst_58 = arith.constant 5.000000e-01 : f32
    %128 = vector.broadcast %cst_58 : f32 to vector<8x128xf32>
    %129 = arith.mulf %128, %127 : vector<8x128xf32>
    %130 = vector.extract_strided_slice %129 {offsets = [0, 0], sizes = [8, 32], strides = [1, 1]} : vector<8x128xf32> to vector<8x32xf32>
    %131 = vector.extract_strided_slice %129 {offsets = [0, 32], sizes = [8, 32], strides = [1, 1]} : vector<8x128xf32> to vector<8x32xf32>
    %132 = vector.extract_strided_slice %129 {offsets = [0, 96], sizes = [8, 32], strides = [1, 1]} : vector<8x128xf32> to vector<8x32xf32>
    %133 = vector.extract_strided_slice %122 {offsets = [0, 64], sizes = [8, 32], strides = [1, 1]} : vector<8x128xf32> to vector<8x32xf32>
    %134 = math.tanh %133 : vector<8x32xf32>
    %135 = arith.mulf %131, %115 : vector<8x32xf32>
    %136 = arith.mulf %130, %134 : vector<8x32xf32>
    %137 = arith.addf %135, %136 : vector<8x32xf32>
    %138 = math.tanh %137 : vector<8x32xf32>
    %139 = arith.mulf %132, %138 : vector<8x32xf32>
    %c40_59 = arith.constant 40 : index
    %c0_60 = arith.constant 0 : index
    %140 = vector.load %arg10[%c40_59, %c0_60] : memref<128x32xf32, #tpu.memory_space<vmem>>, vector<8x32xf32>
    tpu.vector_store %arg10[%c40_59, %c0_60], %139 {strides = array<i32>} : memref<128x32xf32, #tpu.memory_space<vmem>>, vector<8x32xf32>,
    %c0_61 = arith.constant 0 : index
    %c160 = arith.constant 160 : index
    %141 = vector.load %arg7[%c0_61, %c160] : memref<8x512xf32, #tpu.memory_space<vmem>>, vector<8x32xf32>
    tpu.vector_store %arg7[%c0_61, %c160], %139 {strides = array<i32>} : memref<8x512xf32, #tpu.memory_space<vmem>>, vector<8x32xf32>,
    %c48 = arith.constant 48 : index
    %c0_62 = arith.constant 0 : index
    %142 = vector.load %arg9[%c48, %c0_62] : memref<128x128xf32, #tpu.memory_space<vmem>>, vector<8x128xf32>
    %cst_63 = arith.constant dense<0.000000e+00> : vector<8x128xf32>
    %143 = tpu.matmul %139, %7, %cst_63 {dimension_numbers = #tpu.dot_dimension_numbers<[1], [0], [0], [1], [0, 0, 1, 1], [], []>} : vector<8x32xf32>, vector<32x128xf32>, vector<8x128xf32> -> vector<8x128xf32>
    %144 = arith.addf %142, %143 : vector<8x128xf32>
    %cst_64 = arith.constant 5.000000e-01 : f32
    %145 = vector.broadcast %cst_64 : f32 to vector<8x128xf32>
    %146 = arith.mulf %145, %144 : vector<8x128xf32>
    %147 = math.tanh %146 : vector<8x128xf32>
    %cst_65 = arith.constant 1.000000e+00 : f32
    %148 = vector.broadcast %cst_65 : f32 to vector<8x128xf32>
    %149 = arith.addf %147, %148 : vector<8x128xf32>
    %cst_66 = arith.constant 5.000000e-01 : f32
    %150 = vector.broadcast %cst_66 : f32 to vector<8x128xf32>
    %151 = arith.mulf %150, %149 : vector<8x128xf32>
    %152 = vector.extract_strided_slice %151 {offsets = [0, 0], sizes = [8, 32], strides = [1, 1]} : vector<8x128xf32> to vector<8x32xf32>
    %153 = vector.extract_strided_slice %151 {offsets = [0, 32], sizes = [8, 32], strides = [1, 1]} : vector<8x128xf32> to vector<8x32xf32>
    %154 = vector.extract_strided_slice %151 {offsets = [0, 96], sizes = [8, 32], strides = [1, 1]} : vector<8x128xf32> to vector<8x32xf32>
    %155 = vector.extract_strided_slice %144 {offsets = [0, 64], sizes = [8, 32], strides = [1, 1]} : vector<8x128xf32> to vector<8x32xf32>
    %156 = math.tanh %155 : vector<8x32xf32>
    %157 = arith.mulf %153, %137 : vector<8x32xf32>
    %158 = arith.mulf %152, %156 : vector<8x32xf32>
    %159 = arith.addf %157, %158 : vector<8x32xf32>
    %160 = math.tanh %159 : vector<8x32xf32>
    %161 = arith.mulf %154, %160 : vector<8x32xf32>
    %c48_67 = arith.constant 48 : index
    %c0_68 = arith.constant 0 : index
    %162 = vector.load %arg10[%c48_67, %c0_68] : memref<128x32xf32, #tpu.memory_space<vmem>>, vector<8x32xf32>
    tpu.vector_store %arg10[%c48_67, %c0_68], %161 {strides = array<i32>} : memref<128x32xf32, #tpu.memory_space<vmem>>, vector<8x32xf32>,
    %c0_69 = arith.constant 0 : index
    %c192 = arith.constant 192 : index
    %163 = vector.load %arg7[%c0_69, %c192] : memref<8x512xf32, #tpu.memory_space<vmem>>, vector<8x32xf32>
    tpu.vector_store %arg7[%c0_69, %c192], %161 {strides = array<i32>} : memref<8x512xf32, #tpu.memory_space<vmem>>, vector<8x32xf32>,
    %c56 = arith.constant 56 : index
    %c0_70 = arith.constant 0 : index
    %164 = vector.load %arg9[%c56, %c0_70] : memref<128x128xf32, #tpu.memory_space<vmem>>, vector<8x128xf32>
    %cst_71 = arith.constant dense<0.000000e+00> : vector<8x128xf32>
    %165 = tpu.matmul %161, %7, %cst_71 {dimension_numbers = #tpu.dot_dimension_numbers<[1], [0], [0], [1], [0, 0, 1, 1], [], []>} : vector<8x32xf32>, vector<32x128xf32>, vector<8x128xf32> -> vector<8x128xf32>
    %166 = arith.addf %164, %165 : vector<8x128xf32>
    %cst_72 = arith.constant 5.000000e-01 : f32
    %167 = vector.broadcast %cst_72 : f32 to vector<8x128xf32>
    %168 = arith.mulf %167, %166 : vector<8x128xf32>
    %169 = math.tanh %168 : vector<8x128xf32>
    %cst_73 = arith.constant 1.000000e+00 : f32
    %170 = vector.broadcast %cst_73 : f32 to vector<8x128xf32>
    %171 = arith.addf %169, %170 : vector<8x128xf32>
    %cst_74 = arith.constant 5.000000e-01 : f32
    %172 = vector.broadcast %cst_74 : f32 to vector<8x128xf32>
    %173 = arith.mulf %172, %171 : vector<8x128xf32>
    %174 = vector.extract_strided_slice %173 {offsets = [0, 0], sizes = [8, 32], strides = [1, 1]} : vector<8x128xf32> to vector<8x32xf32>
    %175 = vector.extract_strided_slice %173 {offsets = [0, 32], sizes = [8, 32], strides = [1, 1]} : vector<8x128xf32> to vector<8x32xf32>
    %176 = vector.extract_strided_slice %173 {offsets = [0, 96], sizes = [8, 32], strides = [1, 1]} : vector<8x128xf32> to vector<8x32xf32>
    %177 = vector.extract_strided_slice %166 {offsets = [0, 64], sizes = [8, 32], strides = [1, 1]} : vector<8x128xf32> to vector<8x32xf32>
    %178 = math.tanh %177 : vector<8x32xf32>
    %179 = arith.mulf %175, %159 : vector<8x32xf32>
    %180 = arith.mulf %174, %178 : vector<8x32xf32>
    %181 = arith.addf %179, %180 : vector<8x32xf32>
    %182 = math.tanh %181 : vector<8x32xf32>
    %183 = arith.mulf %176, %182 : vector<8x32xf32>
    %c56_75 = arith.constant 56 : index
    %c0_76 = arith.constant 0 : index
    %184 = vector.load %arg10[%c56_75, %c0_76] : memref<128x32xf32, #tpu.memory_space<vmem>>, vector<8x32xf32>
    tpu.vector_store %arg10[%c56_75, %c0_76], %183 {strides = array<i32>} : memref<128x32xf32, #tpu.memory_space<vmem>>, vector<8x32xf32>,
    %c0_77 = arith.constant 0 : index
    %c224 = arith.constant 224 : index
    %185 = vector.load %arg7[%c0_77, %c224] : memref<8x512xf32, #tpu.memory_space<vmem>>, vector<8x32xf32>
    tpu.vector_store %arg7[%c0_77, %c224], %183 {strides = array<i32>} : memref<8x512xf32, #tpu.memory_space<vmem>>, vector<8x32xf32>,
    %c64_78 = arith.constant 64 : index
    %c0_79 = arith.constant 0 : index
    %186 = vector.load %arg9[%c64_78, %c0_79] : memref<128x128xf32, #tpu.memory_space<vmem>>, vector<8x128xf32>
    %cst_80 = arith.constant dense<0.000000e+00> : vector<8x128xf32>
    %187 = tpu.matmul %183, %7, %cst_80 {dimension_numbers = #tpu.dot_dimension_numbers<[1], [0], [0], [1], [0, 0, 1, 1], [], []>} : vector<8x32xf32>, vector<32x128xf32>, vector<8x128xf32> -> vector<8x128xf32>
    %188 = arith.addf %186, %187 : vector<8x128xf32>
    %cst_81 = arith.constant 5.000000e-01 : f32
    %189 = vector.broadcast %cst_81 : f32 to vector<8x128xf32>
    %190 = arith.mulf %189, %188 : vector<8x128xf32>
    %191 = math.tanh %190 : vector<8x128xf32>
    %cst_82 = arith.constant 1.000000e+00 : f32
    %192 = vector.broadcast %cst_82 : f32 to vector<8x128xf32>
    %193 = arith.addf %191, %192 : vector<8x128xf32>
    %cst_83 = arith.constant 5.000000e-01 : f32
    %194 = vector.broadcast %cst_83 : f32 to vector<8x128xf32>
    %195 = arith.mulf %194, %193 : vector<8x128xf32>
    %196 = vector.extract_strided_slice %195 {offsets = [0, 0], sizes = [8, 32], strides = [1, 1]} : vector<8x128xf32> to vector<8x32xf32>
    %197 = vector.extract_strided_slice %195 {offsets = [0, 32], sizes = [8, 32], strides = [1, 1]} : vector<8x128xf32> to vector<8x32xf32>
    %198 = vector.extract_strided_slice %195 {offsets = [0, 96], sizes = [8, 32], strides = [1, 1]} : vector<8x128xf32> to vector<8x32xf32>
    %199 = vector.extract_strided_slice %188 {offsets = [0, 64], sizes = [8, 32], strides = [1, 1]} : vector<8x128xf32> to vector<8x32xf32>
    %200 = math.tanh %199 : vector<8x32xf32>
    %201 = arith.mulf %197, %181 : vector<8x32xf32>
    %202 = arith.mulf %196, %200 : vector<8x32xf32>
    %203 = arith.addf %201, %202 : vector<8x32xf32>
    %204 = math.tanh %203 : vector<8x32xf32>
    %205 = arith.mulf %198, %204 : vector<8x32xf32>
    %c64_84 = arith.constant 64 : index
    %c0_85 = arith.constant 0 : index
    %206 = vector.load %arg10[%c64_84, %c0_85] : memref<128x32xf32, #tpu.memory_space<vmem>>, vector<8x32xf32>
    tpu.vector_store %arg10[%c64_84, %c0_85], %205 {strides = array<i32>} : memref<128x32xf32, #tpu.memory_space<vmem>>, vector<8x32xf32>,
    %c0_86 = arith.constant 0 : index
    %c256 = arith.constant 256 : index
    %207 = vector.load %arg7[%c0_86, %c256] : memref<8x512xf32, #tpu.memory_space<vmem>>, vector<8x32xf32>
    tpu.vector_store %arg7[%c0_86, %c256], %205 {strides = array<i32>} : memref<8x512xf32, #tpu.memory_space<vmem>>, vector<8x32xf32>,
    %c72 = arith.constant 72 : index
    %c0_87 = arith.constant 0 : index
    %208 = vector.load %arg9[%c72, %c0_87] : memref<128x128xf32, #tpu.memory_space<vmem>>, vector<8x128xf32>
    %cst_88 = arith.constant dense<0.000000e+00> : vector<8x128xf32>
    %209 = tpu.matmul %205, %7, %cst_88 {dimension_numbers = #tpu.dot_dimension_numbers<[1], [0], [0], [1], [0, 0, 1, 1], [], []>} : vector<8x32xf32>, vector<32x128xf32>, vector<8x128xf32> -> vector<8x128xf32>
    %210 = arith.addf %208, %209 : vector<8x128xf32>
    %cst_89 = arith.constant 5.000000e-01 : f32
    %211 = vector.broadcast %cst_89 : f32 to vector<8x128xf32>
    %212 = arith.mulf %211, %210 : vector<8x128xf32>
    %213 = math.tanh %212 : vector<8x128xf32>
    %cst_90 = arith.constant 1.000000e+00 : f32
    %214 = vector.broadcast %cst_90 : f32 to vector<8x128xf32>
    %215 = arith.addf %213, %214 : vector<8x128xf32>
    %cst_91 = arith.constant 5.000000e-01 : f32
    %216 = vector.broadcast %cst_91 : f32 to vector<8x128xf32>
    %217 = arith.mulf %216, %215 : vector<8x128xf32>
    %218 = vector.extract_strided_slice %217 {offsets = [0, 0], sizes = [8, 32], strides = [1, 1]} : vector<8x128xf32> to vector<8x32xf32>
    %219 = vector.extract_strided_slice %217 {offsets = [0, 32], sizes = [8, 32], strides = [1, 1]} : vector<8x128xf32> to vector<8x32xf32>
    %220 = vector.extract_strided_slice %217 {offsets = [0, 96], sizes = [8, 32], strides = [1, 1]} : vector<8x128xf32> to vector<8x32xf32>
    %221 = vector.extract_strided_slice %210 {offsets = [0, 64], sizes = [8, 32], strides = [1, 1]} : vector<8x128xf32> to vector<8x32xf32>
    %222 = math.tanh %221 : vector<8x32xf32>
    %223 = arith.mulf %219, %203 : vector<8x32xf32>
    %224 = arith.mulf %218, %222 : vector<8x32xf32>
    %225 = arith.addf %223, %224 : vector<8x32xf32>
    %226 = math.tanh %225 : vector<8x32xf32>
    %227 = arith.mulf %220, %226 : vector<8x32xf32>
    %c72_92 = arith.constant 72 : index
    %c0_93 = arith.constant 0 : index
    %228 = vector.load %arg10[%c72_92, %c0_93] : memref<128x32xf32, #tpu.memory_space<vmem>>, vector<8x32xf32>
    tpu.vector_store %arg10[%c72_92, %c0_93], %227 {strides = array<i32>} : memref<128x32xf32, #tpu.memory_space<vmem>>, vector<8x32xf32>,
    %c0_94 = arith.constant 0 : index
    %c288 = arith.constant 288 : index
    %229 = vector.load %arg7[%c0_94, %c288] : memref<8x512xf32, #tpu.memory_space<vmem>>, vector<8x32xf32>
    tpu.vector_store %arg7[%c0_94, %c288], %227 {strides = array<i32>} : memref<8x512xf32, #tpu.memory_space<vmem>>, vector<8x32xf32>,
    %c80 = arith.constant 80 : index
    %c0_95 = arith.constant 0 : index
    %230 = vector.load %arg9[%c80, %c0_95] : memref<128x128xf32, #tpu.memory_space<vmem>>, vector<8x128xf32>
    %cst_96 = arith.constant dense<0.000000e+00> : vector<8x128xf32>
    %231 = tpu.matmul %227, %7, %cst_96 {dimension_numbers = #tpu.dot_dimension_numbers<[1], [0], [0], [1], [0, 0, 1, 1], [], []>} : vector<8x32xf32>, vector<32x128xf32>, vector<8x128xf32> -> vector<8x128xf32>
    %232 = arith.addf %230, %231 : vector<8x128xf32>
    %cst_97 = arith.constant 5.000000e-01 : f32
    %233 = vector.broadcast %cst_97 : f32 to vector<8x128xf32>
    %234 = arith.mulf %233, %232 : vector<8x128xf32>
    %235 = math.tanh %234 : vector<8x128xf32>
    %cst_98 = arith.constant 1.000000e+00 : f32
    %236 = vector.broadcast %cst_98 : f32 to vector<8x128xf32>
    %237 = arith.addf %235, %236 : vector<8x128xf32>
    %cst_99 = arith.constant 5.000000e-01 : f32
    %238 = vector.broadcast %cst_99 : f32 to vector<8x128xf32>
    %239 = arith.mulf %238, %237 : vector<8x128xf32>
    %240 = vector.extract_strided_slice %239 {offsets = [0, 0], sizes = [8, 32], strides = [1, 1]} : vector<8x128xf32> to vector<8x32xf32>
    %241 = vector.extract_strided_slice %239 {offsets = [0, 32], sizes = [8, 32], strides = [1, 1]} : vector<8x128xf32> to vector<8x32xf32>
    %242 = vector.extract_strided_slice %239 {offsets = [0, 96], sizes = [8, 32], strides = [1, 1]} : vector<8x128xf32> to vector<8x32xf32>
    %243 = vector.extract_strided_slice %232 {offsets = [0, 64], sizes = [8, 32], strides = [1, 1]} : vector<8x128xf32> to vector<8x32xf32>
    %244 = math.tanh %243 : vector<8x32xf32>
    %245 = arith.mulf %241, %225 : vector<8x32xf32>
    %246 = arith.mulf %240, %244 : vector<8x32xf32>
    %247 = arith.addf %245, %246 : vector<8x32xf32>
    %248 = math.tanh %247 : vector<8x32xf32>
    %249 = arith.mulf %242, %248 : vector<8x32xf32>
    %c80_100 = arith.constant 80 : index
    %c0_101 = arith.constant 0 : index
    %250 = vector.load %arg10[%c80_100, %c0_101] : memref<128x32xf32, #tpu.memory_space<vmem>>, vector<8x32xf32>
    tpu.vector_store %arg10[%c80_100, %c0_101], %249 {strides = array<i32>} : memref<128x32xf32, #tpu.memory_space<vmem>>, vector<8x32xf32>,
    %c0_102 = arith.constant 0 : index
    %c320 = arith.constant 320 : index
    %251 = vector.load %arg7[%c0_102, %c320] : memref<8x512xf32, #tpu.memory_space<vmem>>, vector<8x32xf32>
    tpu.vector_store %arg7[%c0_102, %c320], %249 {strides = array<i32>} : memref<8x512xf32, #tpu.memory_space<vmem>>, vector<8x32xf32>,
    %c88 = arith.constant 88 : index
    %c0_103 = arith.constant 0 : index
    %252 = vector.load %arg9[%c88, %c0_103] : memref<128x128xf32, #tpu.memory_space<vmem>>, vector<8x128xf32>
    %cst_104 = arith.constant dense<0.000000e+00> : vector<8x128xf32>
    %253 = tpu.matmul %249, %7, %cst_104 {dimension_numbers = #tpu.dot_dimension_numbers<[1], [0], [0], [1], [0, 0, 1, 1], [], []>} : vector<8x32xf32>, vector<32x128xf32>, vector<8x128xf32> -> vector<8x128xf32>
    %254 = arith.addf %252, %253 : vector<8x128xf32>
    %cst_105 = arith.constant 5.000000e-01 : f32
    %255 = vector.broadcast %cst_105 : f32 to vector<8x128xf32>
    %256 = arith.mulf %255, %254 : vector<8x128xf32>
    %257 = math.tanh %256 : vector<8x128xf32>
    %cst_106 = arith.constant 1.000000e+00 : f32
    %258 = vector.broadcast %cst_106 : f32 to vector<8x128xf32>
    %259 = arith.addf %257, %258 : vector<8x128xf32>
    %cst_107 = arith.constant 5.000000e-01 : f32
    %260 = vector.broadcast %cst_107 : f32 to vector<8x128xf32>
    %261 = arith.mulf %260, %259 : vector<8x128xf32>
    %262 = vector.extract_strided_slice %261 {offsets = [0, 0], sizes = [8, 32], strides = [1, 1]} : vector<8x128xf32> to vector<8x32xf32>
    %263 = vector.extract_strided_slice %261 {offsets = [0, 32], sizes = [8, 32], strides = [1, 1]} : vector<8x128xf32> to vector<8x32xf32>
    %264 = vector.extract_strided_slice %261 {offsets = [0, 96], sizes = [8, 32], strides = [1, 1]} : vector<8x128xf32> to vector<8x32xf32>
    %265 = vector.extract_strided_slice %254 {offsets = [0, 64], sizes = [8, 32], strides = [1, 1]} : vector<8x128xf32> to vector<8x32xf32>
    %266 = math.tanh %265 : vector<8x32xf32>
    %267 = arith.mulf %263, %247 : vector<8x32xf32>
    %268 = arith.mulf %262, %266 : vector<8x32xf32>
    %269 = arith.addf %267, %268 : vector<8x32xf32>
    %270 = math.tanh %269 : vector<8x32xf32>
    %271 = arith.mulf %264, %270 : vector<8x32xf32>
    %c88_108 = arith.constant 88 : index
    %c0_109 = arith.constant 0 : index
    %272 = vector.load %arg10[%c88_108, %c0_109] : memref<128x32xf32, #tpu.memory_space<vmem>>, vector<8x32xf32>
    tpu.vector_store %arg10[%c88_108, %c0_109], %271 {strides = array<i32>} : memref<128x32xf32, #tpu.memory_space<vmem>>, vector<8x32xf32>,
    %c0_110 = arith.constant 0 : index
    %c352 = arith.constant 352 : index
    %273 = vector.load %arg7[%c0_110, %c352] : memref<8x512xf32, #tpu.memory_space<vmem>>, vector<8x32xf32>
    tpu.vector_store %arg7[%c0_110, %c352], %271 {strides = array<i32>} : memref<8x512xf32, #tpu.memory_space<vmem>>, vector<8x32xf32>,
    %c96_111 = arith.constant 96 : index
    %c0_112 = arith.constant 0 : index
    %274 = vector.load %arg9[%c96_111, %c0_112] : memref<128x128xf32, #tpu.memory_space<vmem>>, vector<8x128xf32>
    %cst_113 = arith.constant dense<0.000000e+00> : vector<8x128xf32>
    %275 = tpu.matmul %271, %7, %cst_113 {dimension_numbers = #tpu.dot_dimension_numbers<[1], [0], [0], [1], [0, 0, 1, 1], [], []>} : vector<8x32xf32>, vector<32x128xf32>, vector<8x128xf32> -> vector<8x128xf32>
    %276 = arith.addf %274, %275 : vector<8x128xf32>
    %cst_114 = arith.constant 5.000000e-01 : f32
    %277 = vector.broadcast %cst_114 : f32 to vector<8x128xf32>
    %278 = arith.mulf %277, %276 : vector<8x128xf32>
    %279 = math.tanh %278 : vector<8x128xf32>
    %cst_115 = arith.constant 1.000000e+00 : f32
    %280 = vector.broadcast %cst_115 : f32 to vector<8x128xf32>
    %281 = arith.addf %279, %280 : vector<8x128xf32>
    %cst_116 = arith.constant 5.000000e-01 : f32
    %282 = vector.broadcast %cst_116 : f32 to vector<8x128xf32>
    %283 = arith.mulf %282, %281 : vector<8x128xf32>
    %284 = vector.extract_strided_slice %283 {offsets = [0, 0], sizes = [8, 32], strides = [1, 1]} : vector<8x128xf32> to vector<8x32xf32>
    %285 = vector.extract_strided_slice %283 {offsets = [0, 32], sizes = [8, 32], strides = [1, 1]} : vector<8x128xf32> to vector<8x32xf32>
    %286 = vector.extract_strided_slice %283 {offsets = [0, 96], sizes = [8, 32], strides = [1, 1]} : vector<8x128xf32> to vector<8x32xf32>
    %287 = vector.extract_strided_slice %276 {offsets = [0, 64], sizes = [8, 32], strides = [1, 1]} : vector<8x128xf32> to vector<8x32xf32>
    %288 = math.tanh %287 : vector<8x32xf32>
    %289 = arith.mulf %285, %269 : vector<8x32xf32>
    %290 = arith.mulf %284, %288 : vector<8x32xf32>
    %291 = arith.addf %289, %290 : vector<8x32xf32>
    %292 = math.tanh %291 : vector<8x32xf32>
    %293 = arith.mulf %286, %292 : vector<8x32xf32>
    %c96_117 = arith.constant 96 : index
    %c0_118 = arith.constant 0 : index
    %294 = vector.load %arg10[%c96_117, %c0_118] : memref<128x32xf32, #tpu.memory_space<vmem>>, vector<8x32xf32>
    tpu.vector_store %arg10[%c96_117, %c0_118], %293 {strides = array<i32>} : memref<128x32xf32, #tpu.memory_space<vmem>>, vector<8x32xf32>,
    %c0_119 = arith.constant 0 : index
    %c384 = arith.constant 384 : index
    %295 = vector.load %arg7[%c0_119, %c384] : memref<8x512xf32, #tpu.memory_space<vmem>>, vector<8x32xf32>
    tpu.vector_store %arg7[%c0_119, %c384], %293 {strides = array<i32>} : memref<8x512xf32, #tpu.memory_space<vmem>>, vector<8x32xf32>,
    %c104 = arith.constant 104 : index
    %c0_120 = arith.constant 0 : index
    %296 = vector.load %arg9[%c104, %c0_120] : memref<128x128xf32, #tpu.memory_space<vmem>>, vector<8x128xf32>
    %cst_121 = arith.constant dense<0.000000e+00> : vector<8x128xf32>
    %297 = tpu.matmul %293, %7, %cst_121 {dimension_numbers = #tpu.dot_dimension_numbers<[1], [0], [0], [1], [0, 0, 1, 1], [], []>} : vector<8x32xf32>, vector<32x128xf32>, vector<8x128xf32> -> vector<8x128xf32>
    %298 = arith.addf %296, %297 : vector<8x128xf32>
    %cst_122 = arith.constant 5.000000e-01 : f32
    %299 = vector.broadcast %cst_122 : f32 to vector<8x128xf32>
    %300 = arith.mulf %299, %298 : vector<8x128xf32>
    %301 = math.tanh %300 : vector<8x128xf32>
    %cst_123 = arith.constant 1.000000e+00 : f32
    %302 = vector.broadcast %cst_123 : f32 to vector<8x128xf32>
    %303 = arith.addf %301, %302 : vector<8x128xf32>
    %cst_124 = arith.constant 5.000000e-01 : f32
    %304 = vector.broadcast %cst_124 : f32 to vector<8x128xf32>
    %305 = arith.mulf %304, %303 : vector<8x128xf32>
    %306 = vector.extract_strided_slice %305 {offsets = [0, 0], sizes = [8, 32], strides = [1, 1]} : vector<8x128xf32> to vector<8x32xf32>
    %307 = vector.extract_strided_slice %305 {offsets = [0, 32], sizes = [8, 32], strides = [1, 1]} : vector<8x128xf32> to vector<8x32xf32>
    %308 = vector.extract_strided_slice %305 {offsets = [0, 96], sizes = [8, 32], strides = [1, 1]} : vector<8x128xf32> to vector<8x32xf32>
    %309 = vector.extract_strided_slice %298 {offsets = [0, 64], sizes = [8, 32], strides = [1, 1]} : vector<8x128xf32> to vector<8x32xf32>
    %310 = math.tanh %309 : vector<8x32xf32>
    %311 = arith.mulf %307, %291 : vector<8x32xf32>
    %312 = arith.mulf %306, %310 : vector<8x32xf32>
    %313 = arith.addf %311, %312 : vector<8x32xf32>
    %314 = math.tanh %313 : vector<8x32xf32>
    %315 = arith.mulf %308, %314 : vector<8x32xf32>
    %c104_125 = arith.constant 104 : index
    %c0_126 = arith.constant 0 : index
    %316 = vector.load %arg10[%c104_125, %c0_126] : memref<128x32xf32, #tpu.memory_space<vmem>>, vector<8x32xf32>
    tpu.vector_store %arg10[%c104_125, %c0_126], %315 {strides = array<i32>} : memref<128x32xf32, #tpu.memory_space<vmem>>, vector<8x32xf32>,
    %c0_127 = arith.constant 0 : index
    %c416 = arith.constant 416 : index
    %317 = vector.load %arg7[%c0_127, %c416] : memref<8x512xf32, #tpu.memory_space<vmem>>, vector<8x32xf32>
    tpu.vector_store %arg7[%c0_127, %c416], %315 {strides = array<i32>} : memref<8x512xf32, #tpu.memory_space<vmem>>, vector<8x32xf32>,
    %c112 = arith.constant 112 : index
    %c0_128 = arith.constant 0 : index
    %318 = vector.load %arg9[%c112, %c0_128] : memref<128x128xf32, #tpu.memory_space<vmem>>, vector<8x128xf32>
    %cst_129 = arith.constant dense<0.000000e+00> : vector<8x128xf32>
    %319 = tpu.matmul %315, %7, %cst_129 {dimension_numbers = #tpu.dot_dimension_numbers<[1], [0], [0], [1], [0, 0, 1, 1], [], []>} : vector<8x32xf32>, vector<32x128xf32>, vector<8x128xf32> -> vector<8x128xf32>
    %320 = arith.addf %318, %319 : vector<8x128xf32>
    %cst_130 = arith.constant 5.000000e-01 : f32
    %321 = vector.broadcast %cst_130 : f32 to vector<8x128xf32>
    %322 = arith.mulf %321, %320 : vector<8x128xf32>
    %323 = math.tanh %322 : vector<8x128xf32>
    %cst_131 = arith.constant 1.000000e+00 : f32
    %324 = vector.broadcast %cst_131 : f32 to vector<8x128xf32>
    %325 = arith.addf %323, %324 : vector<8x128xf32>
    %cst_132 = arith.constant 5.000000e-01 : f32
    %326 = vector.broadcast %cst_132 : f32 to vector<8x128xf32>
    %327 = arith.mulf %326, %325 : vector<8x128xf32>
    %328 = vector.extract_strided_slice %327 {offsets = [0, 0], sizes = [8, 32], strides = [1, 1]} : vector<8x128xf32> to vector<8x32xf32>
    %329 = vector.extract_strided_slice %327 {offsets = [0, 32], sizes = [8, 32], strides = [1, 1]} : vector<8x128xf32> to vector<8x32xf32>
    %330 = vector.extract_strided_slice %327 {offsets = [0, 96], sizes = [8, 32], strides = [1, 1]} : vector<8x128xf32> to vector<8x32xf32>
    %331 = vector.extract_strided_slice %320 {offsets = [0, 64], sizes = [8, 32], strides = [1, 1]} : vector<8x128xf32> to vector<8x32xf32>
    %332 = math.tanh %331 : vector<8x32xf32>
    %333 = arith.mulf %329, %313 : vector<8x32xf32>
    %334 = arith.mulf %328, %332 : vector<8x32xf32>
    %335 = arith.addf %333, %334 : vector<8x32xf32>
    %336 = math.tanh %335 : vector<8x32xf32>
    %337 = arith.mulf %330, %336 : vector<8x32xf32>
    %c112_133 = arith.constant 112 : index
    %c0_134 = arith.constant 0 : index
    %338 = vector.load %arg10[%c112_133, %c0_134] : memref<128x32xf32, #tpu.memory_space<vmem>>, vector<8x32xf32>
    tpu.vector_store %arg10[%c112_133, %c0_134], %337 {strides = array<i32>} : memref<128x32xf32, #tpu.memory_space<vmem>>, vector<8x32xf32>,
    %c0_135 = arith.constant 0 : index
    %c448 = arith.constant 448 : index
    %339 = vector.load %arg7[%c0_135, %c448] : memref<8x512xf32, #tpu.memory_space<vmem>>, vector<8x32xf32>
    tpu.vector_store %arg7[%c0_135, %c448], %337 {strides = array<i32>} : memref<8x512xf32, #tpu.memory_space<vmem>>, vector<8x32xf32>,
    %c120 = arith.constant 120 : index
    %c0_136 = arith.constant 0 : index
    %340 = vector.load %arg9[%c120, %c0_136] : memref<128x128xf32, #tpu.memory_space<vmem>>, vector<8x128xf32>
    %cst_137 = arith.constant dense<0.000000e+00> : vector<8x128xf32>
    %341 = tpu.matmul %337, %7, %cst_137 {dimension_numbers = #tpu.dot_dimension_numbers<[1], [0], [0], [1], [0, 0, 1, 1], [], []>} : vector<8x32xf32>, vector<32x128xf32>, vector<8x128xf32> -> vector<8x128xf32>
    %342 = arith.addf %340, %341 : vector<8x128xf32>
    %cst_138 = arith.constant 5.000000e-01 : f32
    %343 = vector.broadcast %cst_138 : f32 to vector<8x128xf32>
    %344 = arith.mulf %343, %342 : vector<8x128xf32>
    %345 = math.tanh %344 : vector<8x128xf32>
    %cst_139 = arith.constant 1.000000e+00 : f32
    %346 = vector.broadcast %cst_139 : f32 to vector<8x128xf32>
    %347 = arith.addf %345, %346 : vector<8x128xf32>
    %cst_140 = arith.constant 5.000000e-01 : f32
    %348 = vector.broadcast %cst_140 : f32 to vector<8x128xf32>
    %349 = arith.mulf %348, %347 : vector<8x128xf32>
    %350 = vector.extract_strided_slice %349 {offsets = [0, 0], sizes = [8, 32], strides = [1, 1]} : vector<8x128xf32> to vector<8x32xf32>
    %351 = vector.extract_strided_slice %349 {offsets = [0, 32], sizes = [8, 32], strides = [1, 1]} : vector<8x128xf32> to vector<8x32xf32>
    %352 = vector.extract_strided_slice %349 {offsets = [0, 96], sizes = [8, 32], strides = [1, 1]} : vector<8x128xf32> to vector<8x32xf32>
    %353 = vector.extract_strided_slice %342 {offsets = [0, 64], sizes = [8, 32], strides = [1, 1]} : vector<8x128xf32> to vector<8x32xf32>
    %354 = math.tanh %353 : vector<8x32xf32>
    %355 = arith.mulf %351, %335 : vector<8x32xf32>
    %356 = arith.mulf %350, %354 : vector<8x32xf32>
    %357 = arith.addf %355, %356 : vector<8x32xf32>
    %358 = math.tanh %357 : vector<8x32xf32>
    %359 = arith.mulf %352, %358 : vector<8x32xf32>
    %c120_141 = arith.constant 120 : index
    %c0_142 = arith.constant 0 : index
    %360 = vector.load %arg10[%c120_141, %c0_142] : memref<128x32xf32, #tpu.memory_space<vmem>>, vector<8x32xf32>
    tpu.vector_store %arg10[%c120_141, %c0_142], %359 {strides = array<i32>} : memref<128x32xf32, #tpu.memory_space<vmem>>, vector<8x32xf32>,
    %c0_143 = arith.constant 0 : index
    %c480 = arith.constant 480 : index
    %361 = vector.load %arg7[%c0_143, %c480] : memref<8x512xf32, #tpu.memory_space<vmem>>, vector<8x32xf32>
    tpu.vector_store %arg7[%c0_143, %c480], %359 {strides = array<i32>} : memref<8x512xf32, #tpu.memory_space<vmem>>, vector<8x32xf32>,
    %c0_144 = arith.constant 0 : index
    %c0_145 = arith.constant 0 : index
    %362 = vector.load %arg10[%c0_144, %c0_145] : memref<128x32xf32, #tpu.memory_space<vmem>>, vector<128x32xf32>
    %c0_146 = arith.constant 0 : index
    %c0_147 = arith.constant 0 : index
    %363 = vector.load %arg4[%c0_146, %c0_147] : memref<32x128xf32, #tpu.memory_space<vmem>>, vector<32x128xf32>
    %cst_148 = arith.constant dense<0.000000e+00> : vector<128x128xf32>
    %364 = tpu.matmul %362, %363, %cst_148 {dimension_numbers = #tpu.dot_dimension_numbers<[1], [0], [0], [1], [0, 0, 1, 1], [], []>} : vector<128x32xf32>, vector<32x128xf32>, vector<128x128xf32> -> vector<128x128xf32>
    %c0_149 = arith.constant 0 : index
    %c0_150 = arith.constant 0 : index
    %365 = vector.load %arg6[%c0_149, %c0_150] : memref<1x128xf32, #tpu.memory_space<vmem>>, vector<1x128xf32>
    %366 = vector.broadcast %365 : vector<1x128xf32> to vector<128x128xf32>
    %367 = arith.addf %364, %366 : vector<128x128xf32>
    %c0_151 = arith.constant 0 : index
    %c0_152 = arith.constant 0 : index
    %368 = vector.load %arg11[%c0_151, %c0_152] : memref<128x128xf32, #tpu.memory_space<vmem>>, vector<128x128xf32>
    tpu.vector_store %arg11[%c0_151, %c0_152], %367 {strides = array<i32>} : memref<128x128xf32, #tpu.memory_space<vmem>>, vector<128x128xf32>,
    %c0_153 = arith.constant 0 : index
    %c0_154 = arith.constant 0 : index
    %369 = vector.load %arg5[%c0_153, %c0_154] : memref<16x128xf32, #tpu.memory_space<vmem>>, vector<16x128xf32>
    %cst_155 = arith.constant 0.000000e+00 : f32
    %370 = vector.broadcast %cst_155 : f32 to vector<8x16xf32>
    %cst_156 = arith.constant 0.000000e+00 : f32
    %371 = vector.broadcast %cst_156 : f32 to vector<8x16xf32>
    %c0_157 = arith.constant 0 : index
    %c0_158 = arith.constant 0 : index
    %372 = vector.load %arg11[%c0_157, %c0_158] : memref<128x128xf32, #tpu.memory_space<vmem>>, vector<8x128xf32>
    %cst_159 = arith.constant dense<0.000000e+00> : vector<8x128xf32>
    %373 = tpu.matmul %370, %369, %cst_159 {dimension_numbers = #tpu.dot_dimension_numbers<[1], [0], [0], [1], [0, 0, 1, 1], [], []>} : vector<8x16xf32>, vector<16x128xf32>, vector<8x128xf32> -> vector<8x128xf32>
    %374 = arith.addf %372, %373 : vector<8x128xf32>
    %cst_160 = arith.constant 5.000000e-01 : f32
    %375 = vector.broadcast %cst_160 : f32 to vector<8x128xf32>
    %376 = arith.mulf %375, %374 : vector<8x128xf32>
    %377 = math.tanh %376 : vector<8x128xf32>
    %cst_161 = arith.constant 1.000000e+00 : f32
    %378 = vector.broadcast %cst_161 : f32 to vector<8x128xf32>
    %379 = arith.addf %377, %378 : vector<8x128xf32>
    %cst_162 = arith.constant 5.000000e-01 : f32
    %380 = vector.broadcast %cst_162 : f32 to vector<8x128xf32>
    %381 = arith.mulf %380, %379 : vector<8x128xf32>
    %382 = vector.extract_strided_slice %381 {offsets = [0, 0], sizes = [8, 16], strides = [1, 1]} : vector<8x128xf32> to vector<8x16xf32>
    %383 = vector.extract_strided_slice %381 {offsets = [0, 16], sizes = [8, 16], strides = [1, 1]} : vector<8x128xf32> to vector<8x16xf32>
    %384 = vector.extract_strided_slice %381 {offsets = [0, 48], sizes = [8, 16], strides = [1, 1]} : vector<8x128xf32> to vector<8x16xf32>
    %385 = vector.extract_strided_slice %374 {offsets = [0, 32], sizes = [8, 16], strides = [1, 1]} : vector<8x128xf32> to vector<8x16xf32>
    %386 = math.tanh %385 : vector<8x16xf32>
    %387 = arith.mulf %383, %371 : vector<8x16xf32>
    %388 = arith.mulf %382, %386 : vector<8x16xf32>
    %389 = arith.addf %387, %388 : vector<8x16xf32>
    %390 = math.tanh %389 : vector<8x16xf32>
    %391 = arith.mulf %384, %390 : vector<8x16xf32>
    %c0_163 = arith.constant 0 : index
    %c0_164 = arith.constant 0 : index
    %392 = vector.load %arg8[%c0_163, %c0_164] : memref<8x256xf32, #tpu.memory_space<vmem>>, vector<8x16xf32>
    tpu.vector_store %arg8[%c0_163, %c0_164], %391 {strides = array<i32>} : memref<8x256xf32, #tpu.memory_space<vmem>>, vector<8x16xf32>,
    %c8_165 = arith.constant 8 : index
    %c0_166 = arith.constant 0 : index
    %393 = vector.load %arg11[%c8_165, %c0_166] : memref<128x128xf32, #tpu.memory_space<vmem>>, vector<8x128xf32>
    %cst_167 = arith.constant dense<0.000000e+00> : vector<8x128xf32>
    %394 = tpu.matmul %391, %369, %cst_167 {dimension_numbers = #tpu.dot_dimension_numbers<[1], [0], [0], [1], [0, 0, 1, 1], [], []>} : vector<8x16xf32>, vector<16x128xf32>, vector<8x128xf32> -> vector<8x128xf32>
    %395 = arith.addf %393, %394 : vector<8x128xf32>
    %cst_168 = arith.constant 5.000000e-01 : f32
    %396 = vector.broadcast %cst_168 : f32 to vector<8x128xf32>
    %397 = arith.mulf %396, %395 : vector<8x128xf32>
    %398 = math.tanh %397 : vector<8x128xf32>
    %cst_169 = arith.constant 1.000000e+00 : f32
    %399 = vector.broadcast %cst_169 : f32 to vector<8x128xf32>
    %400 = arith.addf %398, %399 : vector<8x128xf32>
    %cst_170 = arith.constant 5.000000e-01 : f32
    %401 = vector.broadcast %cst_170 : f32 to vector<8x128xf32>
    %402 = arith.mulf %401, %400 : vector<8x128xf32>
    %403 = vector.extract_strided_slice %402 {offsets = [0, 0], sizes = [8, 16], strides = [1, 1]} : vector<8x128xf32> to vector<8x16xf32>
    %404 = vector.extract_strided_slice %402 {offsets = [0, 16], sizes = [8, 16], strides = [1, 1]} : vector<8x128xf32> to vector<8x16xf32>
    %405 = vector.extract_strided_slice %402 {offsets = [0, 48], sizes = [8, 16], strides = [1, 1]} : vector<8x128xf32> to vector<8x16xf32>
    %406 = vector.extract_strided_slice %395 {offsets = [0, 32], sizes = [8, 16], strides = [1, 1]} : vector<8x128xf32> to vector<8x16xf32>
    %407 = math.tanh %406 : vector<8x16xf32>
    %408 = arith.mulf %404, %389 : vector<8x16xf32>
    %409 = arith.mulf %403, %407 : vector<8x16xf32>
    %410 = arith.addf %408, %409 : vector<8x16xf32>
    %411 = math.tanh %410 : vector<8x16xf32>
    %412 = arith.mulf %405, %411 : vector<8x16xf32>
    %c0_171 = arith.constant 0 : index
    %c16_172 = arith.constant 16 : index
    %413 = vector.load %arg8[%c0_171, %c16_172] : memref<8x256xf32, #tpu.memory_space<vmem>>, vector<8x16xf32>
    tpu.vector_store %arg8[%c0_171, %c16_172], %412 {strides = array<i32>} : memref<8x256xf32, #tpu.memory_space<vmem>>, vector<8x16xf32>,
    %c16_173 = arith.constant 16 : index
    %c0_174 = arith.constant 0 : index
    %414 = vector.load %arg11[%c16_173, %c0_174] : memref<128x128xf32, #tpu.memory_space<vmem>>, vector<8x128xf32>
    %cst_175 = arith.constant dense<0.000000e+00> : vector<8x128xf32>
    %415 = tpu.matmul %412, %369, %cst_175 {dimension_numbers = #tpu.dot_dimension_numbers<[1], [0], [0], [1], [0, 0, 1, 1], [], []>} : vector<8x16xf32>, vector<16x128xf32>, vector<8x128xf32> -> vector<8x128xf32>
    %416 = arith.addf %414, %415 : vector<8x128xf32>
    %cst_176 = arith.constant 5.000000e-01 : f32
    %417 = vector.broadcast %cst_176 : f32 to vector<8x128xf32>
    %418 = arith.mulf %417, %416 : vector<8x128xf32>
    %419 = math.tanh %418 : vector<8x128xf32>
    %cst_177 = arith.constant 1.000000e+00 : f32
    %420 = vector.broadcast %cst_177 : f32 to vector<8x128xf32>
    %421 = arith.addf %419, %420 : vector<8x128xf32>
    %cst_178 = arith.constant 5.000000e-01 : f32
    %422 = vector.broadcast %cst_178 : f32 to vector<8x128xf32>
    %423 = arith.mulf %422, %421 : vector<8x128xf32>
    %424 = vector.extract_strided_slice %423 {offsets = [0, 0], sizes = [8, 16], strides = [1, 1]} : vector<8x128xf32> to vector<8x16xf32>
    %425 = vector.extract_strided_slice %423 {offsets = [0, 16], sizes = [8, 16], strides = [1, 1]} : vector<8x128xf32> to vector<8x16xf32>
    %426 = vector.extract_strided_slice %423 {offsets = [0, 48], sizes = [8, 16], strides = [1, 1]} : vector<8x128xf32> to vector<8x16xf32>
    %427 = vector.extract_strided_slice %416 {offsets = [0, 32], sizes = [8, 16], strides = [1, 1]} : vector<8x128xf32> to vector<8x16xf32>
    %428 = math.tanh %427 : vector<8x16xf32>
    %429 = arith.mulf %425, %410 : vector<8x16xf32>
    %430 = arith.mulf %424, %428 : vector<8x16xf32>
    %431 = arith.addf %429, %430 : vector<8x16xf32>
    %432 = math.tanh %431 : vector<8x16xf32>
    %433 = arith.mulf %426, %432 : vector<8x16xf32>
    %c0_179 = arith.constant 0 : index
    %c32_180 = arith.constant 32 : index
    %434 = vector.load %arg8[%c0_179, %c32_180] : memref<8x256xf32, #tpu.memory_space<vmem>>, vector<8x16xf32>
    tpu.vector_store %arg8[%c0_179, %c32_180], %433 {strides = array<i32>} : memref<8x256xf32, #tpu.memory_space<vmem>>, vector<8x16xf32>,
    %c24_181 = arith.constant 24 : index
    %c0_182 = arith.constant 0 : index
    %435 = vector.load %arg11[%c24_181, %c0_182] : memref<128x128xf32, #tpu.memory_space<vmem>>, vector<8x128xf32>
    %cst_183 = arith.constant dense<0.000000e+00> : vector<8x128xf32>
    %436 = tpu.matmul %433, %369, %cst_183 {dimension_numbers = #tpu.dot_dimension_numbers<[1], [0], [0], [1], [0, 0, 1, 1], [], []>} : vector<8x16xf32>, vector<16x128xf32>, vector<8x128xf32> -> vector<8x128xf32>
    %437 = arith.addf %435, %436 : vector<8x128xf32>
    %cst_184 = arith.constant 5.000000e-01 : f32
    %438 = vector.broadcast %cst_184 : f32 to vector<8x128xf32>
    %439 = arith.mulf %438, %437 : vector<8x128xf32>
    %440 = math.tanh %439 : vector<8x128xf32>
    %cst_185 = arith.constant 1.000000e+00 : f32
    %441 = vector.broadcast %cst_185 : f32 to vector<8x128xf32>
    %442 = arith.addf %440, %441 : vector<8x128xf32>
    %cst_186 = arith.constant 5.000000e-01 : f32
    %443 = vector.broadcast %cst_186 : f32 to vector<8x128xf32>
    %444 = arith.mulf %443, %442 : vector<8x128xf32>
    %445 = vector.extract_strided_slice %444 {offsets = [0, 0], sizes = [8, 16], strides = [1, 1]} : vector<8x128xf32> to vector<8x16xf32>
    %446 = vector.extract_strided_slice %444 {offsets = [0, 16], sizes = [8, 16], strides = [1, 1]} : vector<8x128xf32> to vector<8x16xf32>
    %447 = vector.extract_strided_slice %444 {offsets = [0, 48], sizes = [8, 16], strides = [1, 1]} : vector<8x128xf32> to vector<8x16xf32>
    %448 = vector.extract_strided_slice %437 {offsets = [0, 32], sizes = [8, 16], strides = [1, 1]} : vector<8x128xf32> to vector<8x16xf32>
    %449 = math.tanh %448 : vector<8x16xf32>
    %450 = arith.mulf %446, %431 : vector<8x16xf32>
    %451 = arith.mulf %445, %449 : vector<8x16xf32>
    %452 = arith.addf %450, %451 : vector<8x16xf32>
    %453 = math.tanh %452 : vector<8x16xf32>
    %454 = arith.mulf %447, %453 : vector<8x16xf32>
    %c0_187 = arith.constant 0 : index
    %c48_188 = arith.constant 48 : index
    %455 = vector.load %arg8[%c0_187, %c48_188] : memref<8x256xf32, #tpu.memory_space<vmem>>, vector<8x16xf32>
    tpu.vector_store %arg8[%c0_187, %c48_188], %454 {strides = array<i32>} : memref<8x256xf32, #tpu.memory_space<vmem>>, vector<8x16xf32>,
    %c32_189 = arith.constant 32 : index
    %c0_190 = arith.constant 0 : index
    %456 = vector.load %arg11[%c32_189, %c0_190] : memref<128x128xf32, #tpu.memory_space<vmem>>, vector<8x128xf32>
    %cst_191 = arith.constant dense<0.000000e+00> : vector<8x128xf32>
    %457 = tpu.matmul %454, %369, %cst_191 {dimension_numbers = #tpu.dot_dimension_numbers<[1], [0], [0], [1], [0, 0, 1, 1], [], []>} : vector<8x16xf32>, vector<16x128xf32>, vector<8x128xf32> -> vector<8x128xf32>
    %458 = arith.addf %456, %457 : vector<8x128xf32>
    %cst_192 = arith.constant 5.000000e-01 : f32
    %459 = vector.broadcast %cst_192 : f32 to vector<8x128xf32>
    %460 = arith.mulf %459, %458 : vector<8x128xf32>
    %461 = math.tanh %460 : vector<8x128xf32>
    %cst_193 = arith.constant 1.000000e+00 : f32
    %462 = vector.broadcast %cst_193 : f32 to vector<8x128xf32>
    %463 = arith.addf %461, %462 : vector<8x128xf32>
    %cst_194 = arith.constant 5.000000e-01 : f32
    %464 = vector.broadcast %cst_194 : f32 to vector<8x128xf32>
    %465 = arith.mulf %464, %463 : vector<8x128xf32>
    %466 = vector.extract_strided_slice %465 {offsets = [0, 0], sizes = [8, 16], strides = [1, 1]} : vector<8x128xf32> to vector<8x16xf32>
    %467 = vector.extract_strided_slice %465 {offsets = [0, 16], sizes = [8, 16], strides = [1, 1]} : vector<8x128xf32> to vector<8x16xf32>
    %468 = vector.extract_strided_slice %465 {offsets = [0, 48], sizes = [8, 16], strides = [1, 1]} : vector<8x128xf32> to vector<8x16xf32>
    %469 = vector.extract_strided_slice %458 {offsets = [0, 32], sizes = [8, 16], strides = [1, 1]} : vector<8x128xf32> to vector<8x16xf32>
    %470 = math.tanh %469 : vector<8x16xf32>
    %471 = arith.mulf %467, %452 : vector<8x16xf32>
    %472 = arith.mulf %466, %470 : vector<8x16xf32>
    %473 = arith.addf %471, %472 : vector<8x16xf32>
    %474 = math.tanh %473 : vector<8x16xf32>
    %475 = arith.mulf %468, %474 : vector<8x16xf32>
    %c0_195 = arith.constant 0 : index
    %c64_196 = arith.constant 64 : index
    %476 = vector.load %arg8[%c0_195, %c64_196] : memref<8x256xf32, #tpu.memory_space<vmem>>, vector<8x16xf32>
    tpu.vector_store %arg8[%c0_195, %c64_196], %475 {strides = array<i32>} : memref<8x256xf32, #tpu.memory_space<vmem>>, vector<8x16xf32>,
    %c40_197 = arith.constant 40 : index
    %c0_198 = arith.constant 0 : index
    %477 = vector.load %arg11[%c40_197, %c0_198] : memref<128x128xf32, #tpu.memory_space<vmem>>, vector<8x128xf32>
    %cst_199 = arith.constant dense<0.000000e+00> : vector<8x128xf32>
    %478 = tpu.matmul %475, %369, %cst_199 {dimension_numbers = #tpu.dot_dimension_numbers<[1], [0], [0], [1], [0, 0, 1, 1], [], []>} : vector<8x16xf32>, vector<16x128xf32>, vector<8x128xf32> -> vector<8x128xf32>
    %479 = arith.addf %477, %478 : vector<8x128xf32>
    %cst_200 = arith.constant 5.000000e-01 : f32
    %480 = vector.broadcast %cst_200 : f32 to vector<8x128xf32>
    %481 = arith.mulf %480, %479 : vector<8x128xf32>
    %482 = math.tanh %481 : vector<8x128xf32>
    %cst_201 = arith.constant 1.000000e+00 : f32
    %483 = vector.broadcast %cst_201 : f32 to vector<8x128xf32>
    %484 = arith.addf %482, %483 : vector<8x128xf32>
    %cst_202 = arith.constant 5.000000e-01 : f32
    %485 = vector.broadcast %cst_202 : f32 to vector<8x128xf32>
    %486 = arith.mulf %485, %484 : vector<8x128xf32>
    %487 = vector.extract_strided_slice %486 {offsets = [0, 0], sizes = [8, 16], strides = [1, 1]} : vector<8x128xf32> to vector<8x16xf32>
    %488 = vector.extract_strided_slice %486 {offsets = [0, 16], sizes = [8, 16], strides = [1, 1]} : vector<8x128xf32> to vector<8x16xf32>
    %489 = vector.extract_strided_slice %486 {offsets = [0, 48], sizes = [8, 16], strides = [1, 1]} : vector<8x128xf32> to vector<8x16xf32>
    %490 = vector.extract_strided_slice %479 {offsets = [0, 32], sizes = [8, 16], strides = [1, 1]} : vector<8x128xf32> to vector<8x16xf32>
    %491 = math.tanh %490 : vector<8x16xf32>
    %492 = arith.mulf %488, %473 : vector<8x16xf32>
    %493 = arith.mulf %487, %491 : vector<8x16xf32>
    %494 = arith.addf %492, %493 : vector<8x16xf32>
    %495 = math.tanh %494 : vector<8x16xf32>
    %496 = arith.mulf %489, %495 : vector<8x16xf32>
    %c0_203 = arith.constant 0 : index
    %c80_204 = arith.constant 80 : index
    %497 = vector.load %arg8[%c0_203, %c80_204] : memref<8x256xf32, #tpu.memory_space<vmem>>, vector<8x16xf32>
    tpu.vector_store %arg8[%c0_203, %c80_204], %496 {strides = array<i32>} : memref<8x256xf32, #tpu.memory_space<vmem>>, vector<8x16xf32>,
    %c48_205 = arith.constant 48 : index
    %c0_206 = arith.constant 0 : index
    %498 = vector.load %arg11[%c48_205, %c0_206] : memref<128x128xf32, #tpu.memory_space<vmem>>, vector<8x128xf32>
    %cst_207 = arith.constant dense<0.000000e+00> : vector<8x128xf32>
    %499 = tpu.matmul %496, %369, %cst_207 {dimension_numbers = #tpu.dot_dimension_numbers<[1], [0], [0], [1], [0, 0, 1, 1], [], []>} : vector<8x16xf32>, vector<16x128xf32>, vector<8x128xf32> -> vector<8x128xf32>
    %500 = arith.addf %498, %499 : vector<8x128xf32>
    %cst_208 = arith.constant 5.000000e-01 : f32
    %501 = vector.broadcast %cst_208 : f32 to vector<8x128xf32>
    %502 = arith.mulf %501, %500 : vector<8x128xf32>
    %503 = math.tanh %502 : vector<8x128xf32>
    %cst_209 = arith.constant 1.000000e+00 : f32
    %504 = vector.broadcast %cst_209 : f32 to vector<8x128xf32>
    %505 = arith.addf %503, %504 : vector<8x128xf32>
    %cst_210 = arith.constant 5.000000e-01 : f32
    %506 = vector.broadcast %cst_210 : f32 to vector<8x128xf32>
    %507 = arith.mulf %506, %505 : vector<8x128xf32>
    %508 = vector.extract_strided_slice %507 {offsets = [0, 0], sizes = [8, 16], strides = [1, 1]} : vector<8x128xf32> to vector<8x16xf32>
    %509 = vector.extract_strided_slice %507 {offsets = [0, 16], sizes = [8, 16], strides = [1, 1]} : vector<8x128xf32> to vector<8x16xf32>
    %510 = vector.extract_strided_slice %507 {offsets = [0, 48], sizes = [8, 16], strides = [1, 1]} : vector<8x128xf32> to vector<8x16xf32>
    %511 = vector.extract_strided_slice %500 {offsets = [0, 32], sizes = [8, 16], strides = [1, 1]} : vector<8x128xf32> to vector<8x16xf32>
    %512 = math.tanh %511 : vector<8x16xf32>
    %513 = arith.mulf %509, %494 : vector<8x16xf32>
    %514 = arith.mulf %508, %512 : vector<8x16xf32>
    %515 = arith.addf %513, %514 : vector<8x16xf32>
    %516 = math.tanh %515 : vector<8x16xf32>
    %517 = arith.mulf %510, %516 : vector<8x16xf32>
    %c0_211 = arith.constant 0 : index
    %c96_212 = arith.constant 96 : index
    %518 = vector.load %arg8[%c0_211, %c96_212] : memref<8x256xf32, #tpu.memory_space<vmem>>, vector<8x16xf32>
    tpu.vector_store %arg8[%c0_211, %c96_212], %517 {strides = array<i32>} : memref<8x256xf32, #tpu.memory_space<vmem>>, vector<8x16xf32>,
    %c56_213 = arith.constant 56 : index
    %c0_214 = arith.constant 0 : index
    %519 = vector.load %arg11[%c56_213, %c0_214] : memref<128x128xf32, #tpu.memory_space<vmem>>, vector<8x128xf32>
    %cst_215 = arith.constant dense<0.000000e+00> : vector<8x128xf32>
    %520 = tpu.matmul %517, %369, %cst_215 {dimension_numbers = #tpu.dot_dimension_numbers<[1], [0], [0], [1], [0, 0, 1, 1], [], []>} : vector<8x16xf32>, vector<16x128xf32>, vector<8x128xf32> -> vector<8x128xf32>
    %521 = arith.addf %519, %520 : vector<8x128xf32>
    %cst_216 = arith.constant 5.000000e-01 : f32
    %522 = vector.broadcast %cst_216 : f32 to vector<8x128xf32>
    %523 = arith.mulf %522, %521 : vector<8x128xf32>
    %524 = math.tanh %523 : vector<8x128xf32>
    %cst_217 = arith.constant 1.000000e+00 : f32
    %525 = vector.broadcast %cst_217 : f32 to vector<8x128xf32>
    %526 = arith.addf %524, %525 : vector<8x128xf32>
    %cst_218 = arith.constant 5.000000e-01 : f32
    %527 = vector.broadcast %cst_218 : f32 to vector<8x128xf32>
    %528 = arith.mulf %527, %526 : vector<8x128xf32>
    %529 = vector.extract_strided_slice %528 {offsets = [0, 0], sizes = [8, 16], strides = [1, 1]} : vector<8x128xf32> to vector<8x16xf32>
    %530 = vector.extract_strided_slice %528 {offsets = [0, 16], sizes = [8, 16], strides = [1, 1]} : vector<8x128xf32> to vector<8x16xf32>
    %531 = vector.extract_strided_slice %528 {offsets = [0, 48], sizes = [8, 16], strides = [1, 1]} : vector<8x128xf32> to vector<8x16xf32>
    %532 = vector.extract_strided_slice %521 {offsets = [0, 32], sizes = [8, 16], strides = [1, 1]} : vector<8x128xf32> to vector<8x16xf32>
    %533 = math.tanh %532 : vector<8x16xf32>
    %534 = arith.mulf %530, %515 : vector<8x16xf32>
    %535 = arith.mulf %529, %533 : vector<8x16xf32>
    %536 = arith.addf %534, %535 : vector<8x16xf32>
    %537 = math.tanh %536 : vector<8x16xf32>
    %538 = arith.mulf %531, %537 : vector<8x16xf32>
    %c0_219 = arith.constant 0 : index
    %c112_220 = arith.constant 112 : index
    %539 = vector.load %arg8[%c0_219, %c112_220] : memref<8x256xf32, #tpu.memory_space<vmem>>, vector<8x16xf32>
    tpu.vector_store %arg8[%c0_219, %c112_220], %538 {strides = array<i32>} : memref<8x256xf32, #tpu.memory_space<vmem>>, vector<8x16xf32>,
    %c64_221 = arith.constant 64 : index
    %c0_222 = arith.constant 0 : index
    %540 = vector.load %arg11[%c64_221, %c0_222] : memref<128x128xf32, #tpu.memory_space<vmem>>, vector<8x128xf32>
    %cst_223 = arith.constant dense<0.000000e+00> : vector<8x128xf32>
    %541 = tpu.matmul %538, %369, %cst_223 {dimension_numbers = #tpu.dot_dimension_numbers<[1], [0], [0], [1], [0, 0, 1, 1], [], []>} : vector<8x16xf32>, vector<16x128xf32>, vector<8x128xf32> -> vector<8x128xf32>
    %542 = arith.addf %540, %541 : vector<8x128xf32>
    %cst_224 = arith.constant 5.000000e-01 : f32
    %543 = vector.broadcast %cst_224 : f32 to vector<8x128xf32>
    %544 = arith.mulf %543, %542 : vector<8x128xf32>
    %545 = math.tanh %544 : vector<8x128xf32>
    %cst_225 = arith.constant 1.000000e+00 : f32
    %546 = vector.broadcast %cst_225 : f32 to vector<8x128xf32>
    %547 = arith.addf %545, %546 : vector<8x128xf32>
    %cst_226 = arith.constant 5.000000e-01 : f32
    %548 = vector.broadcast %cst_226 : f32 to vector<8x128xf32>
    %549 = arith.mulf %548, %547 : vector<8x128xf32>
    %550 = vector.extract_strided_slice %549 {offsets = [0, 0], sizes = [8, 16], strides = [1, 1]} : vector<8x128xf32> to vector<8x16xf32>
    %551 = vector.extract_strided_slice %549 {offsets = [0, 16], sizes = [8, 16], strides = [1, 1]} : vector<8x128xf32> to vector<8x16xf32>
    %552 = vector.extract_strided_slice %549 {offsets = [0, 48], sizes = [8, 16], strides = [1, 1]} : vector<8x128xf32> to vector<8x16xf32>
    %553 = vector.extract_strided_slice %542 {offsets = [0, 32], sizes = [8, 16], strides = [1, 1]} : vector<8x128xf32> to vector<8x16xf32>
    %554 = math.tanh %553 : vector<8x16xf32>
    %555 = arith.mulf %551, %536 : vector<8x16xf32>
    %556 = arith.mulf %550, %554 : vector<8x16xf32>
    %557 = arith.addf %555, %556 : vector<8x16xf32>
    %558 = math.tanh %557 : vector<8x16xf32>
    %559 = arith.mulf %552, %558 : vector<8x16xf32>
    %c0_227 = arith.constant 0 : index
    %c128_228 = arith.constant 128 : index
    %560 = vector.load %arg8[%c0_227, %c128_228] : memref<8x256xf32, #tpu.memory_space<vmem>>, vector<8x16xf32>
    tpu.vector_store %arg8[%c0_227, %c128_228], %559 {strides = array<i32>} : memref<8x256xf32, #tpu.memory_space<vmem>>, vector<8x16xf32>,
    %c72_229 = arith.constant 72 : index
    %c0_230 = arith.constant 0 : index
    %561 = vector.load %arg11[%c72_229, %c0_230] : memref<128x128xf32, #tpu.memory_space<vmem>>, vector<8x128xf32>
    %cst_231 = arith.constant dense<0.000000e+00> : vector<8x128xf32>
    %562 = tpu.matmul %559, %369, %cst_231 {dimension_numbers = #tpu.dot_dimension_numbers<[1], [0], [0], [1], [0, 0, 1, 1], [], []>} : vector<8x16xf32>, vector<16x128xf32>, vector<8x128xf32> -> vector<8x128xf32>
    %563 = arith.addf %561, %562 : vector<8x128xf32>
    %cst_232 = arith.constant 5.000000e-01 : f32
    %564 = vector.broadcast %cst_232 : f32 to vector<8x128xf32>
    %565 = arith.mulf %564, %563 : vector<8x128xf32>
    %566 = math.tanh %565 : vector<8x128xf32>
    %cst_233 = arith.constant 1.000000e+00 : f32
    %567 = vector.broadcast %cst_233 : f32 to vector<8x128xf32>
    %568 = arith.addf %566, %567 : vector<8x128xf32>
    %cst_234 = arith.constant 5.000000e-01 : f32
    %569 = vector.broadcast %cst_234 : f32 to vector<8x128xf32>
    %570 = arith.mulf %569, %568 : vector<8x128xf32>
    %571 = vector.extract_strided_slice %570 {offsets = [0, 0], sizes = [8, 16], strides = [1, 1]} : vector<8x128xf32> to vector<8x16xf32>
    %572 = vector.extract_strided_slice %570 {offsets = [0, 16], sizes = [8, 16], strides = [1, 1]} : vector<8x128xf32> to vector<8x16xf32>
    %573 = vector.extract_strided_slice %570 {offsets = [0, 48], sizes = [8, 16], strides = [1, 1]} : vector<8x128xf32> to vector<8x16xf32>
    %574 = vector.extract_strided_slice %563 {offsets = [0, 32], sizes = [8, 16], strides = [1, 1]} : vector<8x128xf32> to vector<8x16xf32>
    %575 = math.tanh %574 : vector<8x16xf32>
    %576 = arith.mulf %572, %557 : vector<8x16xf32>
    %577 = arith.mulf %571, %575 : vector<8x16xf32>
    %578 = arith.addf %576, %577 : vector<8x16xf32>
    %579 = math.tanh %578 : vector<8x16xf32>
    %580 = arith.mulf %573, %579 : vector<8x16xf32>
    %c0_235 = arith.constant 0 : index
    %c144 = arith.constant 144 : index
    %581 = vector.load %arg8[%c0_235, %c144] : memref<8x256xf32, #tpu.memory_space<vmem>>, vector<8x16xf32>
    tpu.vector_store %arg8[%c0_235, %c144], %580 {strides = array<i32>} : memref<8x256xf32, #tpu.memory_space<vmem>>, vector<8x16xf32>,
    %c80_236 = arith.constant 80 : index
    %c0_237 = arith.constant 0 : index
    %582 = vector.load %arg11[%c80_236, %c0_237] : memref<128x128xf32, #tpu.memory_space<vmem>>, vector<8x128xf32>
    %cst_238 = arith.constant dense<0.000000e+00> : vector<8x128xf32>
    %583 = tpu.matmul %580, %369, %cst_238 {dimension_numbers = #tpu.dot_dimension_numbers<[1], [0], [0], [1], [0, 0, 1, 1], [], []>} : vector<8x16xf32>, vector<16x128xf32>, vector<8x128xf32> -> vector<8x128xf32>
    %584 = arith.addf %582, %583 : vector<8x128xf32>
    %cst_239 = arith.constant 5.000000e-01 : f32
    %585 = vector.broadcast %cst_239 : f32 to vector<8x128xf32>
    %586 = arith.mulf %585, %584 : vector<8x128xf32>
    %587 = math.tanh %586 : vector<8x128xf32>
    %cst_240 = arith.constant 1.000000e+00 : f32
    %588 = vector.broadcast %cst_240 : f32 to vector<8x128xf32>
    %589 = arith.addf %587, %588 : vector<8x128xf32>
    %cst_241 = arith.constant 5.000000e-01 : f32
    %590 = vector.broadcast %cst_241 : f32 to vector<8x128xf32>
    %591 = arith.mulf %590, %589 : vector<8x128xf32>
    %592 = vector.extract_strided_slice %591 {offsets = [0, 0], sizes = [8, 16], strides = [1, 1]} : vector<8x128xf32> to vector<8x16xf32>
    %593 = vector.extract_strided_slice %591 {offsets = [0, 16], sizes = [8, 16], strides = [1, 1]} : vector<8x128xf32> to vector<8x16xf32>
    %594 = vector.extract_strided_slice %591 {offsets = [0, 48], sizes = [8, 16], strides = [1, 1]} : vector<8x128xf32> to vector<8x16xf32>
    %595 = vector.extract_strided_slice %584 {offsets = [0, 32], sizes = [8, 16], strides = [1, 1]} : vector<8x128xf32> to vector<8x16xf32>
    %596 = math.tanh %595 : vector<8x16xf32>
    %597 = arith.mulf %593, %578 : vector<8x16xf32>
    %598 = arith.mulf %592, %596 : vector<8x16xf32>
    %599 = arith.addf %597, %598 : vector<8x16xf32>
    %600 = math.tanh %599 : vector<8x16xf32>
    %601 = arith.mulf %594, %600 : vector<8x16xf32>
    %c0_242 = arith.constant 0 : index
    %c160_243 = arith.constant 160 : index
    %602 = vector.load %arg8[%c0_242, %c160_243] : memref<8x256xf32, #tpu.memory_space<vmem>>, vector<8x16xf32>
    tpu.vector_store %arg8[%c0_242, %c160_243], %601 {strides = array<i32>} : memref<8x256xf32, #tpu.memory_space<vmem>>, vector<8x16xf32>,
    %c88_244 = arith.constant 88 : index
    %c0_245 = arith.constant 0 : index
    %603 = vector.load %arg11[%c88_244, %c0_245] : memref<128x128xf32, #tpu.memory_space<vmem>>, vector<8x128xf32>
    %cst_246 = arith.constant dense<0.000000e+00> : vector<8x128xf32>
    %604 = tpu.matmul %601, %369, %cst_246 {dimension_numbers = #tpu.dot_dimension_numbers<[1], [0], [0], [1], [0, 0, 1, 1], [], []>} : vector<8x16xf32>, vector<16x128xf32>, vector<8x128xf32> -> vector<8x128xf32>
    %605 = arith.addf %603, %604 : vector<8x128xf32>
    %cst_247 = arith.constant 5.000000e-01 : f32
    %606 = vector.broadcast %cst_247 : f32 to vector<8x128xf32>
    %607 = arith.mulf %606, %605 : vector<8x128xf32>
    %608 = math.tanh %607 : vector<8x128xf32>
    %cst_248 = arith.constant 1.000000e+00 : f32
    %609 = vector.broadcast %cst_248 : f32 to vector<8x128xf32>
    %610 = arith.addf %608, %609 : vector<8x128xf32>
    %cst_249 = arith.constant 5.000000e-01 : f32
    %611 = vector.broadcast %cst_249 : f32 to vector<8x128xf32>
    %612 = arith.mulf %611, %610 : vector<8x128xf32>
    %613 = vector.extract_strided_slice %612 {offsets = [0, 0], sizes = [8, 16], strides = [1, 1]} : vector<8x128xf32> to vector<8x16xf32>
    %614 = vector.extract_strided_slice %612 {offsets = [0, 16], sizes = [8, 16], strides = [1, 1]} : vector<8x128xf32> to vector<8x16xf32>
    %615 = vector.extract_strided_slice %612 {offsets = [0, 48], sizes = [8, 16], strides = [1, 1]} : vector<8x128xf32> to vector<8x16xf32>
    %616 = vector.extract_strided_slice %605 {offsets = [0, 32], sizes = [8, 16], strides = [1, 1]} : vector<8x128xf32> to vector<8x16xf32>
    %617 = math.tanh %616 : vector<8x16xf32>
    %618 = arith.mulf %614, %599 : vector<8x16xf32>
    %619 = arith.mulf %613, %617 : vector<8x16xf32>
    %620 = arith.addf %618, %619 : vector<8x16xf32>
    %621 = math.tanh %620 : vector<8x16xf32>
    %622 = arith.mulf %615, %621 : vector<8x16xf32>
    %c0_250 = arith.constant 0 : index
    %c176 = arith.constant 176 : index
    %623 = vector.load %arg8[%c0_250, %c176] : memref<8x256xf32, #tpu.memory_space<vmem>>, vector<8x16xf32>
    tpu.vector_store %arg8[%c0_250, %c176], %622 {strides = array<i32>} : memref<8x256xf32, #tpu.memory_space<vmem>>, vector<8x16xf32>,
    %c96_251 = arith.constant 96 : index
    %c0_252 = arith.constant 0 : index
    %624 = vector.load %arg11[%c96_251, %c0_252] : memref<128x128xf32, #tpu.memory_space<vmem>>, vector<8x128xf32>
    %cst_253 = arith.constant dense<0.000000e+00> : vector<8x128xf32>
    %625 = tpu.matmul %622, %369, %cst_253 {dimension_numbers = #tpu.dot_dimension_numbers<[1], [0], [0], [1], [0, 0, 1, 1], [], []>} : vector<8x16xf32>, vector<16x128xf32>, vector<8x128xf32> -> vector<8x128xf32>
    %626 = arith.addf %624, %625 : vector<8x128xf32>
    %cst_254 = arith.constant 5.000000e-01 : f32
    %627 = vector.broadcast %cst_254 : f32 to vector<8x128xf32>
    %628 = arith.mulf %627, %626 : vector<8x128xf32>
    %629 = math.tanh %628 : vector<8x128xf32>
    %cst_255 = arith.constant 1.000000e+00 : f32
    %630 = vector.broadcast %cst_255 : f32 to vector<8x128xf32>
    %631 = arith.addf %629, %630 : vector<8x128xf32>
    %cst_256 = arith.constant 5.000000e-01 : f32
    %632 = vector.broadcast %cst_256 : f32 to vector<8x128xf32>
    %633 = arith.mulf %632, %631 : vector<8x128xf32>
    %634 = vector.extract_strided_slice %633 {offsets = [0, 0], sizes = [8, 16], strides = [1, 1]} : vector<8x128xf32> to vector<8x16xf32>
    %635 = vector.extract_strided_slice %633 {offsets = [0, 16], sizes = [8, 16], strides = [1, 1]} : vector<8x128xf32> to vector<8x16xf32>
    %636 = vector.extract_strided_slice %633 {offsets = [0, 48], sizes = [8, 16], strides = [1, 1]} : vector<8x128xf32> to vector<8x16xf32>
    %637 = vector.extract_strided_slice %626 {offsets = [0, 32], sizes = [8, 16], strides = [1, 1]} : vector<8x128xf32> to vector<8x16xf32>
    %638 = math.tanh %637 : vector<8x16xf32>
    %639 = arith.mulf %635, %620 : vector<8x16xf32>
    %640 = arith.mulf %634, %638 : vector<8x16xf32>
    %641 = arith.addf %639, %640 : vector<8x16xf32>
    %642 = math.tanh %641 : vector<8x16xf32>
    %643 = arith.mulf %636, %642 : vector<8x16xf32>
    %c0_257 = arith.constant 0 : index
    %c192_258 = arith.constant 192 : index
    %644 = vector.load %arg8[%c0_257, %c192_258] : memref<8x256xf32, #tpu.memory_space<vmem>>, vector<8x16xf32>
    tpu.vector_store %arg8[%c0_257, %c192_258], %643 {strides = array<i32>} : memref<8x256xf32, #tpu.memory_space<vmem>>, vector<8x16xf32>,
    %c104_259 = arith.constant 104 : index
    %c0_260 = arith.constant 0 : index
    %645 = vector.load %arg11[%c104_259, %c0_260] : memref<128x128xf32, #tpu.memory_space<vmem>>, vector<8x128xf32>
    %cst_261 = arith.constant dense<0.000000e+00> : vector<8x128xf32>
    %646 = tpu.matmul %643, %369, %cst_261 {dimension_numbers = #tpu.dot_dimension_numbers<[1], [0], [0], [1], [0, 0, 1, 1], [], []>} : vector<8x16xf32>, vector<16x128xf32>, vector<8x128xf32> -> vector<8x128xf32>
    %647 = arith.addf %645, %646 : vector<8x128xf32>
    %cst_262 = arith.constant 5.000000e-01 : f32
    %648 = vector.broadcast %cst_262 : f32 to vector<8x128xf32>
    %649 = arith.mulf %648, %647 : vector<8x128xf32>
    %650 = math.tanh %649 : vector<8x128xf32>
    %cst_263 = arith.constant 1.000000e+00 : f32
    %651 = vector.broadcast %cst_263 : f32 to vector<8x128xf32>
    %652 = arith.addf %650, %651 : vector<8x128xf32>
    %cst_264 = arith.constant 5.000000e-01 : f32
    %653 = vector.broadcast %cst_264 : f32 to vector<8x128xf32>
    %654 = arith.mulf %653, %652 : vector<8x128xf32>
    %655 = vector.extract_strided_slice %654 {offsets = [0, 0], sizes = [8, 16], strides = [1, 1]} : vector<8x128xf32> to vector<8x16xf32>
    %656 = vector.extract_strided_slice %654 {offsets = [0, 16], sizes = [8, 16], strides = [1, 1]} : vector<8x128xf32> to vector<8x16xf32>
    %657 = vector.extract_strided_slice %654 {offsets = [0, 48], sizes = [8, 16], strides = [1, 1]} : vector<8x128xf32> to vector<8x16xf32>
    %658 = vector.extract_strided_slice %647 {offsets = [0, 32], sizes = [8, 16], strides = [1, 1]} : vector<8x128xf32> to vector<8x16xf32>
    %659 = math.tanh %658 : vector<8x16xf32>
    %660 = arith.mulf %656, %641 : vector<8x16xf32>
    %661 = arith.mulf %655, %659 : vector<8x16xf32>
    %662 = arith.addf %660, %661 : vector<8x16xf32>
    %663 = math.tanh %662 : vector<8x16xf32>
    %664 = arith.mulf %657, %663 : vector<8x16xf32>
    %c0_265 = arith.constant 0 : index
    %c208 = arith.constant 208 : index
    %665 = vector.load %arg8[%c0_265, %c208] : memref<8x256xf32, #tpu.memory_space<vmem>>, vector<8x16xf32>
    tpu.vector_store %arg8[%c0_265, %c208], %664 {strides = array<i32>} : memref<8x256xf32, #tpu.memory_space<vmem>>, vector<8x16xf32>,
    %c112_266 = arith.constant 112 : index
    %c0_267 = arith.constant 0 : index
    %666 = vector.load %arg11[%c112_266, %c0_267] : memref<128x128xf32, #tpu.memory_space<vmem>>, vector<8x128xf32>
    %cst_268 = arith.constant dense<0.000000e+00> : vector<8x128xf32>
    %667 = tpu.matmul %664, %369, %cst_268 {dimension_numbers = #tpu.dot_dimension_numbers<[1], [0], [0], [1], [0, 0, 1, 1], [], []>} : vector<8x16xf32>, vector<16x128xf32>, vector<8x128xf32> -> vector<8x128xf32>
    %668 = arith.addf %666, %667 : vector<8x128xf32>
    %cst_269 = arith.constant 5.000000e-01 : f32
    %669 = vector.broadcast %cst_269 : f32 to vector<8x128xf32>
    %670 = arith.mulf %669, %668 : vector<8x128xf32>
    %671 = math.tanh %670 : vector<8x128xf32>
    %cst_270 = arith.constant 1.000000e+00 : f32
    %672 = vector.broadcast %cst_270 : f32 to vector<8x128xf32>
    %673 = arith.addf %671, %672 : vector<8x128xf32>
    %cst_271 = arith.constant 5.000000e-01 : f32
    %674 = vector.broadcast %cst_271 : f32 to vector<8x128xf32>
    %675 = arith.mulf %674, %673 : vector<8x128xf32>
    %676 = vector.extract_strided_slice %675 {offsets = [0, 0], sizes = [8, 16], strides = [1, 1]} : vector<8x128xf32> to vector<8x16xf32>
    %677 = vector.extract_strided_slice %675 {offsets = [0, 16], sizes = [8, 16], strides = [1, 1]} : vector<8x128xf32> to vector<8x16xf32>
    %678 = vector.extract_strided_slice %675 {offsets = [0, 48], sizes = [8, 16], strides = [1, 1]} : vector<8x128xf32> to vector<8x16xf32>
    %679 = vector.extract_strided_slice %668 {offsets = [0, 32], sizes = [8, 16], strides = [1, 1]} : vector<8x128xf32> to vector<8x16xf32>
    %680 = math.tanh %679 : vector<8x16xf32>
    %681 = arith.mulf %677, %662 : vector<8x16xf32>
    %682 = arith.mulf %676, %680 : vector<8x16xf32>
    %683 = arith.addf %681, %682 : vector<8x16xf32>
    %684 = math.tanh %683 : vector<8x16xf32>
    %685 = arith.mulf %678, %684 : vector<8x16xf32>
    %c0_272 = arith.constant 0 : index
    %c224_273 = arith.constant 224 : index
    %686 = vector.load %arg8[%c0_272, %c224_273] : memref<8x256xf32, #tpu.memory_space<vmem>>, vector<8x16xf32>
    tpu.vector_store %arg8[%c0_272, %c224_273], %685 {strides = array<i32>} : memref<8x256xf32, #tpu.memory_space<vmem>>, vector<8x16xf32>,
    %c120_274 = arith.constant 120 : index
    %c0_275 = arith.constant 0 : index
    %687 = vector.load %arg11[%c120_274, %c0_275] : memref<128x128xf32, #tpu.memory_space<vmem>>, vector<8x128xf32>
    %cst_276 = arith.constant dense<0.000000e+00> : vector<8x128xf32>
    %688 = tpu.matmul %685, %369, %cst_276 {dimension_numbers = #tpu.dot_dimension_numbers<[1], [0], [0], [1], [0, 0, 1, 1], [], []>} : vector<8x16xf32>, vector<16x128xf32>, vector<8x128xf32> -> vector<8x128xf32>
    %689 = arith.addf %687, %688 : vector<8x128xf32>
    %cst_277 = arith.constant 5.000000e-01 : f32
    %690 = vector.broadcast %cst_277 : f32 to vector<8x128xf32>
    %691 = arith.mulf %690, %689 : vector<8x128xf32>
    %692 = math.tanh %691 : vector<8x128xf32>
    %cst_278 = arith.constant 1.000000e+00 : f32
    %693 = vector.broadcast %cst_278 : f32 to vector<8x128xf32>
    %694 = arith.addf %692, %693 : vector<8x128xf32>
    %cst_279 = arith.constant 5.000000e-01 : f32
    %695 = vector.broadcast %cst_279 : f32 to vector<8x128xf32>
    %696 = arith.mulf %695, %694 : vector<8x128xf32>
    %697 = vector.extract_strided_slice %696 {offsets = [0, 0], sizes = [8, 16], strides = [1, 1]} : vector<8x128xf32> to vector<8x16xf32>
    %698 = vector.extract_strided_slice %696 {offsets = [0, 16], sizes = [8, 16], strides = [1, 1]} : vector<8x128xf32> to vector<8x16xf32>
    %699 = vector.extract_strided_slice %696 {offsets = [0, 48], sizes = [8, 16], strides = [1, 1]} : vector<8x128xf32> to vector<8x16xf32>
    %700 = vector.extract_strided_slice %689 {offsets = [0, 32], sizes = [8, 16], strides = [1, 1]} : vector<8x128xf32> to vector<8x16xf32>
    %701 = math.tanh %700 : vector<8x16xf32>
    %702 = arith.mulf %698, %683 : vector<8x16xf32>
    %703 = arith.mulf %697, %701 : vector<8x16xf32>
    %704 = arith.addf %702, %703 : vector<8x16xf32>
    %705 = math.tanh %704 : vector<8x16xf32>
    %706 = arith.mulf %699, %705 : vector<8x16xf32>
    %c0_280 = arith.constant 0 : index
    %c240 = arith.constant 240 : index
    %707 = vector.load %arg8[%c0_280, %c240] : memref<8x256xf32, #tpu.memory_space<vmem>>, vector<8x16xf32>
    tpu.vector_store %arg8[%c0_280, %c240], %706 {strides = array<i32>} : memref<8x256xf32, #tpu.memory_space<vmem>>, vector<8x16xf32>,
    return
  }
}

</mosaic_0001>

<bundles_post_ra>
// kernel: tpu_custom_call.1
= control target key start
LH: loop header
LB: loop body
LE: loop exit
PB: predicated region body
PF: predicated region fallthrough
CT: control target
= control target key end

     0   :  { %14 = vsyncpa [#allocation6], 0  ;;  %vm55_vm0 = vcmask 130048   ;;  %v4826_v3 = vmov 0.0|0.0   ;;  %vm4827_vm1 = vmmov 0   ;;  %v4828_v10 = vmov 0.0   ;;  %s5655_s0 = inlined_call_operand.vmem [shape: f32[128,16], index: 0, kind: input, shape index: {}]   ;;  %s5656_s1 = inlined_call_operand.vmem [shape: f32[16,128], index: 1, kind: input, shape index: {}]   ;;  %s5657_s2 = inlined_call_operand.vmem [shape: f32[32,128], index: 2, kind: input, shape index: {}]   ;;  %s5658_s3 = inlined_call_operand.vmem [shape: f32[1,128], index: 3, kind: input, shape index: {}]   ;;  %s5659_s4 = inlined_call_operand.vmem [shape: f32[32,128], index: 4, kind: input, shape index: {}]   ;;  %s5660_s5 = inlined_call_operand.vmem [shape: f32[16,128], index: 5, kind: input, shape index: {}]   ;;  %s5661_s6 = inlined_call_operand.vmem [shape: f32[1,128], index: 6, kind: input, shape index: {}]   ;;  %s5662_s7 = inlined_call_operand.hbm [shape: f32[8,512], index: 7, kind: output, shape index: {0}]   ;;  %s5663_s8 = inlined_call_operand.hbm [shape: f32[8,256], index: 8, kind: output, shape index: {1}]  }
   0x1   :  { %v46_v0 = vld [vmem:[%s5656_s1] sm:$0xff]  ;;  %v47_v1 = vld [vmem:[%s5656_s1 + $0x8] sm:$0xff]  ;;  %4421 = vmatprep.subr.bf16.mxu1 %v4826_v3  ;;  %v267_v8 = vld [vmem:[%s5657_s2 + $0x10] sm:$0xff]  ;;  %4105 = vmatprep.mubr.msk.f32.mxu1 %vm4827_vm1, %v4828_v10 }
   0x2   :  { %v265_v2 = vld [vmem:[%s5657_s2] sm:$0xff]  ;;  %v4417_v4 = vpack.c.bf16 %v47_v1, %v46_v0  ;;  %v266_v5 = vld [vmem:[%s5657_s2 + $0x8] sm:$0xff]  ;;  %v268_v9 = vld [vmem:[%s5657_s2 + $0x18] sm:$0xff] }
   0x3   :  { %v30_v6 = vld [vmem:[%s5655_s0] sm:$0xff]  ;;  %v4899_v7 = vpack.c.bf16 %v266_v5, %v265_v2 }
   0x4   :  { %4073 = vmatprep.mubr.msk.f32.mxu0 %vm55_vm0, %v30_v6 }
   0x5   :  { %15 = vsyncpa [#allocation8], 0  ;;  %4418 = vmatprep.subr.bf16.mxu0 %v4417_v4  ;;  %4423 = vmatpush3.bf16.msra.mxu1 %v4899_v7  ;;  %v31_v11 = vld [vmem:[%s5655_s0 + $0x8] sm:$0xff]  ;;  %v4914_v12 = vpack.c.bf16 %v268_v9, %v267_v8  ;;  %v4935_v13 = vld [vmem:[%s5658_s3] ss:$0 sm:$0xff]  ;;  %s4829_s21 = smov 64  }
   0x6   :  { %4420 = vmatpush3.bf16.msra.mxu0 %v4417_v4  ;;  %4424 = vmatprep.subr.bf16.mxu1 %v4826_v3  ;;  %s4830_s22 = smov 32   ;;  %vm270_vm2 = vcmask 261120   ;;  %v32_v48 = vld [vmem:[%s5655_s0 + $0x10] sm:$0xff]  ;;  %v33_v49 = vld [vmem:[%s5655_s0 + $0x18] sm:$0xff]  ;;  %s4831_s18 = smov 96   ;;  %vm2369_vm3 = vcmask 261248  }
   0x7   :  { %4445 = vmatprep.subr.bf16.mxu0 %v4826_v3  ;;  %s4833_s19 = smov 80   ;;  %s4834_s2 = smov 112   ;;  %vm2473_vm4 = vcmask 392448   ;;  %vm2573_vm5 = vcmask 523648   ;;  %vm2678_vm6 = vcmask 654848   ;;  %vm477_vm7 = vcmask 523520  }
   0x8   :  { %s4835_s20 = smov 48   ;;  %vm2782_vm8 = vcmask 786048   ;;  %vm583_vm9 = vcmask 785920   ;;  %vm686_vm10 = vcmask 1048320   ;;  %vm2886_vm11 = vcmask 917248  }
   0x9   :  { %4074 = vmatmul.mubr.msk.f32.vlgmr.msra.gmra.mrb[0].mxu0 %vm55_vm0, %v31_v11  ;;  %4426 = vmatpush3.bf16.msra.mxu1 %v4914_v12  ;;  %vm2990_vm12 = vcmask 1048448  }
   0xa   :  { %4447 = vmatpush3.bf16.msra.mxu0 %v4899_v7  ;;  %4427 = vmatprep.subr.bf16.mxu1 %v4826_v3 }
   0xb   :  { %4448 = vmatprep.subr.bf16.mxu0 %v4826_v3  ;;  %4076 = vmatprep.mubr.msk.f32.mxu0 %vm55_vm0, %v32_v48 }
   0xc   :  { %4106 = vmatmul.mubr.f32.vlgmr.msra.gmra.mrb[0].mxu1 %v4828_v10 }
   0xd   :  { %4429 = vmatpush3.bf16.msra.mxu1 %v4899_v7  ;;  %4116 = vmatprep.mubr.msk.f32.mxu1 %vm4827_vm1, %v4828_v10 }
   0xe   :  { %4430 = vmatprep.subr.bf16.mxu1 %v4826_v3  ;;  %4450 = vmatpush3.bf16.msra.mxu0 %v4914_v12 }
   0xf   :  { %4457 = vmatprep.subr.bf16.mxu0 %v4826_v3  ;;  %4077 = vmatmul.mubr.msk.f32.gmra.mrb[2].mxu0 %vm55_vm0, %v33_v49 }
  0x11   :  { %4432 = vmatpush3.bf16.msra.mxu1 %v4914_v12 }
  0x12   :  { %4433 = vmatprep.subr.bf16.mxu1 %v4826_v3 }
  0xdc   :  { %v4075_v14 = vpop.f32.mrb[0].mxu0 }
  0xdd   :  { %v170_v15 = vpop.f32.mrb[1].mxu0  ;;  %v176_v34 = vadd.f32 %v4075_v14, %v4935_v13 }
  0xde   :  { %v171_v16 = vadd.f32 %v4935_v13, %v170_v15 }
  0xdf   :  { %v340_v17 = vpop.f32.mrb[0].mxu1 }
  0xe0   :  { %v344_v18 = vadd.f32 %v340_v17, %v171_v16  ;;  %v4107_v19 = vpop.f32.mrb[1].mxu1 }
  0xe2   :  { %4585 = vtanh.f32 %v344_v18  ;;  %v345_v21 = vmul.f32 0.5, %v344_v18  ;;  %v4078_v53 = vpop.f32.mrb[2].mxu0 }
  0xe3   :  { %v180_v54 = vpop.f32.mrb[3].mxu0  ;;  %v186_v15 = vadd.f32 %v4078_v53, %v4935_v13 }
  0xe4   :  { %4587 = vtanh.f32 %v345_v21  ;;  %v181_v56 = vadd.f32 %v4935_v13, %v180_v54 }
  0xec   :  { %v4586_v20 = vpop.eup %4585 }
  0xed   :  { %352 = vrot.lane.b32.xlu0 %v4586_v20, %s4829_s21 }
  0xee   :  { %v4588_v22 = vpop.eup %4587 }
  0xef   :  { %v347_v23 = vadd.f32 1.0, %v4588_v22 }
  0xf1   :  { %v348_v24 = vmul.f32 0.5, %v347_v23 }
  0xf3   :  { %v350_v27 = vmul.f32 0.0, %v348_v24 }
 0x15f   :  { %v353_v25 = vpop.permute.xlu0 %352 }
 0x160   :  { %v355_v26 = vmul.f32 %v353_v25, %v348_v24 }
 0x162   :  { %357 = vrot.lane.b32.xlu0 %v355_v26, %s4830_s22 }
 0x1d4   :  { %v358_v28 = vpop.permute.xlu0 %357 }
 0x1d5   :  { %v360_v29 = vadd.f32 %v358_v28, %v350_v27 }
 0x1d7   :  { %4589 = vtanh.f32 %v360_v29 }
 0x1e1   :  { %v4590_v30 = vpop.eup %4589 }
 0x1e2   :  { %363 = vrot.lane.b32.xlu1 %v4590_v30, %s4829_s21  ;;  %v35_v30 = vld [vmem:[%s5655_s0 + $0x28] sm:$0xff] }
 0x254   :  { %v364_v31 = vpop.permute.xlu1 %363 }
 0x255   :  { %v366_v32 = vmul.f32 %v364_v31, %v348_v24  ;;  %v36_v31 = vld [vmem:[%s5655_s0 + $0x30] sm:$0xff] }
 0x257   :  { %368 = vrot.lane.b32.xlu1 %v366_v32, %s4830_s22  ;;  %v37_v32 = vld [vmem:[%s5655_s0 + $0x38] sm:$0xff] }
 0x2c9   :  { %v369_v33 = vpop.permute.xlu1 %368 }
 0x2ca   :  { %371 = vst.msk [vmem:[#allocation3] sm:$0xff] %vm270_vm2, %v369_v33  ;;  %372 = vst.msk [vmem:[#allocation5] sm:$0xff] %vm270_vm2, %v369_v33  ;;  %4117 = vmatmul.mubr.msk.f32.vlgmr.msra.gmra.mrb[2].mxu1 %vm270_vm2, %v369_v33  ;;  %v38_v33 = vld [vmem:[%s5655_s0 + $0x40] sm:$0xff] }
 0x2cb   :  { %4435 = vmatpush3.bf16.msra.mxu1 %v4899_v7  ;;  %4127 = vmatprep.mubr.msk.f32.mxu1 %vm4827_vm1, %v4828_v10 }
 0x2cc   :  { %4436 = vmatprep.subr.bf16.mxu1 %v4826_v3 }
 0x2cf   :  { %4438 = vmatpush3.bf16.msra.mxu1 %v4914_v12 }
 0x2d0   :  { %4439 = vmatprep.subr.bf16.mxu1 %v4826_v3 }
 0x39d   :  { %v442_v35 = vpop.f32.mrb[2].mxu1 }
 0x39e   :  { %v446_v36 = vadd.f32 %v442_v35, %v176_v34  ;;  %v4118_v37 = vpop.f32.mrb[3].mxu1  ;;  %v39_v34 = vld [vmem:[%s5655_s0 + $0x48] sm:$0xff]  ;;  %v40_v35 = vld [vmem:[%s5655_s0 + $0x50] sm:$0xff] }
 0x39f   :  { %v41_v37 = vld [vmem:[%s5655_s0 + $0x58] sm:$0xff] }
 0x3a0   :  { %4591 = vtanh.f32 %v446_v36  ;;  %v447_v39 = vmul.f32 0.5, %v446_v36 }
 0x3a2   :  { %4593 = vtanh.f32 %v447_v39  ;;  %v43_v39 = vld [vmem:[%s5655_s0 + $0x68] sm:$0xff] }
 0x3aa   :  { %v4592_v38 = vpop.eup %4591 }
 0x3ab   :  { %454 = vrot.lane.b32.xlu0 %v4592_v38, %s4829_s21  ;;  %v42_v38 = vld [vmem:[%s5655_s0 + $0x60] sm:$0xff] }
 0x3ac   :  { %v4594_v40 = vpop.eup %4593 }
 0x3ad   :  { %v449_v41 = vadd.f32 1.0, %v4594_v40  ;;  %v44_v40 = vld [vmem:[%s5655_s0 + $0x70] sm:$0xff] }
 0x3af   :  { %v450_v42 = vmul.f32 0.5, %v449_v41  ;;  %v45_v41 = vld [vmem:[%s5655_s0 + $0x78] sm:$0xff] }
 0x3b1   :  { %v452_v45 = vmul.f32 %v450_v42, %v360_v29  ;;  %v34_v29 = vld [vmem:[%s5655_s0 + $0x20] sm:$0xff] }
 0x3b2   :  { %4079 = vmatprep.mubr.msk.f32.mxu0 %vm55_vm0, %v34_v29 }
 0x3b3   :  { %4080 = vmatmul.mubr.msk.f32.gmra.mrb[4].mxu0 %vm55_vm0, %v35_v30 }
 0x3b4   :  { %4082 = vmatprep.mubr.msk.f32.mxu0 %vm55_vm0, %v36_v31 }
 0x3b7   :  { %4083 = vmatmul.mubr.msk.f32.gmra.mrb[6].mxu0 %vm55_vm0, %v37_v32 }
 0x3b8   :  { %4085 = vmatprep.mubr.msk.f32.mxu0 %vm55_vm0, %v38_v33 }
 0x3bb   :  { %4086 = vmatmul.mubr.msk.f32.gmra.mrb[8].mxu0 %vm55_vm0, %v39_v34 }
 0x3bc   :  { %4088 = vmatprep.mubr.msk.f32.mxu0 %vm55_vm0, %v40_v35 }
 0x3bf   :  { %4089 = vmatmul.mubr.msk.f32.gmra.mrb[10].mxu0 %vm55_vm0, %v41_v37 }
 0x3c0   :  { %4091 = vmatprep.mubr.msk.f32.mxu0 %vm55_vm0, %v42_v38 }
 0x3c3   :  { %4092 = vmatmul.mubr.msk.f32.gmra.mrb[12].mxu0 %vm55_vm0, %v43_v39 }
 0x3c4   :  { %4094 = vmatprep.mubr.msk.f32.mxu0 %vm55_vm0, %v44_v40 }
 0x3c7   :  { %4095 = vmatmul.mubr.msk.f32.gmra.mrb[14].mxu0 %vm55_vm0, %v45_v41 }
 0x3c8   :  { %4149 = vmatprep.mubr.msk.f32.mxu0 %vm4827_vm1, %v4828_v10 }
 0x41d   :  { %v455_v43 = vpop.permute.xlu0 %454 }
 0x41e   :  { %v457_v44 = vmul.f32 %v455_v43, %v450_v42 }
 0x420   :  { %459 = vrot.lane.b32.xlu1 %v457_v44, %s4830_s22 }
 0x486   :  { %v4081_v44 = vpop.f32.mrb[4].mxu0 }
 0x492   :  { %v460_v46 = vpop.permute.xlu1 %459 }
 0x493   :  { %v462_v47 = vadd.f32 %v460_v46, %v452_v45  ;;  %v190_v45 = vpop.f32.mrb[5].mxu0 }
 0x494   :  { %v5052_v46 = vpop.f32.mrb[6].mxu0 }
 0x495   :  { %4595 = vtanh.f32 %v462_v47 }
 0x49f   :  { %v4596_v50 = vpop.eup %4595 }
 0x4a0   :  { %465 = vrot.lane.b32.xlu0 %v4596_v50, %s4829_s21 }
 0x512   :  { %v466_v51 = vpop.permute.xlu0 %465 }
 0x513   :  { %v4963_v52 = vmul.f32 %v466_v51, %v450_v42 }
 0x515   :  { %470 = vrot.lane.b32.xlu1 %v4963_v52, %s4830_s22 }
 0x587   :  { %v471_v55 = vpop.permute.xlu1 %470 }
 0x588   :  { %473 = vst.msk [vmem:[#allocation3 + $0x8] sm:$0xff] %vm270_vm2, %v471_v55  ;;  %4128 = vmatmul.mubr.msk.f32.vlgmr.msra.gmra.mrb[4].mxu1 %vm270_vm2, %v471_v55 }
 0x589   :  { %4441 = vmatpush3.bf16.msra.mxu1 %v4899_v7  ;;  %4138 = vmatprep.mubr.msk.f32.mxu1 %vm4827_vm1, %v4828_v10 }
 0x58a   :  { %4442 = vmatprep.subr.bf16.mxu1 %v4826_v3 }
 0x58d   :  { %4444 = vmatpush3.bf16.msra.mxu1 %v4914_v12 }
 0x58e   :  { %4451 = vmatprep.subr.bf16.mxu1 %v4826_v3 }
 0x65b   :  { %v548_v57 = vpop.f32.mrb[4].mxu1 }
 0x65c   :  { %v552_v58 = vadd.f32 %v548_v57, %v181_v56  ;;  %v4129_v59 = vpop.f32.mrb[5].mxu1 }
 0x65e   :  { %4597 = vtanh.f32 %v552_v58  ;;  %v553_v61 = vmul.f32 0.5, %v552_v58  ;;  %v191_v58 = vadd.f32 %v4935_v13, %v190_v45 }
 0x660   :  { %4599 = vtanh.f32 %v553_v61 }
 0x668   :  { %v4598_v60 = vpop.eup %4597 }
 0x669   :  { %560 = vrot.lane.b32.xlu0 %v4598_v60, %s4829_s21 }
 0x66a   :  { %v4600_v62 = vpop.eup %4599 }
 0x66b   :  { %v555_v63 = vadd.f32 1.0, %v4600_v62 }
 0x66d   :  { %v556_v0 = vmul.f32 0.5, %v555_v63 }
 0x66f   :  { %v558_v4 = vmul.f32 %v556_v0, %v462_v47  ;;  %v5054_v47 = vpop.f32.mrb[7].mxu0 }
 0x670   :  { %v5056_v48 = vpop.f32.mrb[8].mxu0 }
 0x671   :  { %v5058_v49 = vpop.f32.mrb[9].mxu0 }
 0x672   :  { %v5060_v50 = vpop.f32.mrb[10].mxu0 }
 0x673   :  { %v5062_v51 = vpop.f32.mrb[11].mxu0 }
 0x674   :  { %v5064_v53 = vpop.f32.mrb[12].mxu0 }
 0x675   :  { %v5066_v54 = vpop.f32.mrb[13].mxu0 }
 0x676   :  { %v5068_v55 = vpop.f32.mrb[14].mxu0 }
 0x677   :  { %v5070_v56 = vpop.f32.mrb[15].mxu0 }
 0x6db   :  { %v561_v1 = vpop.permute.xlu0 %560 }
 0x6dc   :  { %v563_v2 = vmul.f32 %v561_v1, %v556_v0 }
 0x6de   :  { %565 = vrot.lane.b32.xlu1 %v563_v2, %s4830_s22 }
 0x750   :  { %v566_v5 = vpop.permute.xlu1 %565 }
 0x751   :  { %v568_v6 = vadd.f32 %v566_v5, %v558_v4 }
 0x753   :  { %4601 = vtanh.f32 %v568_v6 }
 0x75d   :  { %v4602_v8 = vpop.eup %4601 }
 0x75e   :  { %571 = vrot.lane.b32.xlu0 %v4602_v8, %s4829_s21 }
 0x7d0   :  { %v572_v9 = vpop.permute.xlu0 %571 }
 0x7d1   :  { %v4979_v11 = vmul.f32 %v572_v9, %v556_v0 }
 0x7d3   :  { %576 = vrot.lane.b32.xlu1 %v4979_v11, %s4830_s22 }
 0x845   :  { %v577_v14 = vpop.permute.xlu1 %576 }
 0x846   :  { %579 = vst.msk [vmem:[#allocation3 + $0x10] sm:$0xff] %vm270_vm2, %v577_v14  ;;  %4139 = vmatmul.mubr.msk.f32.vlgmr.msra.gmra.mrb[6].mxu1 %vm270_vm2, %v577_v14 }
 0x847   :  { %4453 = vmatpush3.bf16.msra.mxu1 %v4899_v7  ;;  %4160 = vmatprep.mubr.msk.f32.mxu1 %vm4827_vm1, %v4828_v10 }
 0x848   :  { %4454 = vmatprep.subr.bf16.mxu1 %v4826_v3 }
 0x84b   :  { %4456 = vmatpush3.bf16.msra.mxu1 %v4914_v12 }
 0x84c   :  { %4463 = vmatprep.subr.bf16.mxu1 %v4826_v3 }
 0x919   :  { %v654_v16 = vpop.f32.mrb[6].mxu1 }
 0x91a   :  { %v658_v17 = vadd.f32 %v654_v16, %v186_v15  ;;  %v4140_v18 = vpop.f32.mrb[7].mxu1 }
 0x91b   :  { %v196_v18 = vadd.f32 %v4081_v44, %v4935_v13 }
 0x91c   :  { %4603 = vtanh.f32 %v658_v17  ;;  %v659_v20 = vmul.f32 0.5, %v658_v17 }
 0x91e   :  { %4605 = vtanh.f32 %v659_v20 }
 0x926   :  { %v4604_v19 = vpop.eup %4603 }
 0x927   :  { %666 = vrot.lane.b32.xlu0 %v4604_v19, %s4829_s21 }
 0x928   :  { %v4606_v21 = vpop.eup %4605 }
 0x929   :  { %v661_v22 = vadd.f32 1.0, %v4606_v21 }
 0x92b   :  { %v662_v23 = vmul.f32 0.5, %v661_v22 }
 0x92d   :  { %v664_v26 = vmul.f32 %v662_v23, %v568_v6 }
 0x999   :  { %v667_v24 = vpop.permute.xlu0 %666 }
 0x99a   :  { %v669_v25 = vmul.f32 %v667_v24, %v662_v23 }
 0x99c   :  { %671 = vrot.lane.b32.xlu1 %v669_v25, %s4830_s22 }
 0xa0e   :  { %v672_v27 = vpop.permute.xlu1 %671 }
 0xa0f   :  { %v4994_v28 = vadd.f32 %v672_v27, %v664_v26 }
 0xa11   :  { %4607 = vtanh.f32 %v4994_v28 }
 0xa1b   :  { %v4608_v36 = vpop.eup %4607 }
 0xa1c   :  { %677 = vrot.lane.b32.xlu0 %v4608_v36, %s4829_s21  ;;  %v201_v36 = vadd.f32 %v4935_v13, %v5054_v47 }
 0xa8e   :  { %v678_v42 = vpop.permute.xlu0 %677 }
 0xa8f   :  { %v5048_v43 = vmul.f32 %v678_v42, %v662_v23 }
 0xa91   :  { %682 = vrot.lane.b32.xlu1 %v5048_v43, %s4830_s22 }
 0xb03   :  { %v683_v57 = vpop.permute.xlu1 %682 }
 0xb04   :  { %685 = vst.msk [vmem:[#allocation3 + $0x18] sm:$0xff] %vm270_vm2, %v683_v57  ;;  %4150 = vmatmul.mubr.msk.f32.vlgmr.msra.gmra.mrb[16].mxu0 %vm270_vm2, %v683_v57 }
 0xb05   :  { %4459 = vmatpush3.bf16.msra.mxu0 %v4899_v7  ;;  %4171 = vmatprep.mubr.msk.f32.mxu0 %vm4827_vm1, %v4828_v10 }
 0xb06   :  { %4460 = vmatprep.subr.bf16.mxu0 %v4826_v3 }
 0xb09   :  { %4462 = vmatpush3.bf16.msra.mxu0 %v4914_v12 }
 0xb0a   :  { %4469 = vmatprep.subr.bf16.mxu0 %v4826_v3 }
 0xbd7   :  { %v757_v59 = vpop.f32.mrb[16].mxu0 }
 0xbd8   :  { %v761_v60 = vadd.f32 %v757_v59, %v191_v58  ;;  %v4151_v61 = vpop.f32.mrb[17].mxu0 }
 0xbda   :  { %4609 = vtanh.f32 %v761_v60  ;;  %v762_v63 = vmul.f32 0.5, %v761_v60 }
 0xbdc   :  { %4611 = vtanh.f32 %v762_v63 }
 0xbe4   :  { %v4610_v62 = vpop.eup %4609 }
 0xbe5   :  { %769 = vrot.lane.b32.xlu0 %v4610_v62, %s4829_s21 }
 0xbe6   :  { %v4612_v0 = vpop.eup %4611 }
 0xbe7   :  { %v764_v1 = vadd.f32 1.0, %v4612_v0 }
 0xbe9   :  { %v765_v2 = vmul.f32 0.5, %v764_v1  ;;  %v206_v1 = vadd.f32 %v5052_v46, %v4935_v13 }
 0xbeb   :  { %v767_v6 = vmul.f32 %v765_v2, %v4994_v28 }
 0xc57   :  { %v770_v4 = vpop.permute.xlu0 %769 }
 0xc58   :  { %v772_v5 = vmul.f32 %v770_v4, %v765_v2 }
 0xc5a   :  { %774 = vrot.lane.b32.xlu1 %v772_v5, %s4830_s22 }
 0xccc   :  { %v775_v8 = vpop.permute.xlu1 %774 }
 0xccd   :  { %v777_v9 = vadd.f32 %v775_v8, %v767_v6 }
 0xccf   :  { %4613 = vtanh.f32 %v777_v9 }
 0xcd9   :  { %v4614_v14 = vpop.eup %4613 }
 0xcda   :  { %780 = vrot.lane.b32.xlu0 %v4614_v14, %s4829_s21 }
 0xd4c   :  { %v781_v15 = vpop.permute.xlu0 %780 }
 0xd4d   :  { %v783_v16 = vmul.f32 %v781_v15, %v765_v2 }
 0xd4f   :  { %785 = vrot.lane.b32.xlu1 %v783_v16, %s4830_s22 }
 0xdc1   :  { %v786_v17 = vpop.permute.xlu1 %785 }
 0xdc2   :  { %788 = vst.msk [vmem:[#allocation3 + $0x20] sm:$0xff] %vm270_vm2, %v786_v17  ;;  %789 = vst.msk [vmem:[#allocation5 + $0x8] sm:$0xff] %vm270_vm2, %v786_v17  ;;  %4161 = vmatmul.mubr.msk.f32.vlgmr.msra.gmra.mrb[8].mxu1 %vm270_vm2, %v786_v17 }
 0xdc3   :  { %4465 = vmatpush3.bf16.msra.mxu1 %v4899_v7  ;;  %4182 = vmatprep.mubr.msk.f32.mxu1 %vm4827_vm1, %v4828_v10 }
 0xdc4   :  { %4466 = vmatprep.subr.bf16.mxu1 %v4826_v3 }
 0xdc7   :  { %4468 = vmatpush3.bf16.msra.mxu1 %v4914_v12 }
 0xdc8   :  { %4475 = vmatprep.subr.bf16.mxu1 %v4826_v3 }
 0xe95   :  { %v859_v19 = vpop.f32.mrb[8].mxu1 }
 0xe96   :  { %v863_v20 = vadd.f32 %v859_v19, %v196_v18  ;;  %v4162_v21 = vpop.f32.mrb[9].mxu1 }
 0xe98   :  { %4615 = vtanh.f32 %v863_v20  ;;  %v864_v23 = vmul.f32 0.5, %v863_v20 }
 0xe9a   :  { %4617 = vtanh.f32 %v864_v23 }
 0xea2   :  { %v4616_v22 = vpop.eup %4615 }
 0xea3   :  { %871 = vrot.lane.b32.xlu0 %v4616_v22, %s4829_s21 }
 0xea4   :  { %v4618_v24 = vpop.eup %4617 }
 0xea5   :  { %v866_v25 = vadd.f32 1.0, %v4618_v24  ;;  %v211_v24 = vadd.f32 %v4935_v13, %v5058_v49 }
 0xea7   :  { %v867_v26 = vmul.f32 0.5, %v866_v25 }
 0xea9   :  { %v869_v29 = vmul.f32 %v867_v26, %v777_v9 }
 0xf15   :  { %v872_v27 = vpop.permute.xlu0 %871 }
 0xf16   :  { %v874_v28 = vmul.f32 %v872_v27, %v867_v26 }
 0xf18   :  { %876 = vrot.lane.b32.xlu1 %v874_v28, %s4830_s22 }
 0xf8a   :  { %v877_v30 = vpop.permute.xlu1 %876 }
 0xf8b   :  { %v879_v31 = vadd.f32 %v877_v30, %v869_v29 }
 0xf8d   :  { %4619 = vtanh.f32 %v879_v31 }
 0xf97   :  { %v4620_v32 = vpop.eup %4619 }
 0xf98   :  { %882 = vrot.lane.b32.xlu0 %v4620_v32, %s4829_s21 }
0x100a   :  { %v883_v33 = vpop.permute.xlu0 %882 }
0x100b   :  { %v5099_v34 = vmul.f32 %v883_v33, %v867_v26 }
0x100d   :  { %887 = vrot.lane.b32.xlu1 %v5099_v34, %s4830_s22 }
0x107f   :  { %v888_v35 = vpop.permute.xlu1 %887 }
0x1080   :  { %890 = vst.msk [vmem:[#allocation3 + $0x28] sm:$0xff] %vm270_vm2, %v888_v35  ;;  %4172 = vmatmul.mubr.msk.f32.vlgmr.msra.gmra.mrb[18].mxu0 %vm270_vm2, %v888_v35 }
0x1081   :  { %4471 = vmatpush3.bf16.msra.mxu0 %v4899_v7  ;;  %4193 = vmatprep.mubr.msk.f32.mxu0 %vm4827_vm1, %v4828_v10 }
0x1082   :  { %4472 = vmatprep.subr.bf16.mxu0 %v4826_v3 }
0x1085   :  { %4474 = vmatpush3.bf16.msra.mxu0 %v4914_v12 }
0x1086   :  { %4481 = vmatprep.subr.bf16.mxu0 %v4826_v3 }
0x1153   :  { %v964_v37 = vpop.f32.mrb[18].mxu0 }
0x1154   :  { %v968_v38 = vadd.f32 %v964_v37, %v201_v36  ;;  %v4173_v39 = vpop.f32.mrb[19].mxu0 }
0x1156   :  { %4621 = vtanh.f32 %v968_v38  ;;  %v969_v41 = vmul.f32 0.5, %v968_v38 }
0x1158   :  { %4623 = vtanh.f32 %v969_v41 }
0x1160   :  { %v4622_v40 = vpop.eup %4621 }
0x1161   :  { %976 = vrot.lane.b32.xlu0 %v4622_v40, %s4829_s21 }
0x1162   :  { %v4624_v42 = vpop.eup %4623 }
0x1163   :  { %v971_v44 = vadd.f32 1.0, %v4624_v42  ;;  %v216_v42 = vadd.f32 %v5056_v48, %v4935_v13 }
0x1165   :  { %v972_v45 = vmul.f32 0.5, %v971_v44 }
0x1167   :  { %v974_v59 = vmul.f32 %v972_v45, %v879_v31 }
0x11d3   :  { %v977_v57 = vpop.permute.xlu0 %976 }
0x11d4   :  { %v979_v58 = vmul.f32 %v977_v57, %v972_v45 }
0x11d6   :  { %981 = vrot.lane.b32.xlu1 %v979_v58, %s4830_s22 }
0x1248   :  { %v982_v60 = vpop.permute.xlu1 %981 }
0x1249   :  { %v984_v61 = vadd.f32 %v982_v60, %v974_v59 }
0x124b   :  { %4625 = vtanh.f32 %v984_v61 }
0x1255   :  { %v4626_v47 = vpop.eup %4625 }
0x1256   :  { %987 = vrot.lane.b32.xlu0 %v4626_v47, %s4829_s21 }
0x12c8   :  { %v988_v62 = vpop.permute.xlu0 %987 }
0x12c9   :  { %v5116_v63 = vmul.f32 %v988_v62, %v972_v45 }
0x12cb   :  { %992 = vrot.lane.b32.xlu1 %v5116_v63, %s4830_s22 }
0x133d   :  { %v993_v0 = vpop.permute.xlu1 %992 }
0x133e   :  { %995 = vst.msk [vmem:[#allocation3 + $0x30] sm:$0xff] %vm270_vm2, %v993_v0  ;;  %4183 = vmatmul.mubr.msk.f32.vlgmr.msra.gmra.mrb[10].mxu1 %vm270_vm2, %v993_v0 }
0x133f   :  { %4477 = vmatpush3.bf16.msra.mxu1 %v4899_v7  ;;  %4204 = vmatprep.mubr.msk.f32.mxu1 %vm4827_vm1, %v4828_v10 }
0x1340   :  { %4478 = vmatprep.subr.bf16.mxu1 %v4826_v3 }
0x1343   :  { %4480 = vmatpush3.bf16.msra.mxu1 %v4914_v12 }
0x1344   :  { %4487 = vmatprep.subr.bf16.mxu1 %v4826_v3 }
0x1411   :  { %v1069_v2 = vpop.f32.mrb[10].mxu1 }
0x1412   :  { %v1073_v4 = vadd.f32 %v1069_v2, %v206_v1  ;;  %v4184_v5 = vpop.f32.mrb[11].mxu1 }
0x1414   :  { %4627 = vtanh.f32 %v1073_v4  ;;  %v1074_v8 = vmul.f32 0.5, %v1073_v4 }
0x1416   :  { %4629 = vtanh.f32 %v1074_v8 }
0x141e   :  { %v4628_v6 = vpop.eup %4627 }
0x141f   :  { %1081 = vrot.lane.b32.xlu0 %v4628_v6, %s4829_s21 }
0x1420   :  { %v4630_v9 = vpop.eup %4629 }
0x1421   :  { %v1076_v14 = vadd.f32 1.0, %v4630_v9  ;;  %v221_v9 = vadd.f32 %v4935_v13, %v5062_v51 }
0x1423   :  { %v1077_v15 = vmul.f32 0.5, %v1076_v14 }
0x1425   :  { %v1079_v18 = vmul.f32 %v1077_v15, %v984_v61 }
0x1491   :  { %v1082_v16 = vpop.permute.xlu0 %1081 }
0x1492   :  { %v1084_v17 = vmul.f32 %v1082_v16, %v1077_v15 }
0x1494   :  { %1086 = vrot.lane.b32.xlu1 %v1084_v17, %s4830_s22 }
0x1506   :  { %v1087_v19 = vpop.permute.xlu1 %1086 }
0x1507   :  { %v1089_v20 = vadd.f32 %v1087_v19, %v1079_v18 }
0x1509   :  { %4631 = vtanh.f32 %v1089_v20 }
0x1513   :  { %v4632_v46 = vpop.eup %4631 }
0x1514   :  { %1092 = vrot.lane.b32.xlu0 %v4632_v46, %s4829_s21 }
0x1586   :  { %v1093_v21 = vpop.permute.xlu0 %1092 }
0x1587   :  { %v5133_v22 = vmul.f32 %v1093_v21, %v1077_v15 }
0x1589   :  { %1097 = vrot.lane.b32.xlu1 %v5133_v22, %s4830_s22 }
0x15fb   :  { %v1098_v23 = vpop.permute.xlu1 %1097 }
0x15fc   :  { %1100 = vst.msk [vmem:[#allocation3 + $0x38] sm:$0xff] %vm270_vm2, %v1098_v23  ;;  %4194 = vmatmul.mubr.msk.f32.vlgmr.msra.gmra.mrb[20].mxu0 %vm270_vm2, %v1098_v23 }
0x15fd   :  { %4483 = vmatpush3.bf16.msra.mxu0 %v4899_v7  ;;  %4215 = vmatprep.mubr.msk.f32.mxu0 %vm4827_vm1, %v4828_v10 }
0x15fe   :  { %4484 = vmatprep.subr.bf16.mxu0 %v4826_v3 }
0x1601   :  { %4486 = vmatpush3.bf16.msra.mxu0 %v4914_v12 }
0x1602   :  { %4493 = vmatprep.subr.bf16.mxu0 %v4826_v3 }
0x16cf   :  { %v1171_v25 = vpop.f32.mrb[20].mxu0 }
0x16d0   :  { %v1175_v26 = vadd.f32 %v1171_v25, %v211_v24  ;;  %v4195_v27 = vpop.f32.mrb[21].mxu0 }
0x16d2   :  { %4633 = vtanh.f32 %v1175_v26  ;;  %v1176_v29 = vmul.f32 0.5, %v1175_v26 }
0x16d4   :  { %4635 = vtanh.f32 %v1176_v29 }
0x16dc   :  { %v4634_v28 = vpop.eup %4633 }
0x16dd   :  { %1183 = vrot.lane.b32.xlu0 %v4634_v28, %s4829_s21 }
0x16de   :  { %v4636_v30 = vpop.eup %4635 }
0x16df   :  { %v1178_v31 = vadd.f32 1.0, %v4636_v30  ;;  %v226_v30 = vadd.f32 %v5060_v50, %v4935_v13 }
0x16e1   :  { %v1179_v32 = vmul.f32 0.5, %v1178_v31 }
0x16e3   :  { %v1181_v36 = vmul.f32 %v1179_v32, %v1089_v20 }
0x174f   :  { %v1184_v33 = vpop.permute.xlu0 %1183 }
0x1750   :  { %v1186_v35 = vmul.f32 %v1184_v33, %v1179_v32 }
0x1752   :  { %1188 = vrot.lane.b32.xlu1 %v1186_v35, %s4830_s22 }
0x17c4   :  { %v1189_v37 = vpop.permute.xlu1 %1188 }
0x17c5   :  { %v1191_v38 = vadd.f32 %v1189_v37, %v1181_v36 }
0x17c7   :  { %4637 = vtanh.f32 %v1191_v38 }
0x17d1   :  { %v4638_v49 = vpop.eup %4637 }
0x17d2   :  { %1194 = vrot.lane.b32.xlu0 %v4638_v49, %s4829_s21 }
0x1844   :  { %v1195_v39 = vpop.permute.xlu0 %1194 }
0x1845   :  { %v1197_v40 = vmul.f32 %v1195_v39, %v1179_v32 }
0x1847   :  { %1199 = vrot.lane.b32.xlu1 %v1197_v40, %s4830_s22 }
0x18b9   :  { %v1200_v41 = vpop.permute.xlu1 %1199 }
0x18ba   :  { %1202 = vst.msk [vmem:[#allocation3 + $0x40] sm:$0xff] %vm270_vm2, %v1200_v41  ;;  %1203 = vst.msk [vmem:[#allocation5 + $0x10] sm:$0xff] %vm270_vm2, %v1200_v41  ;;  %4205 = vmatmul.mubr.msk.f32.vlgmr.msra.gmra.mrb[12].mxu1 %vm270_vm2, %v1200_v41 }
0x18bb   :  { %4489 = vmatpush3.bf16.msra.mxu1 %v4899_v7  ;;  %4226 = vmatprep.mubr.msk.f32.mxu1 %vm4827_vm1, %v4828_v10 }
0x18bc   :  { %4490 = vmatprep.subr.bf16.mxu1 %v4826_v3 }
0x18bf   :  { %4492 = vmatpush3.bf16.msra.mxu1 %v4914_v12 }
0x18c0   :  { %4499 = vmatprep.subr.bf16.mxu1 %v4826_v3 }
0x198d   :  { %v1273_v44 = vpop.f32.mrb[12].mxu1 }
0x198e   :  { %v1277_v45 = vadd.f32 %v1273_v44, %v216_v42  ;;  %v4206_v57 = vpop.f32.mrb[13].mxu1 }
0x1990   :  { %4639 = vtanh.f32 %v1277_v45  ;;  %v1278_v59 = vmul.f32 0.5, %v1277_v45 }
0x1992   :  { %4641 = vtanh.f32 %v1278_v59  ;;  %v231_v59 = vadd.f32 %v4935_v13, %v5066_v54 }
0x199a   :  { %v4640_v58 = vpop.eup %4639 }
0x199b   :  { %1285 = vrot.lane.b32.xlu0 %v4640_v58, %s4829_s21 }
0x199c   :  { %v4642_v60 = vpop.eup %4641 }
0x199d   :  { %v1280_v61 = vadd.f32 1.0, %v4642_v60 }
0x199f   :  { %v1281_v47 = vmul.f32 0.5, %v1280_v61 }
0x19a1   :  { %v1283_v1 = vmul.f32 %v1281_v47, %v1191_v38 }
0x1a0d   :  { %v1286_v62 = vpop.permute.xlu0 %1285 }
0x1a0e   :  { %v1288_v0 = vmul.f32 %v1286_v62, %v1281_v47 }
0x1a10   :  { %1290 = vrot.lane.b32.xlu1 %v1288_v0, %s4830_s22 }
0x1a82   :  { %v1291_v2 = vpop.permute.xlu1 %1290 }
0x1a83   :  { %v1293_v4 = vadd.f32 %v1291_v2, %v1283_v1 }
0x1a85   :  { %4643 = vtanh.f32 %v1293_v4 }
0x1a8f   :  { %v4644_v48 = vpop.eup %4643 }
0x1a90   :  { %1296 = vrot.lane.b32.xlu0 %v4644_v48, %s4829_s21 }
0x1b02   :  { %v1297_v5 = vpop.permute.xlu0 %1296 }
0x1b03   :  { %v5165_v6 = vmul.f32 %v1297_v5, %v1281_v47 }
0x1b05   :  { %1301 = vrot.lane.b32.xlu1 %v5165_v6, %s4830_s22 }
0x1b77   :  { %v1302_v8 = vpop.permute.xlu1 %1301 }
0x1b78   :  { %1304 = vst.msk [vmem:[#allocation3 + $0x48] sm:$0xff] %vm270_vm2, %v1302_v8  ;;  %4216 = vmatmul.mubr.msk.f32.vlgmr.msra.gmra.mrb[22].mxu0 %vm270_vm2, %v1302_v8 }
0x1b79   :  { %4495 = vmatpush3.bf16.msra.mxu0 %v4899_v7  ;;  %4237 = vmatprep.mubr.msk.f32.mxu0 %vm4827_vm1, %v4828_v10 }
0x1b7a   :  { %4496 = vmatprep.subr.bf16.mxu0 %v4826_v3 }
0x1b7d   :  { %4498 = vmatpush3.bf16.msra.mxu0 %v4914_v12 }
0x1b7e   :  { %4505 = vmatprep.subr.bf16.mxu0 %v4826_v3 }
0x1c4b   :  { %v1378_v14 = vpop.f32.mrb[22].mxu0 }
0x1c4c   :  { %v1382_v15 = vadd.f32 %v1378_v14, %v221_v9  ;;  %v4217_v16 = vpop.f32.mrb[23].mxu0 }
0x1c4e   :  { %4645 = vtanh.f32 %v1382_v15  ;;  %v1383_v18 = vmul.f32 0.5, %v1382_v15 }
0x1c50   :  { %4647 = vtanh.f32 %v1383_v18  ;;  %v236_v18 = vadd.f32 %v5064_v53, %v4935_v13  ;;  %v1946_v13 = vld [vmem:[%s5659_s4] sm:$0xff]  ;;  %v1947_v53 = vld [vmem:[%s5659_s4 + $0x8] sm:$0xff] }
0x1c58   :  { %v4646_v17 = vpop.eup %4645 }
0x1c59   :  { %1390 = vrot.lane.b32.xlu0 %v4646_v17, %s4829_s21 }
0x1c5a   :  { %v4648_v19 = vpop.eup %4647 }
0x1c5b   :  { %v1385_v20 = vadd.f32 1.0, %v4648_v19 }
0x1c5d   :  { %v1386_v46 = vmul.f32 0.5, %v1385_v20 }
0x1c5f   :  { %v1388_v24 = vmul.f32 %v1386_v46, %v1293_v4 }
0x1ccb   :  { %v1391_v21 = vpop.permute.xlu0 %1390 }
0x1ccc   :  { %v1393_v23 = vmul.f32 %v1391_v21, %v1386_v46 }
0x1cce   :  { %1395 = vrot.lane.b32.xlu1 %v1393_v23, %s4830_s22 }
0x1d40   :  { %v1396_v25 = vpop.permute.xlu1 %1395 }
0x1d41   :  { %v1398_v26 = vadd.f32 %v1396_v25, %v1388_v24 }
0x1d43   :  { %4649 = vtanh.f32 %v1398_v26 }
0x1d4d   :  { %v4650_v51 = vpop.eup %4649 }
0x1d4e   :  { %1401 = vrot.lane.b32.xlu0 %v4650_v51, %s4829_s21 }
0x1dc0   :  { %v1402_v27 = vpop.permute.xlu0 %1401 }
0x1dc1   :  { %v5182_v28 = vmul.f32 %v1402_v27, %v1386_v46 }
0x1dc3   :  { %1406 = vrot.lane.b32.xlu1 %v5182_v28, %s4830_s22 }
0x1e35   :  { %v1407_v29 = vpop.permute.xlu1 %1406 }
0x1e36   :  { %1409 = vst.msk [vmem:[#allocation3 + $0x50] sm:$0xff] %vm270_vm2, %v1407_v29  ;;  %4227 = vmatmul.mubr.msk.f32.vlgmr.msra.gmra.mrb[14].mxu1 %vm270_vm2, %v1407_v29 }
0x1e37   :  { %4501 = vmatpush3.bf16.msra.mxu1 %v4899_v7  ;;  %4248 = vmatprep.mubr.msk.f32.mxu1 %vm4827_vm1, %v4828_v10 }
0x1e38   :  { %4502 = vmatprep.subr.bf16.mxu1 %v4826_v3 }
0x1e3b   :  { %4504 = vmatpush3.bf16.msra.mxu1 %v4914_v12 }
0x1e3c   :  { %4511 = vmatprep.subr.bf16.mxu1 %v4826_v3 }
0x1f09   :  { %v1483_v31 = vpop.f32.mrb[14].mxu1 }
0x1f0a   :  { %v1487_v32 = vadd.f32 %v1483_v31, %v226_v30  ;;  %v4228_v33 = vpop.f32.mrb[15].mxu1  ;;  %v4517_v30 = vpack.c.bf16 %v1947_v53, %v1946_v13 }
0x1f0c   :  { %4651 = vtanh.f32 %v1487_v32  ;;  %v1488_v36 = vmul.f32 0.5, %v1487_v32 }
0x1f0e   :  { %4653 = vtanh.f32 %v1488_v36  ;;  %v1949_v36 = vld [vmem:[%s5659_s4 + $0x18] sm:$0xff] }
0x1f16   :  { %v4652_v35 = vpop.eup %4651 }
0x1f17   :  { %1495 = vrot.lane.b32.xlu0 %v4652_v35, %s4829_s21  ;;  %v1948_v35 = vld [vmem:[%s5659_s4 + $0x10] sm:$0xff] }
0x1f18   :  { %v4654_v37 = vpop.eup %4653 }
0x1f19   :  { %v1490_v38 = vadd.f32 1.0, %v4654_v37  ;;  %v4521_v37 = vpack.c.bf16 %v1949_v36, %v1948_v35 }
0x1f1b   :  { %v1491_v49 = vmul.f32 0.5, %v1490_v38 }
0x1f1d   :  { %v1493_v41 = vmul.f32 %v1491_v49, %v1398_v26 }
0x1f89   :  { %v1496_v39 = vpop.permute.xlu0 %1495 }
0x1f8a   :  { %v1498_v40 = vmul.f32 %v1496_v39, %v1491_v49  ;;  %v1931_v39 = vld [vmem:[#allocation3 + $0x8] sm:$0xff] }
0x1f8c   :  { %1500 = vrot.lane.b32.xlu1 %v1498_v40, %s4830_s22  ;;  %v1932_v40 = vld [vmem:[#allocation3 + $0x10] sm:$0xff] }
0x1ffe   :  { %v1501_v42 = vpop.permute.xlu1 %1500 }
0x1fff   :  { %v1503_v44 = vadd.f32 %v1501_v42, %v1493_v41  ;;  %v1933_v41 = vld [vmem:[#allocation3 + $0x18] sm:$0xff]  ;;  %v1934_v42 = vld [vmem:[#allocation3 + $0x20] sm:$0xff] }
0x2001   :  { %4655 = vtanh.f32 %v1503_v44 }
0x200b   :  { %v4656_v50 = vpop.eup %4655 }
0x200c   :  { %1506 = vrot.lane.b32.xlu0 %v4656_v50, %s4829_s21  ;;  %v1936_v50 = vld [vmem:[#allocation3 + $0x30] sm:$0xff] }
0x207e   :  { %v1507_v45 = vpop.permute.xlu0 %1506 }
0x207f   :  { %v5199_v57 = vmul.f32 %v1507_v45, %v1491_v49  ;;  %v1930_v49 = vld [vmem:[#allocation3] sm:$0xff]  ;;  %v1937_v45 = vld [vmem:[#allocation3 + $0x38] sm:$0xff] }
0x2081   :  { %1511 = vrot.lane.b32.xlu1 %v5199_v57, %s4830_s22 }
0x20f3   :  { %v1512_v58 = vpop.permute.xlu1 %1511 }
0x20f4   :  { %1514 = vst.msk [vmem:[#allocation3 + $0x58] sm:$0xff] %vm270_vm2, %v1512_v58  ;;  %4238 = vmatmul.mubr.msk.f32.vlgmr.msra.gmra.mrb[24].mxu0 %vm270_vm2, %v1512_v58  ;;  %v1938_v58 = vld [vmem:[#allocation3 + $0x40] sm:$0xff] }
0x20f5   :  { %4507 = vmatpush3.bf16.msra.mxu0 %v4899_v7  ;;  %4259 = vmatprep.mubr.msk.f32.mxu0 %vm4827_vm1, %v4828_v10 }
0x20f6   :  { %4508 = vmatprep.subr.bf16.mxu0 %v4826_v3 }
0x20f9   :  { %4510 = vmatpush3.bf16.msra.mxu0 %v4914_v12 }
0x20fa   :  { %4518 = vmatprep.subr.bf16.mxu0 %v4517_v30 }
0x21c7   :  { %v1585_v60 = vpop.f32.mrb[24].mxu0 }
0x21c8   :  { %v1589_v61 = vadd.f32 %v1585_v60, %v231_v59  ;;  %v4239_v47 = vpop.f32.mrb[25].mxu0  ;;  %v1939_v59 = vld [vmem:[#allocation3 + $0x48] sm:$0xff]  ;;  %v1940_v60 = vld [vmem:[#allocation3 + $0x50] sm:$0xff] }
0x21ca   :  { %4657 = vtanh.f32 %v1589_v61  ;;  %v1590_v0 = vmul.f32 0.5, %v1589_v61  ;;  %v1941_v61 = vld [vmem:[#allocation3 + $0x58] sm:$0xff] }
0x21cc   :  { %4659 = vtanh.f32 %v1590_v0  ;;  %v4777_v0 = vld [vmem:[%s5658_s3] ss:$0 sm:$0xff] }
0x21d4   :  { %v4658_v62 = vpop.eup %4657 }
0x21d5   :  { %1597 = vrot.lane.b32.xlu0 %v4658_v62, %s4829_s21 }
0x21d6   :  { %v4660_v1 = vpop.eup %4659 }
0x21d7   :  { %v1592_v2 = vadd.f32 1.0, %v4660_v1  ;;  %v241_v1 = vadd.f32 %v4777_v0, %v5070_v56 }
0x21d9   :  { %v1593_v4 = vmul.f32 0.5, %v1592_v2 }
0x21db   :  { %v1595_v8 = vmul.f32 %v1593_v4, %v1503_v44  ;;  %v1935_v44 = vld [vmem:[#allocation3 + $0x28] sm:$0xff] }
0x2247   :  { %v1598_v48 = vpop.permute.xlu0 %1597 }
0x2248   :  { %v1600_v5 = vmul.f32 %v1598_v48, %v1593_v4 }
0x224a   :  { %1602 = vrot.lane.b32.xlu1 %v1600_v5, %s4830_s22 }
0x22bc   :  { %v1603_v9 = vpop.permute.xlu1 %1602 }
0x22bd   :  { %v1605_v14 = vadd.f32 %v1603_v9, %v1595_v8 }
0x22bf   :  { %4661 = vtanh.f32 %v1605_v14 }
0x22c9   :  { %v4662_v54 = vpop.eup %4661 }
0x22ca   :  { %1608 = vrot.lane.b32.xlu0 %v4662_v54, %s4829_s21 }
0x233c   :  { %v1609_v15 = vpop.permute.xlu0 %1608 }
0x233d   :  { %v1611_v16 = vmul.f32 %v1609_v15, %v1593_v4 }
0x233f   :  { %1613 = vrot.lane.b32.xlu1 %v1611_v16, %s4830_s22 }
0x23b1   :  { %v1614_v17 = vpop.permute.xlu1 %1613 }
0x23b2   :  { %1616 = vst.msk [vmem:[#allocation3 + $0x60] sm:$0xff] %vm270_vm2, %v1614_v17  ;;  %1617 = vst.msk [vmem:[#allocation5 + $0x18] sm:$0xff] %vm270_vm2, %v1614_v17  ;;  %4249 = vmatmul.mubr.msk.f32.vlgmr.msra.gmra.mrb[16].mxu1 %vm270_vm2, %v1614_v17 }
0x23b3   :  { %4513 = vmatpush3.bf16.msra.mxu1 %v4899_v7  ;;  %4270 = vmatprep.mubr.msk.f32.mxu1 %vm4827_vm1, %v4828_v10 }
0x23b4   :  { %4514 = vmatprep.subr.bf16.mxu1 %v4826_v3 }
0x23b7   :  { %4516 = vmatpush3.bf16.msra.mxu1 %v4914_v12 }
0x23b8   :  { %4525 = vmatprep.subr.bf16.mxu1 %v4826_v3 }
0x23b9   :  { %v1942_v47 = vld [vmem:[#allocation3 + $0x60] sm:$0xff] }
0x2485   :  { %v1687_v19 = vpop.f32.mrb[16].mxu1 }
0x2486   :  { %v1691_v20 = vadd.f32 %v1687_v19, %v236_v18  ;;  %v4250_v46 = vpop.f32.mrb[17].mxu1 }
0x2488   :  { %4663 = vtanh.f32 %v1691_v20  ;;  %v1692_v7 = vmul.f32 0.5, %v1691_v20 }
0x248a   :  { %4665 = vtanh.f32 %v1692_v7 }
0x2492   :  { %v4664_v21 = vpop.eup %4663 }
0x2493   :  { %1699 = vrot.lane.b32.xlu0 %v4664_v21, %s4829_s21 }
0x2494   :  { %v4666_v23 = vpop.eup %4665 }
0x2495   :  { %v1694_v24 = vadd.f32 1.0, %v4666_v23 }
0x2497   :  { %v1695_v25 = vmul.f32 0.5, %v1694_v24 }
0x2499   :  { %v1697_v12 = vmul.f32 %v1695_v25, %v1605_v14 }
0x2505   :  { %v1700_v26 = vpop.permute.xlu0 %1699 }
0x2506   :  { %v1702_v51 = vmul.f32 %v1700_v26, %v1695_v25 }
0x2508   :  { %1704 = vrot.lane.b32.xlu1 %v1702_v51, %s4830_s22 }
0x257a   :  { %v1705_v27 = vpop.permute.xlu1 %1704 }
0x257b   :  { %v5229_v29 = vadd.f32 %v1705_v27, %v1697_v12 }
0x257d   :  { %4667 = vtanh.f32 %v5229_v29 }
0x2587   :  { %v4668_v31 = vpop.eup %4667 }
0x2588   :  { %1710 = vrot.lane.b32.xlu0 %v4668_v31, %s4829_s21  ;;  %v2166_v31 = vld [vmem:[%s5660_s5] sm:$0xff] }
0x25fa   :  { %v1711_v32 = vpop.permute.xlu0 %1710 }
0x25fb   :  { %v5239_v33 = vmul.f32 %v1711_v32, %v1695_v25  ;;  %v2167_v32 = vld [vmem:[%s5660_s5 + $0x8] sm:$0xff] }
0x25fc   :  { %v5309_v35 = vpack.c.bf16 %v2167_v32, %v2166_v31 }
0x25fd   :  { %1715 = vrot.lane.b32.xlu1 %v5239_v33, %s4830_s22 }
0x266f   :  { %v1716_v38 = vpop.permute.xlu1 %1715 }
0x2670   :  { %1718 = vst.msk [vmem:[#allocation3 + $0x68] sm:$0xff] %vm270_vm2, %v1716_v38  ;;  %4260 = vmatmul.mubr.msk.f32.vlgmr.msra.gmra.mrb[26].mxu0 %vm270_vm2, %v1716_v38 }
0x2671   :  { %4520 = vmatpush3.bf16.msra.mxu0 %v4517_v30  ;;  %4281 = vmatprep.mubr.msk.f32.mxu0 %vm270_vm2, %v1930_v49  ;;  %v246_v49 = vadd.f32 %v4777_v0, %v5068_v55 }
0x2672   :  { %4522 = vmatprep.subr.bf16.mxu0 %v4521_v37 }
0x2675   :  { %4524 = vmatpush3.bf16.msra.mxu0 %v4521_v37 }
0x2676   :  { %4549 = vmatprep.subr.bf16.mxu0 %v4826_v3 }
0x2677   :  { %v1943_v62 = vld [vmem:[#allocation3 + $0x68] sm:$0xff] }
0x2678   :  { %4282 = vmatmul.mubr.msk.f32.vlgmr.msra.gmra.mrb[28].mxu0 %vm270_vm2, %v1931_v39  ;;  %v5333_v39 = vld [vmem:[%s5661_s6] ss:$0 sm:$0xff]  ;;  %s4832_s6 = smov 16  }
0x2679   :  { %4284 = vmatprep.mubr.msk.f32.mxu0 %vm270_vm2, %v1932_v40  ;;  %4551 = vmatpush3.bf16.msra.mxu0 %v5309_v35 }
0x267a   :  { %4555 = vmatprep.subr.bf16.mxu0 %v4826_v3 }
0x267c   :  { %4285 = vmatmul.mubr.msk.f32.gmra.mrb[30].mxu0 %vm270_vm2, %v1933_v41 }
0x267d   :  { %4287 = vmatprep.mubr.msk.f32.mxu0 %vm270_vm2, %v1934_v42 }
0x2680   :  { %4288 = vmatmul.mubr.msk.f32.gmra.mrb[32].mxu0 %vm270_vm2, %v1935_v44 }
0x2681   :  { %4290 = vmatprep.mubr.msk.f32.mxu0 %vm270_vm2, %v1936_v50 }
0x2684   :  { %4291 = vmatmul.mubr.msk.f32.gmra.mrb[34].mxu0 %vm270_vm2, %v1937_v45 }
0x2685   :  { %4293 = vmatprep.mubr.msk.f32.mxu0 %vm270_vm2, %v1938_v58 }
0x2688   :  { %4294 = vmatmul.mubr.msk.f32.gmra.mrb[36].mxu0 %vm270_vm2, %v1939_v59 }
0x2689   :  { %4296 = vmatprep.mubr.msk.f32.mxu0 %vm270_vm2, %v1940_v60 }
0x268c   :  { %4297 = vmatmul.mubr.msk.f32.gmra.mrb[38].mxu0 %vm270_vm2, %v1941_v61 }
0x268d   :  { %4299 = vmatprep.mubr.msk.f32.mxu0 %vm270_vm2, %v1942_v47 }
0x2690   :  { %4300 = vmatmul.mubr.msk.f32.gmra.mrb[40].mxu0 %vm270_vm2, %v1943_v62 }
0x2743   :  { %v1792_v2 = vpop.f32.mrb[26].mxu0 }
0x2744   :  { %v1796_v4 = vadd.f32 %v1792_v2, %v241_v1  ;;  %v4261_v48 = vpop.f32.mrb[27].mxu0 }
0x2746   :  { %4669 = vtanh.f32 %v1796_v4  ;;  %v1797_v23 = vmul.f32 0.5, %v1796_v4 }
0x2748   :  { %4671 = vtanh.f32 %v1797_v23 }
0x274b   :  { %v5270_v5 = vpop.f32.mrb[28].mxu0 }
0x274c   :  { %v2071_v8 = vpop.f32.mrb[29].mxu0 }
0x274d   :  { %v2072_v44 = vadd.f32 %v5333_v39, %v2071_v8 }
0x274f   :  { %v5272_v9 = vpop.f32.mrb[30].mxu0 }
0x2750   :  { %v4670_v14 = vpop.eup %4669  ;;  %v5274_v54 = vpop.f32.mrb[31].mxu0 }
0x2751   :  { %1804 = vrot.lane.b32.xlu0 %v4670_v14, %s4829_s21 }
0x2752   :  { %v4672_v24 = vpop.eup %4671 }
0x2753   :  { %v5277_v15 = vpop.f32.mrb[32].mxu0  ;;  %v1799_v25 = vadd.f32 1.0, %v4672_v24  ;;  %v2077_v24 = vadd.f32 %v5270_v5, %v5333_v39 }
0x2754   :  { %v5279_v16 = vpop.f32.mrb[33].mxu0 }
0x2755   :  { %v1800_v26 = vmul.f32 0.5, %v1799_v25 }
0x2757   :  { %v5281_v17 = vpop.f32.mrb[34].mxu0  ;;  %v1802_v27 = vmul.f32 %v1800_v26, %v5229_v29 }
0x2758   :  { %v5283_v56 = vpop.f32.mrb[35].mxu0 }
0x275b   :  { %v5285_v18 = vpop.f32.mrb[36].mxu0 }
0x275c   :  { %v5287_v19 = vpop.f32.mrb[37].mxu0 }
0x275f   :  { %v5289_v20 = vpop.f32.mrb[38].mxu0 }
0x2760   :  { %v5291_v46 = vpop.f32.mrb[39].mxu0 }
0x2763   :  { %v5293_v21 = vpop.f32.mrb[40].mxu0 }
0x2764   :  { %v5295_v7 = vpop.f32.mrb[41].mxu0 }
0x27c3   :  { %v1805_v51 = vpop.permute.xlu0 %1804 }
0x27c4   :  { %v1807_v12 = vmul.f32 %v1805_v51, %v1800_v26 }
0x27c6   :  { %1809 = vrot.lane.b32.xlu1 %v1807_v12, %s4830_s22 }
0x2838   :  { %v1810_v13 = vpop.permute.xlu1 %1809 }
0x2839   :  { %v5299_v53 = vadd.f32 %v1810_v13, %v1802_v27 }
0x283b   :  { %4673 = vtanh.f32 %v5299_v53 }
0x2845   :  { %v4674_v30 = vpop.eup %4673 }
0x2846   :  { %1815 = vrot.lane.b32.xlu0 %v4674_v30, %s4829_s21 }
0x28b8   :  { %v1816_v29 = vpop.permute.xlu0 %1815 }
0x28b9   :  { %v5313_v36 = vmul.f32 %v1816_v29, %v1800_v26 }
0x28bb   :  { %1820 = vrot.lane.b32.xlu1 %v5313_v36, %s4830_s22 }
0x292d   :  { %v1821_v37 = vpop.permute.xlu1 %1820 }
0x292e   :  { %1823 = vst.msk [vmem:[#allocation3 + $0x70] sm:$0xff] %vm270_vm2, %v1821_v37  ;;  %4271 = vmatmul.mubr.msk.f32.vlgmr.msra.gmra.mrb[18].mxu1 %vm270_vm2, %v1821_v37 }
0x292f   :  { %4527 = vmatpush3.bf16.msra.mxu1 %v5309_v35  ;;  %4309 = vmatprep.mubr.msk.f32.mxu1 %vm4827_vm1, %v4828_v10 }
0x2930   :  { %4528 = vmatprep.subr.bf16.mxu1 %v4826_v3 }
0x2932   :  { %4310 = vmatmul.mubr.f32.vlgmr.msra.gmra.mrb[20].mxu1 %v4828_v10 }
0x2933   :  { %4530 = vmatpush3.bf16.msra.mxu1 %v5309_v35  ;;  %4316 = vmatprep.mubr.msk.f32.mxu1 %vm4827_vm1, %v4828_v10 }
0x2934   :  { %4531 = vmatprep.subr.bf16.mxu1 %v4826_v3 }
0x2935   :  { %v1944_v38 = vld [vmem:[#allocation3 + $0x70] sm:$0xff] }
0x2936   :  { %4302 = vmatprep.mubr.msk.f32.mxu0 %vm270_vm2, %v1944_v38 }
0x2a01   :  { %v1897_v40 = vpop.f32.mrb[18].mxu1 }
0x2a02   :  { %v5335_v41 = vadd.f32 %v1897_v40, %v246_v49  ;;  %v4272_v42 = vpop.f32.mrb[19].mxu1 }
0x2a05   :  { %v2237_v50 = vpop.f32.mrb[20].mxu1 }
0x2a06   :  { %v2241_v45 = vadd.f32 %v2237_v50, %v2072_v44  ;;  %v4311_v58 = vpop.f32.mrb[21].mxu1  ;;  %v2082_v50 = vadd.f32 %v5333_v39, %v5274_v54 }
0x2a08   :  { %4675 = vtanh.f32 %v2241_v45  ;;  %v2242_v55 = vmul.f32 0.5, %v2241_v45 }
0x2a0a   :  { %4677 = vtanh.f32 %v2242_v55 }
0x2a12   :  { %v4676_v59 = vpop.eup %4675 }
0x2a13   :  { %2249 = vrot.lane.b32.xlu0 %v4676_v59, %s4831_s18 }
0x2a14   :  { %v4678_v60 = vpop.eup %4677 }
0x2a15   :  { %v2244_v61 = vadd.f32 1.0, %v4678_v60 }
0x2a17   :  { %v2245_v47 = vmul.f32 0.5, %v2244_v61 }
0x2a19   :  { %v2247_v1 = vmul.f32 0.0, %v2245_v47 }
0x2a85   :  { %v2250_v62 = vpop.permute.xlu0 %2249 }
0x2a86   :  { %v2252_v0 = vmul.f32 %v2250_v62, %v2245_v47 }
0x2a88   :  { %2254 = vrot.lane.b32.xlu1 %v2252_v0, %s4832_s6 }
0x2afa   :  { %v2255_v2 = vpop.permute.xlu1 %2254 }
0x2afb   :  { %v2257_v4 = vadd.f32 %v2255_v2, %v2247_v1 }
0x2afd   :  { %4679 = vtanh.f32 %v2257_v4 }
0x2b07   :  { %v4680_v48 = vpop.eup %4679 }
0x2b08   :  { %2260 = vrot.lane.b32.xlu0 %v4680_v48, %s4830_s22 }
0x2b7a   :  { %v2261_v8 = vpop.permute.xlu0 %2260 }
0x2b7b   :  { %v2263_v14 = vmul.f32 %v2261_v8, %v2245_v47 }
0x2b7d   :  { %2265 = vrot.lane.b32.xlu1 %v2263_v14, %s4833_s19 }
0x2bef   :  { %v2266_v23 = vpop.permute.xlu1 %2265 }
0x2bf0   :  { %2268 = vst.msk [vmem:[#allocation7] sm:$0xff] %vm55_vm0, %v2266_v23  ;;  %4317 = vmatmul.mubr.msk.f32.vlgmr.msra.gmra.mrb[22].mxu1 %vm55_vm0, %v2266_v23 }
0x2bf1   :  { %4533 = vmatpush3.bf16.msra.mxu1 %v5309_v35  ;;  %4323 = vmatprep.mubr.msk.f32.mxu1 %vm4827_vm1, %v4828_v10 }
0x2bf2   :  { %4534 = vmatprep.subr.bf16.mxu1 %v4826_v3 }
0x2cc3   :  { %v2338_v25 = vpop.f32.mrb[22].mxu1 }
0x2cc4   :  { %v2342_v26 = vadd.f32 %v2338_v25, %v2077_v24  ;;  %v4318_v51 = vpop.f32.mrb[23].mxu1  ;;  %v2087_v24 = vadd.f32 %v5272_v9, %v5333_v39 }
0x2cc6   :  { %4681 = vtanh.f32 %v2342_v26  ;;  %v2343_v27 = vmul.f32 0.5, %v2342_v26 }
0x2cc8   :  { %4683 = vtanh.f32 %v2343_v27 }
0x2cd0   :  { %v4682_v12 = vpop.eup %4681 }
0x2cd1   :  { %2350 = vrot.lane.b32.xlu0 %v4682_v12, %s4831_s18 }
0x2cd2   :  { %v4684_v13 = vpop.eup %4683 }
0x2cd3   :  { %v2345_v30 = vadd.f32 1.0, %v4684_v13 }
0x2cd5   :  { %v2346_v31 = vmul.f32 0.5, %v2345_v30 }
0x2cd7   :  { %v2348_v37 = vmul.f32 %v2346_v31, %v2257_v4 }
0x2d43   :  { %v2351_v32 = vpop.permute.xlu0 %2350 }
0x2d44   :  { %v2353_v29 = vmul.f32 %v2351_v32, %v2346_v31 }
0x2d46   :  { %2355 = vrot.lane.b32.xlu1 %v2353_v29, %s4832_s6 }
0x2db8   :  { %v2356_v38 = vpop.permute.xlu1 %2355 }
0x2db9   :  { %v2358_v49 = vadd.f32 %v2356_v38, %v2348_v37 }
0x2dbb   :  { %4685 = vtanh.f32 %v2358_v49 }
0x2dc5   :  { %v4686_v5 = vpop.eup %4685 }
0x2dc6   :  { %2361 = vrot.lane.b32.xlu0 %v4686_v5, %s4830_s22 }
0x2e38   :  { %v2362_v40 = vpop.permute.xlu0 %2361 }
0x2e39   :  { %v5353_v42 = vmul.f32 %v2362_v40, %v2346_v31 }
0x2e3b   :  { %2372 = vrot.lane.b32.xlu1 %v5353_v42, %s4833_s19 }
0x2ead   :  { %v2373_v44 = vpop.permute.xlu1 %2372 }
0x2eae   :  { %4324 = vmatmul.mubr.msk.f32.vlgmr.msra.gmra.mrb[24].mxu1 %vm55_vm0, %v2373_v44 }
0x2eaf   :  { %4536 = vmatpush3.bf16.msra.mxu1 %v5309_v35  ;;  %4330 = vmatprep.mubr.msk.f32.mxu1 %vm4827_vm1, %v4828_v10 }
0x2eb0   :  { %4537 = vmatprep.subr.bf16.mxu1 %v4826_v3 }
0x2f81   :  { %v2442_v45 = vpop.f32.mrb[24].mxu1 }
0x2f82   :  { %v2446_v58 = vadd.f32 %v2442_v45, %v2082_v50  ;;  %v4325_v59 = vpop.f32.mrb[25].mxu1  ;;  %v2092_v50 = vadd.f32 %v5333_v39, %v5279_v16 }
0x2f84   :  { %4687 = vtanh.f32 %v2446_v58  ;;  %v2447_v60 = vmul.f32 0.5, %v2446_v58 }
0x2f86   :  { %4689 = vtanh.f32 %v2447_v60 }
0x2f8e   :  { %v4688_v55 = vpop.eup %4687 }
0x2f8f   :  { %2454 = vrot.lane.b32.xlu0 %v4688_v55, %s4831_s18 }
0x2f90   :  { %v4690_v61 = vpop.eup %4689 }
0x2f91   :  { %v2449_v47 = vadd.f32 1.0, %v4690_v61 }
0x2f93   :  { %v2450_v62 = vmul.f32 0.5, %v2449_v47 }
0x2f95   :  { %v2452_v2 = vmul.f32 %v2450_v62, %v2358_v49 }
0x3001   :  { %v2455_v0 = vpop.permute.xlu0 %2454 }
0x3002   :  { %v2457_v1 = vmul.f32 %v2455_v0, %v2450_v62 }
0x3004   :  { %2459 = vrot.lane.b32.xlu1 %v2457_v1, %s4832_s6 }
0x3076   :  { %v2460_v4 = vpop.permute.xlu1 %2459 }
0x3077   :  { %v2462_v48 = vadd.f32 %v2460_v4, %v2452_v2 }
0x3079   :  { %4691 = vtanh.f32 %v2462_v48 }
0x3083   :  { %v4692_v54 = vpop.eup %4691 }
0x3084   :  { %2465 = vrot.lane.b32.xlu0 %v4692_v54, %s4830_s22 }
0x30f6   :  { %v2466_v8 = vpop.permute.xlu0 %2465 }
0x30f7   :  { %v5367_v14 = vmul.f32 %v2466_v8, %v2450_v62 }
0x30f9   :  { %2476 = vrot.lane.b32.xlu1 %v5367_v14, %s4833_s19 }
0x316b   :  { %v2477_v23 = vpop.permute.xlu1 %2476 }
0x316c   :  { %4331 = vmatmul.mubr.msk.f32.vlgmr.msra.gmra.mrb[26].mxu1 %vm55_vm0, %v2477_v23 }
0x316d   :  { %4539 = vmatpush3.bf16.msra.mxu1 %v5309_v35  ;;  %4337 = vmatprep.mubr.msk.f32.mxu1 %vm4827_vm1, %v4828_v10 }
0x316e   :  { %4540 = vmatprep.subr.bf16.mxu1 %v4826_v3 }
0x323f   :  { %v2546_v25 = vpop.f32.mrb[26].mxu1 }
0x3240   :  { %v2550_v26 = vadd.f32 %v2546_v25, %v2087_v24  ;;  %v4332_v51 = vpop.f32.mrb[27].mxu1  ;;  %v2097_v24 = vadd.f32 %v5277_v15, %v5333_v39 }
0x3242   :  { %4693 = vtanh.f32 %v2550_v26  ;;  %v2551_v27 = vmul.f32 0.5, %v2550_v26 }
0x3244   :  { %4695 = vtanh.f32 %v2551_v27 }
0x324c   :  { %v4694_v12 = vpop.eup %4693 }
0x324d   :  { %2558 = vrot.lane.b32.xlu0 %v4694_v12, %s4831_s18 }
0x324e   :  { %v4696_v13 = vpop.eup %4695 }
0x324f   :  { %v2553_v30 = vadd.f32 1.0, %v4696_v13 }
0x3251   :  { %v2554_v31 = vmul.f32 0.5, %v2553_v30 }
0x3253   :  { %v2556_v37 = vmul.f32 %v2554_v31, %v2462_v48 }
0x32bf   :  { %v2559_v32 = vpop.permute.xlu0 %2558 }
0x32c0   :  { %v2561_v29 = vmul.f32 %v2559_v32, %v2554_v31 }
0x32c2   :  { %2563 = vrot.lane.b32.xlu1 %v2561_v29, %s4832_s6 }
0x3334   :  { %v2564_v38 = vpop.permute.xlu1 %2563 }
0x3335   :  { %v2566_v49 = vadd.f32 %v2564_v38, %v2556_v37 }
0x3337   :  { %4697 = vtanh.f32 %v2566_v49 }
0x3341   :  { %v4698_v9 = vpop.eup %4697 }
0x3342   :  { %2569 = vrot.lane.b32.xlu0 %v4698_v9, %s4830_s22 }
0x33b4   :  { %v2570_v5 = vpop.permute.xlu0 %2569 }
0x33b5   :  { %v5381_v40 = vmul.f32 %v2570_v5, %v2554_v31 }
0x33b7   :  { %2577 = vrot.lane.b32.xlu1 %v5381_v40, %s4833_s19 }
0x3429   :  { %v2578_v44 = vpop.permute.xlu1 %2577 }
0x342a   :  { %4338 = vmatmul.mubr.msk.f32.vlgmr.msra.gmra.mrb[28].mxu1 %vm55_vm0, %v2578_v44 }
0x342b   :  { %4542 = vmatpush3.bf16.msra.mxu1 %v5309_v35  ;;  %4344 = vmatprep.mubr.msk.f32.mxu1 %vm4827_vm1, %v4828_v10 }
0x342c   :  { %4543 = vmatprep.subr.bf16.mxu1 %v4826_v3 }
0x34fd   :  { %v2647_v45 = vpop.f32.mrb[28].mxu1 }
0x34fe   :  { %v2651_v58 = vadd.f32 %v2647_v45, %v2092_v50  ;;  %v4339_v59 = vpop.f32.mrb[29].mxu1  ;;  %v2102_v50 = vadd.f32 %v5333_v39, %v5283_v56 }
0x3500   :  { %4699 = vtanh.f32 %v2651_v58  ;;  %v2652_v60 = vmul.f32 0.5, %v2651_v58 }
0x3502   :  { %4701 = vtanh.f32 %v2652_v60 }
0x350a   :  { %v4700_v55 = vpop.eup %4699 }
0x350b   :  { %2659 = vrot.lane.b32.xlu0 %v4700_v55, %s4831_s18 }
0x350c   :  { %v4702_v61 = vpop.eup %4701 }
0x350d   :  { %v2654_v47 = vadd.f32 1.0, %v4702_v61 }
0x350f   :  { %v2655_v62 = vmul.f32 0.5, %v2654_v47 }
0x3511   :  { %v2657_v2 = vmul.f32 %v2655_v62, %v2566_v49 }
0x357d   :  { %v2660_v0 = vpop.permute.xlu0 %2659 }
0x357e   :  { %v2662_v1 = vmul.f32 %v2660_v0, %v2655_v62 }
0x3580   :  { %2664 = vrot.lane.b32.xlu1 %v2662_v1, %s4832_s6 }
0x35f2   :  { %v2665_v4 = vpop.permute.xlu1 %2664 }
0x35f3   :  { %v2667_v48 = vadd.f32 %v2665_v4, %v2657_v2 }
0x35f5   :  { %4703 = vtanh.f32 %v2667_v48 }
0x35ff   :  { %v4704_v16 = vpop.eup %4703 }
0x3600   :  { %2670 = vrot.lane.b32.xlu0 %v4704_v16, %s4830_s22 }
0x3672   :  { %v2671_v54 = vpop.permute.xlu0 %2670 }
0x3673   :  { %v5395_v8 = vmul.f32 %v2671_v54, %v2655_v62  ;;  %v1902_v54 = vmul.f32 0.5, %v5335_v41 }
0x3675   :  { %2681 = vrot.lane.b32.xlu1 %v5395_v8, %s4833_s19 }
0x36e7   :  { %v2682_v23 = vpop.permute.xlu1 %2681 }
0x36e8   :  { %4345 = vmatmul.mubr.msk.f32.vlgmr.msra.gmra.mrb[30].mxu1 %vm55_vm0, %v2682_v23 }
0x36e9   :  { %4545 = vmatpush3.bf16.msra.mxu1 %v5309_v35  ;;  %4351 = vmatprep.mubr.msk.f32.mxu1 %vm4827_vm1, %v4828_v10 }
0x36ea   :  { %4546 = vmatprep.subr.bf16.mxu1 %v4826_v3 }
0x37bb   :  { %v2751_v25 = vpop.f32.mrb[30].mxu1 }
0x37bc   :  { %v2755_v26 = vadd.f32 %v2751_v25, %v2097_v24  ;;  %v4346_v51 = vpop.f32.mrb[31].mxu1 }
0x37be   :  { %4705 = vtanh.f32 %v2755_v26  ;;  %v2756_v27 = vmul.f32 0.5, %v2755_v26 }
0x37c0   :  { %4707 = vtanh.f32 %v2756_v27 }
0x37c8   :  { %v4706_v12 = vpop.eup %4705 }
0x37c9   :  { %2763 = vrot.lane.b32.xlu0 %v4706_v12, %s4831_s18 }
0x37ca   :  { %v4708_v13 = vpop.eup %4707 }
0x37cb   :  { %v2758_v30 = vadd.f32 1.0, %v4708_v13 }
0x37cd   :  { %v2759_v31 = vmul.f32 0.5, %v2758_v30 }
0x37cf   :  { %v2761_v37 = vmul.f32 %v2759_v31, %v2667_v48 }
0x383b   :  { %v2764_v32 = vpop.permute.xlu0 %2763 }
0x383c   :  { %v2766_v29 = vmul.f32 %v2764_v32, %v2759_v31 }
0x383e   :  { %2768 = vrot.lane.b32.xlu1 %v2766_v29, %s4832_s6 }
0x38b0   :  { %v2769_v38 = vpop.permute.xlu1 %2768 }
0x38b1   :  { %v2771_v49 = vadd.f32 %v2769_v38, %v2761_v37  ;;  %v2107_v38 = vadd.f32 %v5281_v17, %v5333_v39 }
0x38b3   :  { %4709 = vtanh.f32 %v2771_v49 }
0x38bd   :  { %v4710_v15 = vpop.eup %4709 }
0x38be   :  { %2774 = vrot.lane.b32.xlu0 %v4710_v15, %s4830_s22 }
0x3930   :  { %v2775_v9 = vpop.permute.xlu0 %2774 }
0x3931   :  { %v5409_v5 = vmul.f32 %v2775_v9, %v2759_v31 }
0x3933   :  { %2785 = vrot.lane.b32.xlu1 %v5409_v5, %s4833_s19 }
0x39a5   :  { %v2786_v44 = vpop.permute.xlu1 %2785 }
0x39a6   :  { %4352 = vmatmul.mubr.msk.f32.vlgmr.msra.gmra.mrb[32].mxu1 %vm55_vm0, %v2786_v44 }
0x39a7   :  { %4548 = vmatpush3.bf16.msra.mxu1 %v5309_v35  ;;  %4358 = vmatprep.mubr.msk.f32.mxu1 %vm4827_vm1, %v4828_v10 }
0x39a8   :  { %4552 = vmatprep.subr.bf16.mxu1 %v4826_v3 }
0x3a79   :  { %v2855_v45 = vpop.f32.mrb[32].mxu1 }
0x3a7a   :  { %v2859_v58 = vadd.f32 %v2855_v45, %v2102_v50  ;;  %v4353_v59 = vpop.f32.mrb[33].mxu1 }
0x3a7c   :  { %4711 = vtanh.f32 %v2859_v58  ;;  %v2860_v60 = vmul.f32 0.5, %v2859_v58 }
0x3a7e   :  { %4713 = vtanh.f32 %v2860_v60 }
0x3a86   :  { %v4712_v55 = vpop.eup %4711 }
0x3a87   :  { %2867 = vrot.lane.b32.xlu0 %v4712_v55, %s4831_s18 }
0x3a88   :  { %v4714_v61 = vpop.eup %4713 }
0x3a89   :  { %v2862_v47 = vadd.f32 1.0, %v4714_v61 }
0x3a8b   :  { %v2863_v62 = vmul.f32 0.5, %v2862_v47 }
0x3a8d   :  { %v2865_v2 = vmul.f32 %v2863_v62, %v2771_v49 }
0x3af9   :  { %v2868_v0 = vpop.permute.xlu0 %2867 }
0x3afa   :  { %v2870_v1 = vmul.f32 %v2868_v0, %v2863_v62 }
0x3afc   :  { %2872 = vrot.lane.b32.xlu1 %v2870_v1, %s4832_s6 }
0x3b6e   :  { %v2873_v4 = vpop.permute.xlu1 %2872 }
0x3b6f   :  { %v2875_v48 = vadd.f32 %v2873_v4, %v2865_v2 }
0x3b71   :  { %4715 = vtanh.f32 %v2875_v48 }
0x3b72   :  { %4717 = vtanh.f32 %v5335_v41 }
0x3b73   :  { %4719 = vtanh.f32 %v1902_v54 }
0x3b7b   :  { %v4716_v56 = vpop.eup %4715 }
0x3b7c   :  { %2878 = vrot.lane.b32.xlu0 %v4716_v56, %s4830_s22  ;;  %v4718_v16 = vpop.eup %4717 }
0x3b7d   :  { %v4720_v23 = vpop.eup %4719 }
0x3b7e   :  { %v1904_v24 = vadd.f32 1.0, %v4720_v23 }
0x3b80   :  { %1909 = vrot.lane.b32.xlu0 %v4718_v16, %s4829_s21  ;;  %v1905_v51 = vmul.f32 0.5, %v1904_v24 }
0x3b82   :  { %v1907_v41 = vmul.f32 %v1905_v51, %v5299_v53 }
0x3bee   :  { %v2879_v25 = vpop.permute.xlu0 %2878 }
0x3bef   :  { %v5426_v26 = vmul.f32 %v2879_v25, %v2863_v62 }
0x3bf1   :  { %2889 = vrot.lane.b32.xlu1 %v5426_v26, %s4833_s19 }
0x3bf2   :  { %v1910_v12 = vpop.permute.xlu0 %1909 }
0x3bf3   :  { %v1912_v27 = vmul.f32 %v1910_v12, %v1905_v51 }
0x3bf5   :  { %1914 = vrot.lane.b32.xlu0 %v1912_v27, %s4830_s22 }
0x3c63   :  { %v2890_v13 = vpop.permute.xlu1 %2889 }
0x3c64   :  { %4359 = vmatmul.mubr.msk.f32.vlgmr.msra.gmra.mrb[34].mxu1 %vm55_vm0, %v2890_v13 }
0x3c65   :  { %4554 = vmatpush3.bf16.msra.mxu1 %v5309_v35  ;;  %4372 = vmatprep.mubr.msk.f32.mxu1 %vm4827_vm1, %v4828_v10 }
0x3c66   :  { %4558 = vmatprep.subr.bf16.mxu1 %v4826_v3 }
0x3c67   :  { %v1915_v30 = vpop.permute.xlu0 %1914 }
0x3c68   :  { %v1917_v31 = vadd.f32 %v1915_v30, %v1907_v41 }
0x3c6a   :  { %4721 = vtanh.f32 %v1917_v31 }
0x3c74   :  { %v4722_v32 = vpop.eup %4721 }
0x3c75   :  { %1920 = vrot.lane.b32.xlu0 %v4722_v32, %s4829_s21 }
0x3ce7   :  { %v1921_v29 = vpop.permute.xlu0 %1920 }
0x3ce8   :  { %v5438_v37 = vmul.f32 %v1921_v29, %v1905_v51 }
0x3cea   :  { %1925 = vrot.lane.b32.xlu0 %v5438_v37, %s4830_s22 }
0x3d37   :  { %v2959_v49 = vpop.f32.mrb[34].mxu1 }
0x3d38   :  { %v2963_v15 = vadd.f32 %v2959_v49, %v2107_v38  ;;  %v4360_v53 = vpop.f32.mrb[35].mxu1 }
0x3d39   :  { %v2117_v53 = vadd.f32 %v5285_v18, %v5333_v39 }
0x3d3a   :  { %4723 = vtanh.f32 %v2963_v15  ;;  %v2964_v45 = vmul.f32 0.5, %v2963_v15 }
0x3d3c   :  { %4725 = vtanh.f32 %v2964_v45 }
0x3d44   :  { %v4724_v9 = vpop.eup %4723 }
0x3d45   :  { %2971 = vrot.lane.b32.xlu1 %v4724_v9, %s4831_s18 }
0x3d46   :  { %v4726_v58 = vpop.eup %4725 }
0x3d47   :  { %v2966_v17 = vadd.f32 1.0, %v4726_v58 }
0x3d49   :  { %v2967_v59 = vmul.f32 0.5, %v2966_v17 }
0x3d4b   :  { %v2969_v61 = vmul.f32 %v2967_v59, %v2875_v48  ;;  %v2112_v48 = vadd.f32 %v5333_v39, %v5287_v19 }
0x3d5c   :  { %v1926_v44 = vpop.permute.xlu0 %1925 }
0x3d5d   :  { %1928 = vst.msk [vmem:[#allocation3 + $0x78] sm:$0xff] %vm270_vm2, %v1926_v44 }
0x3d64   :  { %v1945_v50 = vld [vmem:[#allocation3 + $0x78] sm:$0xff] }
0x3d65   :  { %4303 = vmatmul.mubr.msk.f32.gmra.mrb[42].mxu0 %vm270_vm2, %v1945_v50 }
0x3d66   :  { %4365 = vmatprep.mubr.msk.f32.mxu0 %vm4827_vm1, %v4828_v10 }
0x3db7   :  { %v2972_v55 = vpop.permute.xlu1 %2971 }
0x3db8   :  { %v2974_v60 = vmul.f32 %v2972_v55, %v2967_v59 }
0x3dba   :  { %2976 = vrot.lane.b32.xlu1 %v2974_v60, %s4832_s6 }
0x3e2c   :  { %v2977_v47 = vpop.permute.xlu1 %2976 }
0x3e2d   :  { %v2979_v62 = vadd.f32 %v2977_v47, %v2969_v61 }
0x3e2f   :  { %4727 = vtanh.f32 %v2979_v62 }
0x3e38   :  { %v5450_v0 = vpop.f32.mrb[42].mxu0 }
0x3e39   :  { %v4728_v1 = vpop.eup %4727  ;;  %v5452_v2 = vpop.f32.mrb[43].mxu0 }
0x3e3a   :  { %2982 = vrot.lane.b32.xlu1 %v4728_v1, %s4830_s22 }
0x3eac   :  { %v2983_v4 = vpop.permute.xlu1 %2982 }
0x3ead   :  { %v5455_v56 = vmul.f32 %v2983_v4, %v2967_v59 }
0x3eaf   :  { %2993 = vrot.lane.b32.xlu1 %v5455_v56, %s4833_s19 }
0x3f21   :  { %v2994_v16 = vpop.permute.xlu1 %2993 }
0x3f22   :  { %4366 = vmatmul.mubr.msk.f32.vlgmr.msra.gmra.mrb[44].mxu0 %vm55_vm0, %v2994_v16 }
0x3f23   :  { %4557 = vmatpush3.bf16.msra.mxu0 %v5309_v35  ;;  %4379 = vmatprep.mubr.msk.f32.mxu0 %vm4827_vm1, %v4828_v10 }
0x3f24   :  { %4561 = vmatprep.subr.bf16.mxu0 %v4826_v3 }
0x3ff5   :  { %v3063_v54 = vpop.f32.mrb[44].mxu0 }
0x3ff6   :  { %v3067_v23 = vadd.f32 %v3063_v54, %v2112_v48  ;;  %v4367_v24 = vpop.f32.mrb[45].mxu0  ;;  %v2122_v54 = vadd.f32 %v5333_v39, %v5291_v46 }
0x3ff8   :  { %4729 = vtanh.f32 %v3067_v23  ;;  %v3068_v51 = vmul.f32 0.5, %v3067_v23 }
0x3ffa   :  { %4731 = vtanh.f32 %v3068_v51 }
0x4002   :  { %v4730_v25 = vpop.eup %4729 }
0x4003   :  { %3075 = vrot.lane.b32.xlu0 %v4730_v25, %s4831_s18 }
0x4004   :  { %v4732_v12 = vpop.eup %4731 }
0x4005   :  { %v3070_v27 = vadd.f32 1.0, %v4732_v12 }
0x4007   :  { %v3071_v13 = vmul.f32 0.5, %v3070_v27 }
0x4009   :  { %v3073_v31 = vmul.f32 %v3071_v13, %v2979_v62 }
0x4075   :  { %v3076_v41 = vpop.permute.xlu0 %3075 }
0x4076   :  { %v3078_v30 = vmul.f32 %v3076_v41, %v3071_v13 }
0x4078   :  { %3080 = vrot.lane.b32.xlu1 %v3078_v30, %s4832_s6 }
0x40ea   :  { %v3081_v32 = vpop.permute.xlu1 %3080 }
0x40eb   :  { %v3083_v29 = vadd.f32 %v3081_v32, %v3073_v31 }
0x40ed   :  { %4733 = vtanh.f32 %v3083_v29 }
0x40f7   :  { %v4734_v19 = vpop.eup %4733 }
0x40f8   :  { %3086 = vrot.lane.b32.xlu0 %v4734_v19, %s4830_s22 }
0x416a   :  { %v3087_v38 = vpop.permute.xlu0 %3086 }
0x416b   :  { %v3089_v49 = vmul.f32 %v3087_v38, %v3071_v13 }
0x416d   :  { %3091 = vrot.lane.b32.xlu1 %v3089_v49, %s4833_s19 }
0x41df   :  { %v3092_v15 = vpop.permute.xlu1 %3091 }
0x41e0   :  { %3094 = vst.msk [vmem:[#allocation7 + $0x8] sm:$0xff] %vm55_vm0, %v3092_v15  ;;  %4373 = vmatmul.mubr.msk.f32.vlgmr.msra.gmra.mrb[36].mxu1 %vm55_vm0, %v3092_v15 }
0x41e1   :  { %4560 = vmatpush3.bf16.msra.mxu1 %v5309_v35  ;;  %4386 = vmatprep.mubr.msk.f32.mxu1 %vm4827_vm1, %v4828_v10 }
0x41e2   :  { %4564 = vmatprep.subr.bf16.mxu1 %v4826_v3 }
0x42b3   :  { %v3164_v9 = vpop.f32.mrb[36].mxu1 }
0x42b4   :  { %v3168_v44 = vadd.f32 %v3164_v9, %v2117_v53  ;;  %v4374_v50 = vpop.f32.mrb[37].mxu1  ;;  %v2127_v53 = vadd.f32 %v5289_v20, %v5333_v39 }
0x42b6   :  { %4735 = vtanh.f32 %v3168_v44  ;;  %v3169_v58 = vmul.f32 0.5, %v3168_v44 }
0x42b8   :  { %4737 = vtanh.f32 %v3169_v58 }
0x42c0   :  { %v4736_v45 = vpop.eup %4735 }
0x42c1   :  { %3176 = vrot.lane.b32.xlu0 %v4736_v45, %s4831_s18 }
0x42c2   :  { %v4738_v17 = vpop.eup %4737 }
0x42c3   :  { %v3171_v59 = vadd.f32 1.0, %v4738_v17 }
0x42c5   :  { %v3172_v55 = vmul.f32 0.5, %v3171_v59 }
0x42c7   :  { %v3174_v47 = vmul.f32 %v3172_v55, %v3083_v29 }
0x4333   :  { %v3177_v60 = vpop.permute.xlu0 %3176 }
0x4334   :  { %v3179_v61 = vmul.f32 %v3177_v60, %v3172_v55 }
0x4336   :  { %3181 = vrot.lane.b32.xlu1 %v3179_v61, %s4832_s6 }
0x43a8   :  { %v3182_v62 = vpop.permute.xlu1 %3181 }
0x43a9   :  { %v3184_v1 = vadd.f32 %v3182_v62, %v3174_v47 }
0x43ab   :  { %4739 = vtanh.f32 %v3184_v1 }
0x43b5   :  { %v4740_v18 = vpop.eup %4739 }
0x43b6   :  { %3187 = vrot.lane.b32.xlu0 %v4740_v18, %s4830_s22 }
0x4428   :  { %v3188_v4 = vpop.permute.xlu0 %3187 }
0x4429   :  { %v5481_v16 = vmul.f32 %v3188_v4, %v3172_v55 }
0x442b   :  { %3197 = vrot.lane.b32.xlu1 %v5481_v16, %s4833_s19 }
0x449d   :  { %v3198_v48 = vpop.permute.xlu1 %3197 }
0x449e   :  { %4380 = vmatmul.mubr.msk.f32.vlgmr.msra.gmra.mrb[46].mxu0 %vm55_vm0, %v3198_v48  ;;  %v2132_v48 = vadd.f32 %v5333_v39, %v5295_v7 }
0x449f   :  { %4563 = vmatpush3.bf16.msra.mxu0 %v5309_v35  ;;  %4393 = vmatprep.mubr.msk.f32.mxu0 %vm4827_vm1, %v4828_v10 }
0x44a0   :  { %4567 = vmatprep.subr.bf16.mxu0 %v4826_v3 }
0x4571   :  { %v3267_v23 = vpop.f32.mrb[46].mxu0 }
0x4572   :  { %v3271_v24 = vadd.f32 %v3267_v23, %v2122_v54  ;;  %v4381_v25 = vpop.f32.mrb[47].mxu0 }
0x4574   :  { %4741 = vtanh.f32 %v3271_v24  ;;  %v3272_v12 = vmul.f32 0.5, %v3271_v24 }
0x4576   :  { %4743 = vtanh.f32 %v3272_v12 }
0x457e   :  { %v4742_v51 = vpop.eup %4741 }
0x457f   :  { %3279 = vrot.lane.b32.xlu0 %v4742_v51, %s4831_s18 }
0x4580   :  { %v4744_v27 = vpop.eup %4743 }
0x4581   :  { %v3274_v13 = vadd.f32 1.0, %v4744_v27 }
0x4583   :  { %v3275_v41 = vmul.f32 0.5, %v3274_v13 }
0x4585   :  { %v3277_v32 = vmul.f32 %v3275_v41, %v3184_v1 }
0x45f1   :  { %v3280_v30 = vpop.permute.xlu0 %3279 }
0x45f2   :  { %v3282_v31 = vmul.f32 %v3280_v30, %v3275_v41 }
0x45f4   :  { %3284 = vrot.lane.b32.xlu1 %v3282_v31, %s4832_s6 }
0x4666   :  { %v3285_v29 = vpop.permute.xlu1 %3284 }
0x4667   :  { %v3287_v19 = vadd.f32 %v3285_v29, %v3277_v32 }
0x4669   :  { %4745 = vtanh.f32 %v3287_v19 }
0x4673   :  { %v4746_v46 = vpop.eup %4745 }
0x4674   :  { %3290 = vrot.lane.b32.xlu0 %v4746_v46, %s4830_s22 }
0x46e6   :  { %v3291_v38 = vpop.permute.xlu0 %3290 }
0x46e7   :  { %v5495_v49 = vmul.f32 %v3291_v38, %v3275_v41 }
0x46e9   :  { %3300 = vrot.lane.b32.xlu1 %v5495_v49, %s4833_s19 }
0x475b   :  { %v3301_v15 = vpop.permute.xlu1 %3300 }
0x475c   :  { %4387 = vmatmul.mubr.msk.f32.vlgmr.msra.gmra.mrb[38].mxu1 %vm55_vm0, %v3301_v15  ;;  %v2137_v15 = vadd.f32 %v5293_v21, %v5333_v39 }
0x475d   :  { %4566 = vmatpush3.bf16.msra.mxu1 %v5309_v35  ;;  %4400 = vmatprep.mubr.msk.f32.mxu1 %vm4827_vm1, %v4828_v10 }
0x475e   :  { %4570 = vmatprep.subr.bf16.mxu1 %v4826_v3 }
0x482f   :  { %v3370_v9 = vpop.f32.mrb[38].mxu1 }
0x4830   :  { %v3374_v44 = vadd.f32 %v3370_v9, %v2127_v53  ;;  %v4388_v50 = vpop.f32.mrb[39].mxu1 }
0x4832   :  { %4747 = vtanh.f32 %v3374_v44  ;;  %v3375_v58 = vmul.f32 0.5, %v3374_v44 }
0x4834   :  { %4749 = vtanh.f32 %v3375_v58 }
0x483c   :  { %v4748_v45 = vpop.eup %4747 }
0x483d   :  { %3382 = vrot.lane.b32.xlu0 %v4748_v45, %s4831_s18 }
0x483e   :  { %v4750_v17 = vpop.eup %4749 }
0x483f   :  { %v3377_v59 = vadd.f32 1.0, %v4750_v17 }
0x4841   :  { %v3378_v55 = vmul.f32 0.5, %v3377_v59 }
0x4843   :  { %v3380_v3 = vmul.f32 %v3378_v55, %v3287_v19 }
0x48af   :  { %v3383_v60 = vpop.permute.xlu0 %3382 }
0x48b0   :  { %v3385_v61 = vmul.f32 %v3383_v60, %v3378_v55 }
0x48b2   :  { %3387 = vrot.lane.b32.xlu1 %v3385_v61, %s4832_s6 }
0x4924   :  { %v3388_v47 = vpop.permute.xlu1 %3387 }
0x4925   :  { %v3390_v62 = vadd.f32 %v3388_v47, %v3380_v3 }
0x4927   :  { %4751 = vtanh.f32 %v3390_v62 }
0x4931   :  { %v4752_v20 = vpop.eup %4751 }
0x4932   :  { %3393 = vrot.lane.b32.xlu0 %v4752_v20, %s4830_s22  ;;  %v2142_v20 = vadd.f32 %v5333_v39, %v5452_v2 }
0x49a4   :  { %v3394_v1 = vpop.permute.xlu0 %3393 }
0x49a5   :  { %v5509_v18 = vmul.f32 %v3394_v1, %v3378_v55 }
0x49a7   :  { %3400 = vrot.lane.b32.xlu1 %v5509_v18, %s4833_s19 }
0x4a19   :  { %v3401_v4 = vpop.permute.xlu1 %3400 }
0x4a1a   :  { %4394 = vmatmul.mubr.msk.f32.vlgmr.msra.gmra.mrb[48].mxu0 %vm55_vm0, %v3401_v4 }
0x4a1b   :  { %4569 = vmatpush3.bf16.msra.mxu0 %v5309_v35  ;;  %4407 = vmatprep.mubr.msk.f32.mxu0 %vm4827_vm1, %v4828_v10 }
0x4aed   :  { %v3470_v54 = vpop.f32.mrb[48].mxu0 }
0x4aee   :  { %v3474_v23 = vadd.f32 %v3470_v54, %v2132_v48  ;;  %v4395_v24 = vpop.f32.mrb[49].mxu0 }
0x4af0   :  { %4753 = vtanh.f32 %v3474_v23  ;;  %v3475_v51 = vmul.f32 0.5, %v3474_v23 }
0x4af2   :  { %4755 = vtanh.f32 %v3475_v51 }
0x4afa   :  { %v4754_v25 = vpop.eup %4753 }
0x4afb   :  { %3482 = vrot.lane.b32.xlu0 %v4754_v25, %s4831_s18 }
0x4afc   :  { %v4756_v12 = vpop.eup %4755 }
0x4afd   :  { %v3477_v27 = vadd.f32 1.0, %v4756_v12 }
0x4aff   :  { %v3478_v13 = vmul.f32 0.5, %v3477_v27 }
0x4b01   :  { %v3480_v31 = vmul.f32 %v3478_v13, %v3390_v62 }
0x4b6d   :  { %v3483_v41 = vpop.permute.xlu0 %3482 }
0x4b6e   :  { %v3485_v30 = vmul.f32 %v3483_v41, %v3478_v13 }
0x4b70   :  { %3487 = vrot.lane.b32.xlu1 %v3485_v30, %s4832_s6 }
0x4be2   :  { %v3488_v32 = vpop.permute.xlu1 %3487 }
0x4be3   :  { %v3490_v29 = vadd.f32 %v3488_v32, %v3480_v31 }
0x4be5   :  { %4757 = vtanh.f32 %v3490_v29 }
0x4bef   :  { %v4758_v7 = vpop.eup %4757 }
0x4bf0   :  { %3493 = vrot.lane.b32.xlu0 %v4758_v7, %s4830_s22  ;;  %v2147_v7 = vadd.f32 %v5450_v0, %v5333_v39 }
0x4c62   :  { %v3494_v19 = vpop.permute.xlu0 %3493 }
0x4c63   :  { %v5522_v46 = vmul.f32 %v3494_v19, %v3478_v13 }
0x4c65   :  { %3503 = vrot.lane.b32.xlu1 %v5522_v46, %s4833_s19 }
0x4cd7   :  { %v3504_v38 = vpop.permute.xlu1 %3503 }
0x4cd8   :  { %4401 = vmatmul.mubr.msk.f32.vlgmr.msra.gmra.mrb[40].mxu1 %vm55_vm0, %v3504_v38 }
0x4cd9   :  { %4572 = vmatpush3.bf16.msra.mxu1 %v5309_v35  ;;  %4414 = vmatprep.mubr.msk.f32.mxu1 %vm4827_vm1, %v4828_v10 }
0x4dab   :  { %v3573_v53 = vpop.f32.mrb[40].mxu1 }
0x4dac   :  { %v3577_v9 = vadd.f32 %v3573_v53, %v2137_v15  ;;  %v4402_v44 = vpop.f32.mrb[41].mxu1 }
0x4dae   :  { %4759 = vtanh.f32 %v3577_v9  ;;  %v3578_v45 = vmul.f32 0.5, %v3577_v9 }
0x4db0   :  { %4761 = vtanh.f32 %v3578_v45 }
0x4db8   :  { %v4760_v50 = vpop.eup %4759 }
0x4db9   :  { %3585 = vrot.lane.b32.xlu0 %v4760_v50, %s4831_s18 }
0x4dba   :  { %v4762_v58 = vpop.eup %4761 }
0x4dbb   :  { %v3580_v17 = vadd.f32 1.0, %v4762_v58 }
0x4dbd   :  { %v3581_v59 = vmul.f32 0.5, %v3580_v17 }
0x4dbf   :  { %v3583_v10 = vmul.f32 %v3581_v59, %v3490_v29 }
0x4e2b   :  { %v3586_v55 = vpop.permute.xlu0 %3585 }
0x4e2c   :  { %v3588_v35 = vmul.f32 %v3586_v55, %v3581_v59 }
0x4e2e   :  { %3590 = vrot.lane.b32.xlu1 %v3588_v35, %s4832_s6 }
0x4ea0   :  { %v3591_v60 = vpop.permute.xlu1 %3590 }
0x4ea1   :  { %v3593_v61 = vadd.f32 %v3591_v60, %v3583_v10 }
0x4ea3   :  { %4763 = vtanh.f32 %v3593_v61 }
0x4ead   :  { %v4764_v21 = vpop.eup %4763 }
0x4eae   :  { %3596 = vrot.lane.b32.xlu0 %v4764_v21, %s4830_s22 }
0x4f20   :  { %v3597_v3 = vpop.permute.xlu0 %3596 }
0x4f21   :  { %v5535_v47 = vmul.f32 %v3597_v3, %v3581_v59 }
0x4f23   :  { %3606 = vrot.lane.b32.xlu1 %v5535_v47, %s4833_s19 }
0x4f95   :  { %v3607_v62 = vpop.permute.xlu1 %3606 }
0x4f96   :  { %4408 = vmatmul.mubr.msk.f32.vlgmr.msra.gmra.mrb[50].mxu0 %vm55_vm0, %v3607_v62 }
0x5069   :  { %v3676_v1 = vpop.f32.mrb[50].mxu0 }
0x506a   :  { %v3680_v4 = vadd.f32 %v3676_v1, %v2142_v20  ;;  %v4409_v48 = vpop.f32.mrb[51].mxu0 }
0x506c   :  { %4765 = vtanh.f32 %v3680_v4  ;;  %v3681_v23 = vmul.f32 0.5, %v3680_v4 }
0x506e   :  { %4767 = vtanh.f32 %v3681_v23 }
0x5076   :  { %v4766_v54 = vpop.eup %4765 }
0x5077   :  { %3688 = vrot.lane.b32.xlu0 %v4766_v54, %s4831_s18 }
0x5078   :  { %v4768_v24 = vpop.eup %4767 }
0x5079   :  { %v3683_v25 = vadd.f32 1.0, %v4768_v24 }
0x507b   :  { %v3684_v51 = vmul.f32 0.5, %v3683_v25 }
0x507d   :  { %v3686_v13 = vmul.f32 %v3684_v51, %v3593_v61 }
0x50e9   :  { %v3689_v12 = vpop.permute.xlu0 %3688 }
0x50ea   :  { %v3691_v27 = vmul.f32 %v3689_v12, %v3684_v51 }
0x50ec   :  { %3693 = vrot.lane.b32.xlu1 %v3691_v27, %s4832_s6 }
0x515e   :  { %v3694_v41 = vpop.permute.xlu1 %3693 }
0x515f   :  { %v3696_v30 = vadd.f32 %v3694_v41, %v3686_v13 }
0x5161   :  { %4769 = vtanh.f32 %v3696_v30 }
0x516b   :  { %v4770_v2 = vpop.eup %4769 }
0x516c   :  { %3699 = vrot.lane.b32.xlu0 %v4770_v2, %s4830_s22 }
0x51de   :  { %v3700_v31 = vpop.permute.xlu0 %3699 }
0x51df   :  { %v5545_v32 = vmul.f32 %v3700_v31, %v3684_v51 }
0x51e1   :  { %3709 = vrot.lane.b32.xlu1 %v5545_v32, %s4833_s19 }
0x5253   :  { %v3710_v29 = vpop.permute.xlu1 %3709 }
0x5254   :  { %4415 = vmatmul.mubr.msk.f32.vlgmr.msra.gmra.mrb[42].mxu1 %vm55_vm0, %v3710_v29 }
0x5327   :  { %v3779_v19 = vpop.f32.mrb[42].mxu1 }
0x5328   :  { %v3783_v38 = vadd.f32 %v3779_v19, %v2147_v7  ;;  %v4416_v15 = vpop.f32.mrb[43].mxu1 }
0x532a   :  { %4771 = vtanh.f32 %v3783_v38  ;;  %v3784_v9 = vmul.f32 0.5, %v3783_v38 }
0x532c   :  { %4773 = vtanh.f32 %v3784_v9 }
0x5334   :  { %v4772_v53 = vpop.eup %4771 }
0x5335   :  { %3791 = vrot.lane.b32.xlu0 %v4772_v53, %s4831_s18 }
0x5336   :  { %v4774_v44 = vpop.eup %4773 }
0x5337   :  { %v3786_v50 = vadd.f32 1.0, %v4774_v44 }
0x5339   :  { %v5553_v45 = vmul.f32 0.5, %v3786_v50 }
0x53a7   :  { %v3792_v58 = vpop.permute.xlu0 %3791 }
0x53a8   :  { %v3794_v17 = vmul.f32 %v3792_v58, %v5553_v45 }
0x53aa   :  { %3796 = vrot.lane.b32.xlu1 %v3794_v17, %s4832_s6 }
0x53ae   :  { %2366 = vrot.lane.b32.xlu1 %v5353_v42, %s4831_s18 }
0x53b2   :  { %2470 = vrot.lane.b32.xlu1 %v5367_v14, %s4834_s2 }
0x53b6   :  { %2675 = vrot.lane.b32.xlu1 %v5395_v8, %s4832_s6 }
0x53ba   :  { %474 = vrot.lane.b32.xlu1 %v4963_v52, %s4829_s21  ;;  %v3789_v52 = vmul.f32 %v5553_v45, %v3696_v30 }
0x53be   :  { %1305 = vrot.lane.b32.xlu1 %v5165_v6, %s4829_s21 }
0x53c2   :  { %2779 = vrot.lane.b32.xlu1 %v5409_v5, %s4830_s22 }
0x53c6   :  { %580 = vrot.lane.b32.xlu1 %v4979_v11, %s4831_s18 }
0x53ca   :  { %1410 = vrot.lane.b32.xlu1 %v5182_v28, %s4831_s18 }
0x53ce   :  { %2883 = vrot.lane.b32.xlu1 %v5426_v26, %s4835_s20 }
0x53d2   :  { %2987 = vrot.lane.b32.xlu1 %v5455_v56, %s4829_s21 }
0x541c   :  { %v3797_v39 = vpop.permute.xlu1 %3796 }
0x541d   :  { %v3799_v6 = vadd.f32 %v3797_v39, %v3789_v52 }
0x541f   :  { %4775 = vtanh.f32 %v3799_v6 }
0x5420   :  { %v2367_v42 = vpop.permute.xlu1 %2366 }
0x5421   :  { %2370 = vst.msk [vmem:[#allocation7] sm:$0xff] %vm2369_vm3, %v2367_v42 }
0x5424   :  { %v2471_v11 = vpop.permute.xlu1 %2470 }
0x5425   :  { %2474 = vst.msk [vmem:[#allocation7] sm:$0xff] %vm2473_vm4, %v2471_v11 }
0x5426   :  { %2574 = vst.msk [vmem:[#allocation7] sm:$0xff] %vm2573_vm5, %v5381_v40 }
0x5428   :  { %v2676_v28 = vpop.permute.xlu1 %2675 }
0x5429   :  { %v4776_v14 = vpop.eup %4775  ;;  %2679 = vst.msk [vmem:[#allocation7] sm:$0xff] %vm2678_vm6, %v2676_v28 }
0x542a   :  { %3802 = vrot.lane.b32.xlu0 %v4776_v14, %s4830_s22 }
0x542c   :  { %v475_v8 = vpop.permute.xlu1 %474 }
0x542d   :  { %478 = vst.msk [vmem:[#allocation5] sm:$0xff] %vm477_vm7, %v475_v8 }
0x542e   :  { %3192 = vrot.lane.b32.xlu0 %v5481_v16, %s4831_s18 }
0x5430   :  { %v1306_v5 = vpop.permute.xlu1 %1305 }
0x5431   :  { %1308 = vst.msk [vmem:[#allocation5 + $0x10] sm:$0xff] %vm477_vm7, %v1306_v5 }
0x5432   :  { %3295 = vrot.lane.b32.xlu0 %v5495_v49, %s4834_s2 }
0x5434   :  { %v2780_v40 = vpop.permute.xlu1 %2779 }
0x5435   :  { %2783 = vst.msk [vmem:[#allocation7] sm:$0xff] %vm2782_vm8, %v2780_v40 }
0x5436   :  { %3498 = vrot.lane.b32.xlu0 %v5522_v46, %s4832_s6 }
0x5438   :  { %v581_v26 = vpop.permute.xlu1 %580 }
0x5439   :  { %584 = vst.msk [vmem:[#allocation5] sm:$0xff] %vm583_vm9, %v581_v26 }
0x543a   :  { %687 = vst.msk [vmem:[#allocation5] sm:$0xff] %vm686_vm10, %v5048_v43  ;;  %891 = vrot.lane.b32.xlu0 %v5099_v34, %s4829_s21 }
0x543c   :  { %v1411_v0 = vpop.permute.xlu1 %1410 }
0x543d   :  { %1413 = vst.msk [vmem:[#allocation5 + $0x10] sm:$0xff] %vm583_vm9, %v1411_v0 }
0x543e   :  { %1515 = vst.msk [vmem:[#allocation5 + $0x10] sm:$0xff] %vm686_vm10, %v5199_v57  ;;  %1719 = vrot.lane.b32.xlu0 %v5239_v33, %s4829_s21 }
0x5440   :  { %v2884_v56 = vpop.permute.xlu1 %2883 }
0x5441   :  { %2887 = vst.msk [vmem:[#allocation7] sm:$0xff] %vm2886_vm11, %v2884_v56 }
0x5442   :  { %3601 = vrot.lane.b32.xlu0 %v5535_v47, %s4830_s22 }
0x5444   :  { %v2988_v43 = vpop.permute.xlu1 %2987 }
0x5445   :  { %2991 = vst.msk [vmem:[#allocation7] sm:$0xff] %vm2990_vm12, %v2988_v43 }
0x5446   :  { %996 = vrot.lane.b32.xlu0 %v5116_v63, %s4831_s18 }
0x544a   :  { %1824 = vrot.lane.b32.xlu0 %v5313_v36, %s4831_s18 }
0x544e   :  { %3704 = vrot.lane.b32.xlu0 %v5545_v32, %s4835_s20 }
0x549c   :  { %v3803_v34 = vpop.permute.xlu0 %3802 }
0x549d   :  { %v3805_v57 = vmul.f32 %v3803_v34, %v5553_v45 }
0x549f   :  { %3807 = vrot.lane.b32.xlu0 %v3805_v57, %s4829_s21  ;;  %s4836_s21 = smov [#allocation5]  }
0x54a0   :  { %v3193_v33 = vpop.permute.xlu0 %3192  ;;  %s3817_s22 = sshll.u32 %s4836_s21, 4  ;;  %s3818_s22 = int_to_ptr.vmem [resolvable:$true] %s3817_s22 }
0x54a1   :  { %3195 = vst.msk [vmem:[#allocation7 + $0x8] sm:$0xff] %vm2369_vm3, %v3193_v33  ;;  %s4778_s23 = scalar_lea.vmem %s3818_s22, 512  ;;  %p4783_p1 = scmp.lt.s32.totalorder %s3818_s22, %s3818_s22 }
0x54a2   :  { %p4779_p0 = scmp.ne.s32.totalorder %s3818_s22, %s4778_s23  ;;  %p4784_p2 = scmp.lt.s32.totalorder %s4778_s23, %s4778_s23 }
0x54a4   :  { %v3296_v16 = vpop.permute.xlu0 %3295  ;;  %p4785_p3 = por %p4784_p2, %p4783_p1 }
0x54a5   :  { %3298 = vst.msk [vmem:[#allocation7 + $0x8] sm:$0xff] %vm2473_vm4, %v3296_v16 }
0x54a6   :  { %3397 = vst.msk [vmem:[#allocation7 + $0x8] sm:$0xff] %vm2573_vm5, %v5509_v18  ;;  %p4786_p4 = pnand %p4785_p3, %p4779_p0 }
0x54a8   :  { %v3499_v63 = vpop.permute.xlu0 %3498 }
0x54a9   :  { %3501 = vst.msk [vmem:[#allocation7 + $0x8] sm:$0xff] %vm2678_vm6, %v3499_v63 }
0x54ac   :  { %v892_v36 = vpop.permute.xlu0 %891 }
0x54ad   :  { %894 = vst.msk [vmem:[#allocation5 + $0x8] sm:$0xff] %vm477_vm7, %v892_v36 }
0x54b0   :  { %v1720_v49 = vpop.permute.xlu0 %1719 }
0x54b1   :  { %1722 = vst.msk [vmem:[#allocation5 + $0x18] sm:$0xff] %vm477_vm7, %v1720_v49 }
0x54b4   :  { %v3602_v46 = vpop.permute.xlu0 %3601 }
0x54b5   :  { %3604 = vst.msk [vmem:[#allocation7 + $0x8] sm:$0xff] %vm2782_vm8, %v3602_v46 }
0x54b8   :  { %v997_v59 = vpop.permute.xlu0 %996 }
0x54b9   :  { %999 = vst.msk [vmem:[#allocation5 + $0x8] sm:$0xff] %vm583_vm9, %v997_v59 }
0x54ba   :  { %1101 = vst.msk [vmem:[#allocation5 + $0x8] sm:$0xff] %vm686_vm10, %v5133_v22 }
0x54bc   :  { %v1825_v18 = vpop.permute.xlu0 %1824 }
0x54bd   :  { %1827 = vst.msk [vmem:[#allocation5 + $0x18] sm:$0xff] %vm583_vm9, %v1825_v18 }
0x54be   :  { %1929 = vst.msk [vmem:[#allocation5 + $0x18] sm:$0xff] %vm686_vm10, %v5438_v37 }
0x54bf   :  { %4789 = shalt.err (!%p4786_p4)
}
0x54c0   :  { %s4790_s26 = scalar_lea.hbm %s5662_s7, 512 }
0x54c1   :  { %p4791_p5 = scmp.ne.s32.totalorder %s5662_s7, %s4790_s26  ;;  %p4794_p6 = scmp.lt.u32.totalorder %s4790_s26, %s5662_s7 }
0x54c3   :  { %p4796_p7 = pnand %p4794_p6, %p4791_p5 }
0x54c5   :  { %4799 = shalt.err (!%p4796_p7)
}
0x54c6   :  { %3820 = dma.vmem_to_hbm [thread:$0]  %s3818_s22, 512, %s5662_s7, [#allocation6]   ;;  %v3705_v22 = vpop.permute.xlu0 %3704 }
0x54c7   :  { %3707 = vst.msk [vmem:[#allocation7 + $0x8] sm:$0xff] %vm2886_vm11, %v3705_v22  ;;  %s4837_s10 = smov [#allocation7]  }
0x54c8   :  { %s3827_s11 = sshll.u32 %s4837_s10, 4  ;;  %s3828_s11 = int_to_ptr.vmem [resolvable:$true] %s3827_s11 }
0x54c9   :  { %s4800_s12 = scalar_lea.vmem %s3828_s11, 256  ;;  %p4805_p9 = scmp.lt.s32.totalorder %s3828_s11, %s3828_s11 }
0x54ca   :  { %p4801_p8 = scmp.ne.s32.totalorder %s3828_s11, %s4800_s12  ;;  %p4806_p10 = scmp.lt.s32.totalorder %s4800_s12, %s4800_s12 }
0x54cc   :  { %p4807_p11 = por %p4806_p10, %p4805_p9 }
0x54ce   :  { %p4808_p12 = pnand %p4807_p11, %p4801_p8 }
0x5511   :  { %v3808_v37 = vpop.permute.xlu0 %3807 }
0x5512   :  { %3810 = vst.msk [vmem:[#allocation7 + $0x8] sm:$0xff] %vm2990_vm12, %v3808_v37 }
0x5513   :  { %4811 = shalt.err (!%p4808_p12)
}
0x5514   :  { %s4812_s7 = scalar_lea.hbm %s5663_s8, 256 }
0x5515   :  { %p4813_p13 = scmp.ne.s32.totalorder %s5663_s8, %s4812_s7  ;;  %p4816_p0 = scmp.lt.u32.totalorder %s4812_s7, %s5663_s8 }
0x5517   :  { %p4818_p1 = pnand %p4816_p0, %p4813_p13 }
0x5519   :  { %4821 = shalt.err (!%p4818_p1)
}
0x551a   :  { %3830 = dma.vmem_to_hbm [thread:$0]  %s3828_s11, 256, %s5663_s8, [#allocation8]  }
0x551b   :  { %4822 = dma.done.wait [#allocation6], 512  }
0x551c   :  { %4823 = vsyncadd [#allocation6], 4294966784 }
0x551d   :  { %4824 = dma.done.wait [#allocation8], 256  }
0x551e   :  { %4825 = vsyncadd [#allocation8], 4294967040 }
0x551f   :  { %3837 = vsyncpa [#allocation6], 1 }
0x5520   :  { %3838 = vsyncpa [#allocation8], 1 }

</bundles_post_ra>
